<compile_context>
chip_gen: v5e
topology: v5e:2x2
jax: 0.10.0
libtpu: 0.0.40
codegen_flags: <defaults>
</compile_context>

<pallas_src>
import functools

import jax
import jax.numpy as jnp
from jax.experimental import pallas as pl
from jax.experimental.pallas import tpu as pltpu


SUB_ROWS = 128  # rows per inner sub-chunk: h chunk is (128, 256) f32 = 32 vregs


def _mlp_kernel(z_ref, w1_ref, b1_ref, w2_ref, b2_ref, o_ref, *, n_sub, sub_rows):
    # z_ref:  (tm, latent)        VMEM batch tile
    # w1_ref: (latent, hidden_p)  resident weight (pre-transposed, zero-padded lanes)
    # b1_ref: (1, hidden_p)
    # w2_ref: (1, hidden_p)       second-layer weight as a lane row
    # b2_ref: (1,)                SMEM scalar
    # o_ref:  (1, tm)             lane-dense output row
    w1 = w1_ref[...]
    b1 = b1_ref[...]
    w2 = w2_ref[...]
    b2 = b2_ref[0]

    def body(s, carry):
        r0 = pl.multiple_of(s * sub_rows, sub_rows)
        zc = z_ref[pl.ds(r0, sub_rows), :]                               # (sub_rows, latent)
        h = jnp.dot(zc, w1, preferred_element_type=jnp.float32)          # MXU: (sub_rows, hidden_p)
        h = jnp.maximum(h + b1, 0.0)                                     # VPU bias + ReLU
        # Second layer as VPU multiply + XLU lane-reduce (avoids N=1 MXU matmul).
        outv = jnp.sum(h * w2, axis=-1) + b2                             # (sub_rows,)
        o_ref[:, pl.ds(r0, sub_rows)] = outv[None, :].astype(o_ref.dtype)
        return carry

    jax.lax.fori_loop(0, n_sub, body, 0, unroll=True)


def sparse_classification_forward(z, w1, b1, w2, b2, *, tm=512):
    """Forward pass of SparseClassification.

    z : (B, latent) float
    w1: (hidden, latent), b1: (hidden,)   -- PyTorch nn.Linear layout
    w2: (1, hidden),      b2: (1,)
    Returns (B, 1) float32.
    """
    B, latent = z.shape
    hidden = w1.shape[0]

    # Zero-pad hidden to a multiple of 128 lanes (200 -> 256): padded columns of w1/b1/w2 are 0,
    # so relu(0 + 0) * 0 contributes nothing to the reduction.
    hidden_pad = ((hidden + 127) // 128) * 128
    w1_t = jnp.zeros((latent, hidden_pad), jnp.float32).at[:, :hidden].set(
        jnp.asarray(w1, jnp.float32).T)
    b1_p = jnp.zeros((1, hidden_pad), jnp.float32).at[:, :hidden].set(
        jnp.asarray(b1, jnp.float32).reshape(1, hidden))
    w2_row = jnp.zeros((1, hidden_pad), jnp.float32).at[:, :hidden].set(
        jnp.asarray(w2, jnp.float32).reshape(1, hidden))
    b2_s = jnp.asarray(b2, jnp.float32).reshape(1)

    # Batch tile: multiple of SUB_ROWS, no larger than needed for this B.
    tm = max(SUB_ROWS, (int(tm) // SUB_ROWS) * SUB_ROWS)
    b_pad_min = ((B + SUB_ROWS - 1) // SUB_ROWS) * SUB_ROWS
    tm = min(tm, b_pad_min)
    # Prefer >= 2 grid steps so v7x's two TensorCores both get work.
    if pl.cdiv(B, tm) < 2 and b_pad_min >= 2 * SUB_ROWS:
        tm = ((b_pad_min // 2 + SUB_ROWS - 1) // SUB_ROWS) * SUB_ROWS
    num_tiles = pl.cdiv(B, tm)
    B_pad = num_tiles * tm

    z_p = jnp.asarray(z, jnp.float32)
    if B_pad != B:
        z_p = jnp.pad(z_p, ((0, B_pad - B), (0, 0)))

    n_sub = tm // SUB_ROWS
    kernel = functools.partial(_mlp_kernel, n_sub=n_sub, sub_rows=SUB_ROWS)

    cost = pl.CostEstimate(
        flops=2 * B_pad * latent * hidden_pad + 2 * B_pad * hidden_pad,
        transcendentals=0,
        bytes_accessed=(B_pad * latent * 4            # z
                        + latent * hidden_pad * 4     # w1
                        + 2 * hidden_pad * 4          # b1, w2
                        + B_pad * 4),                 # output
    )

    out_row = pl.pallas_call(
        kernel,
        out_shape=jax.ShapeDtypeStruct((1, B_pad), jnp.float32),
        grid_spec=pltpu.PrefetchScalarGridSpec(
            num_scalar_prefetch=0,
            grid=(num_tiles,),
            in_specs=[
                pl.BlockSpec((tm, latent), lambda i: (i, 0)),            # z batch tile
                pl.BlockSpec((latent, hidden_pad), lambda i: (0, 0)),    # W1 (resident)
                pl.BlockSpec((1, hidden_pad), lambda i: (0, 0)),         # b1
                pl.BlockSpec((1, hidden_pad), lambda i: (0, 0)),         # W2 row
                pl.BlockSpec(memory_space=pltpu.MemorySpace.SMEM),       # b2 scalar
            ],
            out_specs=pl.BlockSpec((1, tm), lambda i: (0, i)),           # lane-dense output
        ),
        compiler_params=pltpu.CompilerParams(
            dimension_semantics=("parallel",)),
        cost_estimate=cost,
    )(z_p, w1_t, b1_p, w2_row, b2_s)

    # Lane-dense (1, B_pad) row -> (B, 1) column, dropping the padded rows.
    return out_row.reshape(B_pad, 1)[:B]


def _torch_linear_init(key, fan_in, fan_out):
    """Deterministic init matching nn.Linear default: U(-1/sqrt(fan_in), 1/sqrt(fan_in))."""
    kw, kb = jax.random.split(key)
    bound = 1.0 / jnp.sqrt(jnp.float32(fan_in))
    w = jax.random.uniform(kw, (fan_out, fan_in), jnp.float32, -bound, bound)
    b = jax.random.uniform(kb, (fan_out,), jnp.float32, -bound, bound)
    return w, b


def reference_forward(z, w1, b1, w2, b2):
    h = jnp.maximum(
        jnp.dot(z, w1.T, precision=jax.lax.Precision.HIGHEST) + b1, 0.0)
    return jnp.dot(h, w2.T, precision=jax.lax.Precision.HIGHEST) + b2


if __name__ == "__main__":
    # TODO(synk): the L1 regularization wrapper only adds a training-time penalty; forward is identity.
    latent_dims = 16
    hidden_dims = 200   # module default (padded to 256 lanes inside the wrapper)
    batch = 1000        # deliberately not a multiple of the tile -> exercises cdiv + padding path

    key = jax.random.PRNGKey(0)
    kz, k1, k2 = jax.random.split(key, 3)

    z = jax.random.normal(kz, (batch, latent_dims), jnp.float32)
    w1, b1 = _torch_linear_init(k1, latent_dims, hidden_dims)   # (hidden, latent), (hidden,)
    w2, b2 = _torch_linear_init(k2, hidden_dims, 1)             # (1, hidden), (1,)

    out = sparse_classification_forward(z, w1, b1, w2, b2, tm=512)
    out = jax.block_until_ready(out)

    ref = reference_forward(z, w1, b1, w2, b2)
    assert out.shape == (batch, 1)
    assert jnp.allclose(out, ref, atol=1e-4, rtol=1e-4), "mismatch vs reference"

    print("KERNEL_OK")
</pallas_src>

<mosaic_0001>
module attributes {stable_mosaic.version = 11 : i64} {
  func.func @_mlp_kernel(%arg0: i32, %arg1: memref<512x16xf32, #tpu.memory_space<vmem>>, %arg2: memref<16x256xf32, #tpu.memory_space<vmem>>, %arg3: memref<1x256xf32, #tpu.memory_space<vmem>>, %arg4: memref<1x256xf32, #tpu.memory_space<vmem>>, %arg5: memref<1xf32, #tpu.memory_space<smem>>, %arg6: memref<1x512xf32, #tpu.memory_space<vmem>>) attributes {dimension_semantics = [#tpu.dimension_semantics<parallel>], iteration_bounds = array<i64: 2>, scalar_prefetch = 0 : i64, scratch_operands = 0 : i64, tpu.core_type = #tpu.core_type<tc>, window_params = [{transform_indices = @transform_0, window_bounds = array<i64: 512, 16>}, {pipeline_mode = #tpu.pipeline_mode<synchronous>, transform_indices = @transform_1, window_bounds = array<i64: 16, 256>}, {pipeline_mode = #tpu.pipeline_mode<synchronous>, transform_indices = @transform_2, window_bounds = array<i64: 1, 256>}, {pipeline_mode = #tpu.pipeline_mode<synchronous>, transform_indices = @transform_3, window_bounds = array<i64: 1, 256>}, {transform_indices = @transform_4, window_bounds = array<i64: 1>}, {transform_indices = @transform_5, window_bounds = array<i64: 1, 512>}]} {
    %c0 = arith.constant 0 : index
    %c0_0 = arith.constant 0 : index
    %0 = vector.load %arg2[%c0, %c0_0] : memref<16x256xf32, #tpu.memory_space<vmem>>, vector<16x256xf32>
    %c0_1 = arith.constant 0 : index
    %c0_2 = arith.constant 0 : index
    %1 = vector.load %arg3[%c0_1, %c0_2] : memref<1x256xf32, #tpu.memory_space<vmem>>, vector<1x256xf32>
    %c0_3 = arith.constant 0 : index
    %c0_4 = arith.constant 0 : index
    %2 = vector.load %arg4[%c0_3, %c0_4] : memref<1x256xf32, #tpu.memory_space<vmem>>, vector<1x256xf32>
    %c0_5 = arith.constant 0 : index
    %3 = memref.load %arg5[%c0_5] : memref<1xf32, #tpu.memory_space<smem>>
    %c0_i32 = arith.constant 0 : i32
    %c128_i32 = arith.constant 128 : i32
    %4 = arith.muli %c0_i32, %c128_i32 : i32
    %5 = tpu.assume_multiple %4, 128 : i32
    %6 = arith.index_cast %5 : i32 to index
    %c0_6 = arith.constant 0 : index
    %7 = vector.load %arg1[%6, %c0_6] : memref<512x16xf32, #tpu.memory_space<vmem>>, vector<128x16xf32>
    %cst = arith.constant dense<0.000000e+00> : vector<128x256xf32>
    %8 = tpu.matmul %7, %0, %cst {dimension_numbers = #tpu.dot_dimension_numbers<[1], [0], [0], [1], [0, 0, 1, 1], [], []>} : vector<128x16xf32>, vector<16x256xf32>, vector<128x256xf32> -> vector<128x256xf32>
    %9 = vector.broadcast %1 : vector<1x256xf32> to vector<128x256xf32>
    %10 = arith.addf %8, %9 : vector<128x256xf32>
    %cst_7 = arith.constant 0.000000e+00 : f32
    %11 = vector.broadcast %cst_7 : f32 to vector<128x256xf32>
    %12 = arith.maximumf %10, %11 : vector<128x256xf32>
    %13 = vector.broadcast %2 : vector<1x256xf32> to vector<128x256xf32>
    %14 = arith.mulf %12, %13 : vector<128x256xf32>
    %cst_8 = arith.constant dense<0.000000e+00> : vector<128xf32>
    %15 = vector.multi_reduction <add>, %14, %cst_8 [1] : vector<128x256xf32> to vector<128xf32>
    %16 = vector.broadcast %3 : f32 to vector<128xf32>
    %17 = arith.addf %15, %16 : vector<128xf32>
    %18 = vector.shape_cast %17 : vector<128xf32> to vector<1x128xf32>
    %c0_9 = arith.constant 0 : index
    %19 = arith.index_cast %5 : i32 to index
    %20 = vector.load %arg6[%c0_9, %19] : memref<1x512xf32, #tpu.memory_space<vmem>>, vector<1x128xf32>
    tpu.vector_store %arg6[%c0_9, %19], %18 {strides = array<i32>} : memref<1x512xf32, #tpu.memory_space<vmem>>, vector<1x128xf32>,
    %c1_i32 = arith.constant 1 : i32
    %c128_i32_10 = arith.constant 128 : i32
    %21 = arith.muli %c1_i32, %c128_i32_10 : i32
    %22 = tpu.assume_multiple %21, 128 : i32
    %23 = arith.index_cast %22 : i32 to index
    %c0_11 = arith.constant 0 : index
    %24 = vector.load %arg1[%23, %c0_11] : memref<512x16xf32, #tpu.memory_space<vmem>>, vector<128x16xf32>
    %cst_12 = arith.constant dense<0.000000e+00> : vector<128x256xf32>
    %25 = tpu.matmul %24, %0, %cst_12 {dimension_numbers = #tpu.dot_dimension_numbers<[1], [0], [0], [1], [0, 0, 1, 1], [], []>} : vector<128x16xf32>, vector<16x256xf32>, vector<128x256xf32> -> vector<128x256xf32>
    %26 = vector.broadcast %1 : vector<1x256xf32> to vector<128x256xf32>
    %27 = arith.addf %25, %26 : vector<128x256xf32>
    %cst_13 = arith.constant 0.000000e+00 : f32
    %28 = vector.broadcast %cst_13 : f32 to vector<128x256xf32>
    %29 = arith.maximumf %27, %28 : vector<128x256xf32>
    %30 = vector.broadcast %2 : vector<1x256xf32> to vector<128x256xf32>
    %31 = arith.mulf %29, %30 : vector<128x256xf32>
    %cst_14 = arith.constant dense<0.000000e+00> : vector<128xf32>
    %32 = vector.multi_reduction <add>, %31, %cst_14 [1] : vector<128x256xf32> to vector<128xf32>
    %33 = vector.broadcast %3 : f32 to vector<128xf32>
    %34 = arith.addf %32, %33 : vector<128xf32>
    %35 = vector.shape_cast %34 : vector<128xf32> to vector<1x128xf32>
    %c0_15 = arith.constant 0 : index
    %36 = arith.index_cast %22 : i32 to index
    %37 = vector.load %arg6[%c0_15, %36] : memref<1x512xf32, #tpu.memory_space<vmem>>, vector<1x128xf32>
    tpu.vector_store %arg6[%c0_15, %36], %35 {strides = array<i32>} : memref<1x512xf32, #tpu.memory_space<vmem>>, vector<1x128xf32>,
    %c2_i32 = arith.constant 2 : i32
    %c128_i32_16 = arith.constant 128 : i32
    %38 = arith.muli %c2_i32, %c128_i32_16 : i32
    %39 = tpu.assume_multiple %38, 128 : i32
    %40 = arith.index_cast %39 : i32 to index
    %c0_17 = arith.constant 0 : index
    %41 = vector.load %arg1[%40, %c0_17] : memref<512x16xf32, #tpu.memory_space<vmem>>, vector<128x16xf32>
    %cst_18 = arith.constant dense<0.000000e+00> : vector<128x256xf32>
    %42 = tpu.matmul %41, %0, %cst_18 {dimension_numbers = #tpu.dot_dimension_numbers<[1], [0], [0], [1], [0, 0, 1, 1], [], []>} : vector<128x16xf32>, vector<16x256xf32>, vector<128x256xf32> -> vector<128x256xf32>
    %43 = vector.broadcast %1 : vector<1x256xf32> to vector<128x256xf32>
    %44 = arith.addf %42, %43 : vector<128x256xf32>
    %cst_19 = arith.constant 0.000000e+00 : f32
    %45 = vector.broadcast %cst_19 : f32 to vector<128x256xf32>
    %46 = arith.maximumf %44, %45 : vector<128x256xf32>
    %47 = vector.broadcast %2 : vector<1x256xf32> to vector<128x256xf32>
    %48 = arith.mulf %46, %47 : vector<128x256xf32>
    %cst_20 = arith.constant dense<0.000000e+00> : vector<128xf32>
    %49 = vector.multi_reduction <add>, %48, %cst_20 [1] : vector<128x256xf32> to vector<128xf32>
    %50 = vector.broadcast %3 : f32 to vector<128xf32>
    %51 = arith.addf %49, %50 : vector<128xf32>
    %52 = vector.shape_cast %51 : vector<128xf32> to vector<1x128xf32>
    %c0_21 = arith.constant 0 : index
    %53 = arith.index_cast %39 : i32 to index
    %54 = vector.load %arg6[%c0_21, %53] : memref<1x512xf32, #tpu.memory_space<vmem>>, vector<1x128xf32>
    tpu.vector_store %arg6[%c0_21, %53], %52 {strides = array<i32>} : memref<1x512xf32, #tpu.memory_space<vmem>>, vector<1x128xf32>,
    %c3_i32 = arith.constant 3 : i32
    %c128_i32_22 = arith.constant 128 : i32
    %55 = arith.muli %c3_i32, %c128_i32_22 : i32
    %56 = tpu.assume_multiple %55, 128 : i32
    %57 = arith.index_cast %56 : i32 to index
    %c0_23 = arith.constant 0 : index
    %58 = vector.load %arg1[%57, %c0_23] : memref<512x16xf32, #tpu.memory_space<vmem>>, vector<128x16xf32>
    %cst_24 = arith.constant dense<0.000000e+00> : vector<128x256xf32>
    %59 = tpu.matmul %58, %0, %cst_24 {dimension_numbers = #tpu.dot_dimension_numbers<[1], [0], [0], [1], [0, 0, 1, 1], [], []>} : vector<128x16xf32>, vector<16x256xf32>, vector<128x256xf32> -> vector<128x256xf32>
    %60 = vector.broadcast %1 : vector<1x256xf32> to vector<128x256xf32>
    %61 = arith.addf %59, %60 : vector<128x256xf32>
    %cst_25 = arith.constant 0.000000e+00 : f32
    %62 = vector.broadcast %cst_25 : f32 to vector<128x256xf32>
    %63 = arith.maximumf %61, %62 : vector<128x256xf32>
    %64 = vector.broadcast %2 : vector<1x256xf32> to vector<128x256xf32>
    %65 = arith.mulf %63, %64 : vector<128x256xf32>
    %cst_26 = arith.constant dense<0.000000e+00> : vector<128xf32>
    %66 = vector.multi_reduction <add>, %65, %cst_26 [1] : vector<128x256xf32> to vector<128xf32>
    %67 = vector.broadcast %3 : f32 to vector<128xf32>
    %68 = arith.addf %66, %67 : vector<128xf32>
    %69 = vector.shape_cast %68 : vector<128xf32> to vector<1x128xf32>
    %c0_27 = arith.constant 0 : index
    %70 = arith.index_cast %56 : i32 to index
    %71 = vector.load %arg6[%c0_27, %70] : memref<1x512xf32, #tpu.memory_space<vmem>>, vector<1x128xf32>
    tpu.vector_store %arg6[%c0_27, %70], %69 {strides = array<i32>} : memref<1x512xf32, #tpu.memory_space<vmem>>, vector<1x128xf32>,
    %c4_i32 = arith.constant 4 : i32
    return
  }
  func.func @transform_0(%arg0: i32) -> (i32, i32) {
    %c0_i32 = arith.constant 0 : i32
    %c0_i32_0 = arith.constant 0 : i32
    return %arg0, %c0_i32 : i32, i32
  }
  func.func @transform_1(%arg0: i32) -> (i32, i32) {
    %c0_i32 = arith.constant 0 : i32
    %c0_i32_0 = arith.constant 0 : i32
    %c0_i32_1 = arith.constant 0 : i32
    return %c0_i32, %c0_i32_0 : i32, i32
  }
  func.func @transform_2(%arg0: i32) -> (i32, i32) {
    %c0_i32 = arith.constant 0 : i32
    %c0_i32_0 = arith.constant 0 : i32
    %c0_i32_1 = arith.constant 0 : i32
    return %c0_i32, %c0_i32_0 : i32, i32
  }
  func.func @transform_3(%arg0: i32) -> (i32, i32) {
    %c0_i32 = arith.constant 0 : i32
    %c0_i32_0 = arith.constant 0 : i32
    %c0_i32_1 = arith.constant 0 : i32
    return %c0_i32, %c0_i32_0 : i32, i32
  }
  func.func @transform_4(%arg0: i32) -> i32 {
    %c0_i32 = arith.constant 0 : i32
    %c0_i32_0 = arith.constant 0 : i32
    return %c0_i32 : i32
  }
  func.func @transform_5(%arg0: i32) -> (i32, i32) {
    %c0_i32 = arith.constant 0 : i32
    %c0_i32_0 = arith.constant 0 : i32
    return %c0_i32, %arg0 : i32, i32
  }
}

</mosaic_0001>

<bundles_post_ra>
// kernel: tpu_custom_call.1
= control target key start
LH: loop header
LB: loop body
LE: loop exit
PB: predicated region body
PF: predicated region fallthrough
CT: control target
= control target key end

     0   :  { %s4647_s0 = inlined_call_operand.vmem [shape: f32[1024,16], index: 0, kind: input, shape index: {}]   ;;  %s4648_s1 = inlined_call_operand.vmem [shape: f32[16,256], index: 1, kind: input, shape index: {}]   ;;  %s4649_s2 = inlined_call_operand.vmem [shape: f32[1,256], index: 2, kind: input, shape index: {}]   ;;  %s4650_s3 = inlined_call_operand.vmem [shape: f32[1,256], index: 3, kind: input, shape index: {}]   ;;  %s4651_s4 = inlined_call_operand.<no memory space> [shape: f32[1], index: 4, kind: input, shape index: {}]   ;;  %s4652_s5 = inlined_call_operand.hbm [shape: f32[1,1024], index: 5, kind: output, shape index: {}]  }
   0x1   :  { %10 = sst [smem:[#allocation2]] %s4651_s4 }
   0x2   :  { %11 = vsyncpa [#allocation4], 0 }
   0x3   :  { %13 = vsyncpa [#allocation4 + $0x1], 0  ;;  %s3486_s20 = smov 0   ;;  %s3488_s21 = smov 0  }
   0x4   :  { %s3490_s22 = smov 0   ;;  %s3492_s23 = smov 0  }
   0x5 LB: > { %s3507_s4 = sadd.s32 4294967295, %s3450_s23   ;;  %s3155_s24 = sadd.s32 4294967294, %s3450_s23   ;;  %s3450_s23 = sphi %s3492_s23, %s4660_s23   ;;  %s3446_s22 = sphi %s3490_s22, %s4659_s22   ;;  %s3442_s21 = sphi %s3488_s21, %s4658_s21   ;;  %s3438_s20 = sphi %s3486_s20, %s4657_s20  }
   0x6   : > { %s3511_s25 = sadd.s32 1, %s3450_s23   ;;  %s136_s26 = sadd.s32 1, %s3446_s22 }
   0x7   : > { %s133_s27 = ssub.s32 %s3450_s23, %s3511_s25  ;;  %p146_p0 = scmp.ne.s32.totalorder %s3446_s22, %s3442_s21 }
   0x8   : > { %p134_p1 = scmp.eq.s32.totalorder %s133_s27, 0  ;;  %p147_p2 = scmp.eq.s32.totalorder %s3507_s4, 1 }
   0x9   : > { %p152_p3 = scmp.ne.s32.totalorder %s3442_s21, %s3438_s20  ;;  %p153_p4 = scmp.eq.s32.totalorder %s3155_s24, 1 }
   0xa   : > { %s3522_s28 = scalar_select %p134_p1, %s3446_s22, %s136_s26  }
   0xb   : > { %p3524_p5 = por %p147_p2, %p146_p0  ;;  %p3528_p6 = por %p153_p4, %p152_p3 }
   0xc   : > { %p3158_p7 = scmp.ge.s32.totalorder %s3450_s23, 1  ;;  %p192_p8 = scmp.lt.s32.totalorder %s3450_s23, 3 }
   0xe   : > { %p193_p9 = pnand %p3158_p7, %p192_p8 }
   0xf   : > { %s3160_s12 = sshll.u32 (!%p193_p9), %s3507_s4, 6  ;;  %s233_s6 = sld [smem:[#allocation2]] (!%p193_p9) }
  0x10   : > { %196 = sbr.rel (%p193_p9) target bundleno = 1364 (0x554), region = 40  ;;  %p221_p10 = scmp.lt.s32.totalorder (!%p193_p9), %s3160_s12, 127 }
  0x11   : > { %s217_s7 = sand.u32 (!%p193_p9), 1, %s3442_s21   ;;  %s3342_s10 = sshll.u32 (!%p193_p9), %s3507_s4, 2 }
  0x12   : > { %s3159_s8 = sshll.u32 (!%p193_p9), %s217_s7, 2  ;;  %s3091_s13 = scalar_lea.hbm (!%p193_p9), %s4652_s5, %s3342_s10 }
  0x13   : > { %s4455_s9 = scalar_lea.vmem (!%p193_p9), [#allocation3], %s3159_s8  ;;  %s3095_s14 = sshll.u32 (!%p193_p9), %s3091_s13, 4  ;;  %s3096_s14 = int_to_ptr.hbm [resolvable:$true] %s3095_s14 }
  0x14   : > { %s3093_s4 = sshll.u32 (!%p193_p9), %s4455_s9, 4  ;;  %s3402_s16 = sshra.s32 (!%p193_p9), %s3096_s14, 4  ;;  %s3094_s4 = int_to_ptr.vmem [resolvable:$true] %s3093_s4  ;;  %s3403_s16 = int_to_ptr.hbm [resolvable:$true] %s3402_s16 }
  0x15   : > { %v229_v0 = vld [vmem:[%s4648_s1 + $0x10] sm:$0xff]  ;;  %v230_v1 = vld [vmem:[%s4648_s1 + $0x18] sm:$0xff]  ;;  %v227_v2 = vld [vmem:[%s4648_s1] sm:$0xff]  ;;  %s4662_s12 = smov (!%p221_p10, %s3160_s12), 127  ;;  %vm255_vm0 = vcmask 130048   ;;  %vm916_vm1 = vcmask 130112   ;;  %p3409_p0 = scmp.lt.s32.totalorder %s3403_s16, %s4652_s5 }
  0x16   : > { %318 = vmatpush.msra.mxu0 %v229_v0  ;;  %383 = vmatpush.msra.mxu1 %v230_v1  ;;  %v228_v3 = vld [vmem:[%s4648_s1 + $0x8] sm:$0xff]  ;;  %s3161_s15 = sshll.u32 %s4662_s12, 3  ;;  %v231_v36 = vld [vmem:[%s4649_s2] sm:$0x3]  ;;  %vm920_vm2 = vcmask 195712   ;;  %vm924_vm3 = vcmask 261312  }
  0x17   : > { %1059 = vmatpush.msra.mxu2 %v229_v0  ;;  %1124 = vmatpush.msra.mxu3 %v230_v1  ;;  %s3550_s18 = scalar_lea.vmem %s4647_s0, %s3161_s15  ;;  %v3651_v37 = vperm.slane %v231_v36, 0  ;;  %v3653_v38 = vperm.slane %v231_v36, 1  ;;  %v232_v39 = vld [vmem:[%s4650_s3] sm:$0x3]  ;;  %vm928_vm4 = vcmask 326912   ;;  %vm932_vm5 = vcmask 392512  }
  0x18   : > { %319 = vmatpush.msra.mxu0 %v227_v2  ;;  %384 = vmatpush.msra.mxu1 %v228_v3  ;;  %v234_v4 = vld [vmem:[%s3550_s18] sm:$0xff]  ;;  %v235_v6 = vld [vmem:[%s3550_s18 + $0x8] sm:$0xff]  ;;  %v236_v8 = vld [vmem:[%s3550_s18 + $0x10] sm:$0xff]  ;;  %v3661_v45 = vperm.slane %v232_v39, 0  ;;  %v3663_v46 = vperm.slane %v232_v39, 1  ;;  %vm936_vm6 = vcmask 458112  }
  0x19   : > { %1060 = vmatpush.msra.mxu2 %v227_v2  ;;  %1125 = vmatpush.msra.mxu3 %v228_v3  ;;  %v3194_v5 = vld [vmem:[%s3550_s18 + $0x80] sm:$0xff]  ;;  %v3195_v7 = vld [vmem:[%s3550_s18 + $0x88] sm:$0xff]  ;;  %v3196_v9 = vld [vmem:[%s3550_s18 + $0x90] sm:$0xff]  ;;  %vm940_vm7 = vcmask 523712   ;;  %vm944_vm8 = vcmask 589312   ;;  %vm948_vm9 = vcmask 654912  }
  0x1a   : > { %1759 = vmatpush.msrb.mxu0 %v229_v0  ;;  %1824 = vmatpush.msrb.mxu1 %v230_v1  ;;  %v237_v10 = vld [vmem:[%s3550_s18 + $0x18] sm:$0xff]  ;;  %v238_v12 = vld [vmem:[%s3550_s18 + $0x20] sm:$0xff]  ;;  %v239_v14 = vld [vmem:[%s3550_s18 + $0x28] sm:$0xff]  ;;  %vm952_vm10 = vcmask 720512   ;;  %vm956_vm11 = vcmask 786112   ;;  %vm960_vm12 = vcmask 851712  }
  0x1b   : > { %2459 = vmatpush.msrb.mxu2 %v229_v0  ;;  %2524 = vmatpush.msrb.mxu3 %v230_v1  ;;  %v3197_v11 = vld [vmem:[%s3550_s18 + $0x98] sm:$0xff]  ;;  %v3198_v13 = vld [vmem:[%s3550_s18 + $0xa0] sm:$0xff]  ;;  %v3199_v15 = vld [vmem:[%s3550_s18 + $0xa8] sm:$0xff]  ;;  %vm964_vm13 = vcmask 917312   ;;  %vm968_vm14 = vcmask 982912   ;;  %vm972_vm15 = vcmask 1048512  }
  0x1c   : > { %1760 = vmatpush.msrb.mxu0 %v227_v2  ;;  %1825 = vmatpush.msrb.mxu1 %v228_v3  ;;  %v240_v16 = vld [vmem:[%s3550_s18 + $0x30] sm:$0xff]  ;;  %v241_v18 = vld [vmem:[%s3550_s18 + $0x38] sm:$0xff]  ;;  %v242_v20 = vld [vmem:[%s3550_s18 + $0x40] sm:$0xff]  ;;  %s3081_s15 = scalar_lea.sflag [#allocation4], %s217_s7  ;;  %s3404_s17 = scalar_lea.hbm %s3403_s16, 4 }
  0x1d   : > { %3162 = vmatmul.msk.f32.vlgmr.msra.gmra.mxu0 %vm255_vm0, %v234_v4  ;;  %3178 = vmatmul.msk.f32.vlgmr.msra.gmra.mxu1 %vm255_vm0, %v234_v4  ;;  %v3200_v17 = vld [vmem:[%s3550_s18 + $0xb0] sm:$0xff]  ;;  %v3201_v19 = vld [vmem:[%s3550_s18 + $0xb8] sm:$0xff]  ;;  %v3202_v21 = vld [vmem:[%s3550_s18 + $0xc0] sm:$0xff]  ;;  %p3405_p11 = scmp.ne.s32.totalorder %s3403_s16, %s3404_s17  ;;  %s3408_s24 = scalar_lea.hbm %s4652_s5, 8 }
  0x1e   : > { %3210 = vmatmul.msk.f32.vlgmr.msra.gmra.mxu2 %vm255_vm0, %v3194_v5  ;;  %3226 = vmatmul.msk.f32.vlgmr.msra.gmra.mxu3 %vm255_vm0, %v3194_v5  ;;  %v243_v22 = vld [vmem:[%s3550_s18 + $0x48] sm:$0xff]  ;;  %v244_v24 = vld [vmem:[%s3550_s18 + $0x50] sm:$0xff]  ;;  %v245_v26 = vld [vmem:[%s3550_s18 + $0x58] sm:$0xff]  ;;  %p3410_p1 = scmp.lt.s32.totalorder %s3408_s24, %s3404_s17 }
  0x1f   : > { %2460 = vmatpush.msrb.mxu2 %v227_v2  ;;  %2525 = vmatpush.msrb.mxu3 %v228_v3  ;;  %v3203_v23 = vld [vmem:[%s3550_s18 + $0xc8] sm:$0xff]  ;;  %v3204_v25 = vld [vmem:[%s3550_s18 + $0xd0] sm:$0xff]  ;;  %v3205_v27 = vld [vmem:[%s3550_s18 + $0xd8] sm:$0xff]  ;;  %p3406_p12 = pnand %p3405_p11, %p3524_p5 }
  0x20   : > { %v246_v28 = vld [vmem:[%s3550_s18 + $0x60] sm:$0xff]  ;;  %v247_v30 = vld [vmem:[%s3550_s18 + $0x68] sm:$0xff]  ;;  %v248_v32 = vld [vmem:[%s3550_s18 + $0x70] sm:$0xff]  ;;  %p3411_p2 = por %p3410_p1, %p3409_p0 }
  0x21   : > { %v3206_v29 = vld [vmem:[%s3550_s18 + $0xe0] sm:$0xff]  ;;  %v3207_v31 = vld [vmem:[%s3550_s18 + $0xe8] sm:$0xff]  ;;  %v3208_v33 = vld [vmem:[%s3550_s18 + $0xf0] sm:$0xff]  ;;  %p3407_p13 = pneg %p3406_p12 }
  0x22   : > { %v249_v34 = vld [vmem:[%s3550_s18 + $0x78] sm:$0xff]  ;;  %v3243_v42 = vld [vmem:[%s3550_s18 + $0x100] sm:$0xff]  ;;  %v3244_v57 = vld [vmem:[%s3550_s18 + $0x108] sm:$0xff] }
  0x23   : > { %v3209_v35 = vld [vmem:[%s3550_s18 + $0xf8] sm:$0xff]  ;;  %v3292_v47 = vld [vmem:[%s3550_s18 + $0x180] sm:$0xff]  ;;  %v3293_v62 = vld [vmem:[%s3550_s18 + $0x188] sm:$0xff]  ;;  %p3412_p3 = pnand %p3411_p2, %p3407_p13 }
  0x24   : > { %v3295_v36 = vld [vmem:[%s3550_s18 + $0x198] sm:$0xff] }
  0x25   : > { %3163 = vmatmul.msk.f32.gmra.mxu0 %vm255_vm0, %v235_v6  ;;  %3179 = vmatmul.msk.f32.gmra.mxu1 %vm255_vm0, %v235_v6 }
  0x26   : > { %3211 = vmatmul.msk.f32.gmra.mxu2 %vm255_vm0, %v3195_v7  ;;  %3227 = vmatmul.msk.f32.gmra.mxu3 %vm255_vm0, %v3195_v7 }
  0x2d   : > { %3164 = vmatmul.msk.f32.gmra.mxu0 %vm255_vm0, %v236_v8  ;;  %3180 = vmatmul.msk.f32.gmra.mxu1 %vm255_vm0, %v236_v8 }
  0x2e   : > { %3212 = vmatmul.msk.f32.gmra.mxu2 %vm255_vm0, %v3196_v9  ;;  %3228 = vmatmul.msk.f32.gmra.mxu3 %vm255_vm0, %v3196_v9 }
  0x35   : > { %3165 = vmatmul.msk.f32.gmra.mxu0 %vm255_vm0, %v237_v10  ;;  %3181 = vmatmul.msk.f32.gmra.mxu1 %vm255_vm0, %v237_v10 }
  0x36   : > { %3213 = vmatmul.msk.f32.gmra.mxu2 %vm255_vm0, %v3197_v11  ;;  %3229 = vmatmul.msk.f32.gmra.mxu3 %vm255_vm0, %v3197_v11 }
  0x3d   : > { %3166 = vmatmul.msk.f32.gmra.mxu0 %vm255_vm0, %v238_v12  ;;  %3182 = vmatmul.msk.f32.gmra.mxu1 %vm255_vm0, %v238_v12 }
  0x3e   : > { %3214 = vmatmul.msk.f32.gmra.mxu2 %vm255_vm0, %v3198_v13  ;;  %3230 = vmatmul.msk.f32.gmra.mxu3 %vm255_vm0, %v3198_v13  ;;  %v3245_v13 = vld [vmem:[%s3550_s18 + $0x110] sm:$0xff] }
  0x45   : > { %3167 = vmatmul.msk.f32.gmra.mxu0 %vm255_vm0, %v239_v14  ;;  %3183 = vmatmul.msk.f32.gmra.mxu1 %vm255_vm0, %v239_v14 }
  0x46   : > { %3215 = vmatmul.msk.f32.gmra.mxu2 %vm255_vm0, %v3199_v15  ;;  %3231 = vmatmul.msk.f32.gmra.mxu3 %vm255_vm0, %v3199_v15 }
  0x4d   : > { %3168 = vmatmul.msk.f32.gmra.mxu0 %vm255_vm0, %v240_v16  ;;  %3184 = vmatmul.msk.f32.gmra.mxu1 %vm255_vm0, %v240_v16 }
  0x4e   : > { %3216 = vmatmul.msk.f32.gmra.mxu2 %vm255_vm0, %v3200_v17  ;;  %3232 = vmatmul.msk.f32.gmra.mxu3 %vm255_vm0, %v3200_v17 }
  0x55   : > { %3169 = vmatmul.msk.f32.gmra.mxu0 %vm255_vm0, %v241_v18  ;;  %3185 = vmatmul.msk.f32.gmra.mxu1 %vm255_vm0, %v241_v18  ;;  %v3294_v18 = vld [vmem:[%s3550_s18 + $0x190] sm:$0xff] }
  0x56   : > { %3217 = vmatmul.msk.f32.gmra.mxu2 %vm255_vm0, %v3201_v19  ;;  %3233 = vmatmul.msk.f32.gmra.mxu3 %vm255_vm0, %v3201_v19 }
  0x5d   : > { %3170 = vmatmul.msk.f32.gmra.mxu0 %vm255_vm0, %v242_v20  ;;  %3186 = vmatmul.msk.f32.gmra.mxu1 %vm255_vm0, %v242_v20 }
  0x5e   : > { %3218 = vmatmul.msk.f32.gmra.mxu2 %vm255_vm0, %v3202_v21  ;;  %3234 = vmatmul.msk.f32.gmra.mxu3 %vm255_vm0, %v3202_v21 }
  0x65   : > { %3171 = vmatmul.msk.f32.gmra.mxu0 %vm255_vm0, %v243_v22  ;;  %3187 = vmatmul.msk.f32.gmra.mxu1 %vm255_vm0, %v243_v22 }
  0x66   : > { %3219 = vmatmul.msk.f32.gmra.mxu2 %vm255_vm0, %v3203_v23  ;;  %3235 = vmatmul.msk.f32.gmra.mxu3 %vm255_vm0, %v3203_v23 }
  0x6d   : > { %3172 = vmatmul.msk.f32.gmra.mxu0 %vm255_vm0, %v244_v24  ;;  %3188 = vmatmul.msk.f32.gmra.mxu1 %vm255_vm0, %v244_v24 }
  0x6e   : > { %3220 = vmatmul.msk.f32.gmra.mxu2 %vm255_vm0, %v3204_v25  ;;  %3236 = vmatmul.msk.f32.gmra.mxu3 %vm255_vm0, %v3204_v25 }
  0x75   : > { %3173 = vmatmul.msk.f32.gmra.mxu0 %vm255_vm0, %v245_v26  ;;  %3189 = vmatmul.msk.f32.gmra.mxu1 %vm255_vm0, %v245_v26 }
  0x76   : > { %3221 = vmatmul.msk.f32.gmra.mxu2 %vm255_vm0, %v3205_v27  ;;  %3237 = vmatmul.msk.f32.gmra.mxu3 %vm255_vm0, %v3205_v27 }
  0x7d   : > { %3174 = vmatmul.msk.f32.gmra.mxu0 %vm255_vm0, %v246_v28  ;;  %3190 = vmatmul.msk.f32.gmra.mxu1 %vm255_vm0, %v246_v28 }
  0x7e   : > { %3222 = vmatmul.msk.f32.gmra.mxu2 %vm255_vm0, %v3206_v29  ;;  %3238 = vmatmul.msk.f32.gmra.mxu3 %vm255_vm0, %v3206_v29 }
  0x85   : > { %3175 = vmatmul.msk.f32.gmra.mxu0 %vm255_vm0, %v247_v30  ;;  %3191 = vmatmul.msk.f32.gmra.mxu1 %vm255_vm0, %v247_v30 }
  0x86   : > { %3223 = vmatmul.msk.f32.gmra.mxu2 %vm255_vm0, %v3207_v31  ;;  %3239 = vmatmul.msk.f32.gmra.mxu3 %vm255_vm0, %v3207_v31 }
  0x8d   : > { %3176 = vmatmul.msk.f32.gmra.mxu0 %vm255_vm0, %v248_v32  ;;  %3192 = vmatmul.msk.f32.gmra.mxu1 %vm255_vm0, %v248_v32 }
  0x8e   : > { %3224 = vmatmul.msk.f32.gmra.mxu2 %vm255_vm0, %v3208_v33  ;;  %3240 = vmatmul.msk.f32.gmra.mxu3 %vm255_vm0, %v3208_v33  ;;  %v3246_v33 = vld [vmem:[%s3550_s18 + $0x118] sm:$0xff] }
  0x95   : > { %3177 = vmatmul.msk.f32.gmra.mxu0 %vm255_vm0, %v249_v34  ;;  %3193 = vmatmul.msk.f32.gmra.mxu1 %vm255_vm0, %v249_v34 }
  0x96   : > { %3225 = vmatmul.msk.f32.gmra.mxu2 %vm255_vm0, %v3209_v35  ;;  %3241 = vmatmul.msk.f32.gmra.mxu3 %vm255_vm0, %v3209_v35 }
  0x9a   : > { %v321_v40 = vpop.f32.mrf.mxu0  ;;  %v386_v41 = vpop.f32.mrf.mxu1 }
  0x9b   : > { %v322_v43 = vadd.f32 %v321_v40, %v3651_v37  ;;  %v387_v44 = vadd.f32 %v386_v41, %v3653_v38 }
  0x9d   : > { %v434_v48 = vmax.f32 %v322_v43, 0.0  ;;  %v435_v49 = vmax.f32 %v387_v44, 0.0  ;;  %3259 = vmatmul.msk.f32.vlgmr.msrb.gmra.mxu0 %vm255_vm0, %v3243_v42  ;;  %3275 = vmatmul.msk.f32.vlgmr.msrb.gmra.mxu1 %vm255_vm0, %v3243_v42 }
  0x9e   : > { %3308 = vmatmul.msk.f32.vlgmr.msrb.gmra.mxu2 %vm255_vm0, %v3292_v47  ;;  %3324 = vmatmul.msk.f32.vlgmr.msrb.gmra.mxu3 %vm255_vm0, %v3292_v47 }
  0x9f   : > { %v471_v50 = vmul.f32 %v3661_v45, %v434_v48  ;;  %v472_v51 = vmul.f32 %v3663_v46, %v435_v49 }
  0xa1   : > { %v503_v52 = vadd.f32 %v472_v51, %v471_v50  ;;  %v1062_v53 = vpop.f32.mrf.mxu2  ;;  %v1127_v54 = vpop.f32.mrf.mxu3  ;;  %v3247_v50 = vld [vmem:[%s3550_s18 + $0x120] sm:$0xff] }
  0xa2   : > { %v324_v55 = vpop.f32.mrf.mxu0  ;;  %v389_v56 = vpop.f32.mrf.mxu1  ;;  %v1063_v58 = vadd.f32 %v1062_v53, %v3651_v37  ;;  %v1128_v59 = vadd.f32 %v1127_v54, %v3653_v38 }
  0xa3   : > { %v325_v60 = vadd.f32 %v324_v55, %v3651_v37  ;;  %v390_v61 = vadd.f32 %v389_v56, %v3653_v38  ;;  %504 = vadd.xlane.f32.xlu0 %v503_v52  ;;  %v3296_v55 = vld [vmem:[%s3550_s18 + $0x1a0] sm:$0xff] }
  0xa4   : > { %v1175_v63 = vmax.f32 %v1063_v58, 0.0  ;;  %v1176_v0 = vmax.f32 %v1128_v59, 0.0 }
  0xa5   : > { %v436_v1 = vmax.f32 %v325_v60, 0.0  ;;  %v437_v2 = vmax.f32 %v390_v61, 0.0  ;;  %3260 = vmatmul.msk.f32.gmra.mxu0 %vm255_vm0, %v3244_v57  ;;  %3276 = vmatmul.msk.f32.gmra.mxu1 %vm255_vm0, %v3244_v57 }
  0xa6   : > { %3309 = vmatmul.msk.f32.gmra.mxu2 %vm255_vm0, %v3293_v62  ;;  %3325 = vmatmul.msk.f32.gmra.mxu3 %vm255_vm0, %v3293_v62  ;;  %v1207_v3 = vmul.f32 %v1175_v63, %v3661_v45  ;;  %v1208_v4 = vmul.f32 %v1176_v0, %v3663_v46 }
  0xa7   : > { %v473_v5 = vmul.f32 %v3661_v45, %v436_v1  ;;  %v474_v6 = vmul.f32 %v3663_v46, %v437_v2 }
  0xa8   : > { %v3686_v7 = vadd.f32 %v1208_v4, %v1207_v3 }
  0xa9   : > { %v506_v8 = vadd.f32 %v474_v6, %v473_v5  ;;  %v1065_v9 = vpop.f32.mrf.mxu2  ;;  %v1130_v10 = vpop.f32.mrf.mxu3  ;;  %v3248_v6 = vld [vmem:[%s3550_s18 + $0x128] sm:$0xff] }
  0xaa   : > { %v327_v11 = vpop.f32.mrf.mxu0  ;;  %v392_v12 = vpop.f32.mrf.mxu1  ;;  %v1066_v14 = vadd.f32 %v1065_v9, %v3651_v37  ;;  %v1131_v15 = vadd.f32 %v1130_v10, %v3653_v38  ;;  %v3297_v10 = vld [vmem:[%s3550_s18 + $0x1a8] sm:$0xff] }
  0xab   : > { %v328_v16 = vadd.f32 %v327_v11, %v3651_v37  ;;  %v393_v17 = vadd.f32 %v392_v12, %v3653_v38  ;;  %507 = vadd.xlane.f32.xlu0 %v506_v8 }
  0xac   : > { %v1177_v19 = vmax.f32 %v1066_v14, 0.0  ;;  %v1178_v20 = vmax.f32 %v1131_v15, 0.0 }
  0xad   : > { %v438_v21 = vmax.f32 %v328_v16, 0.0  ;;  %v439_v22 = vmax.f32 %v393_v17, 0.0  ;;  %3261 = vmatmul.msk.f32.gmra.mxu0 %vm255_vm0, %v3245_v13  ;;  %3277 = vmatmul.msk.f32.gmra.mxu1 %vm255_vm0, %v3245_v13 }
  0xae   : > { %3310 = vmatmul.msk.f32.gmra.mxu2 %vm255_vm0, %v3294_v18  ;;  %3326 = vmatmul.msk.f32.gmra.mxu3 %vm255_vm0, %v3294_v18  ;;  %v1209_v23 = vmul.f32 %v1177_v19, %v3661_v45  ;;  %v1210_v24 = vmul.f32 %v1178_v20, %v3663_v46  ;;  %v3249_v20 = vld [vmem:[%s3550_s18 + $0x130] sm:$0xff] }
  0xaf   : > { %v475_v25 = vmul.f32 %v3661_v45, %v438_v21  ;;  %v476_v26 = vmul.f32 %v3663_v46, %v439_v22 }
  0xb0   : > { %v3702_v27 = vadd.f32 %v1210_v24, %v1209_v23  ;;  %v3298_v23 = vld [vmem:[%s3550_s18 + $0x1b0] sm:$0xff] }
  0xb1   : > { %v509_v28 = vadd.f32 %v476_v26, %v475_v25  ;;  %v3704_v29 = vpop.f32.mrf.mxu2  ;;  %v3706_v30 = vpop.f32.mrf.mxu3 }
  0xb2   : > { %v330_v31 = vpop.f32.mrf.mxu0  ;;  %v395_v32 = vpop.f32.mrf.mxu1 }
  0xb3   : > { %v331_v34 = vadd.f32 %v330_v31, %v3651_v37  ;;  %v396_v35 = vadd.f32 %v395_v32, %v3653_v38  ;;  %510 = vadd.xlane.f32.xlu1 %v509_v28 }
  0xb5   : > { %v440_v39 = vmax.f32 %v331_v34, 0.0  ;;  %v441_v40 = vmax.f32 %v396_v35, 0.0  ;;  %3262 = vmatmul.msk.f32.gmra.mxu0 %vm255_vm0, %v3246_v33  ;;  %3278 = vmatmul.msk.f32.gmra.mxu1 %vm255_vm0, %v3246_v33 }
  0xb6   : > { %3311 = vmatmul.msk.f32.gmra.mxu2 %vm255_vm0, %v3295_v36  ;;  %3327 = vmatmul.msk.f32.gmra.mxu3 %vm255_vm0, %v3295_v36 }
  0xb7   : > { %v477_v41 = vmul.f32 %v3661_v45, %v440_v39  ;;  %v478_v42 = vmul.f32 %v3663_v46, %v441_v40 }
  0xb9   : > { %v512_v43 = vadd.f32 %v478_v42, %v477_v41  ;;  %v1071_v44 = vpop.f32.mrf.mxu2  ;;  %v1136_v47 = vpop.f32.mrf.mxu3  ;;  %v3250_v42 = vld [vmem:[%s3550_s18 + $0x138] sm:$0xff] }
  0xba   : > { %v333_v48 = vpop.f32.mrf.mxu0  ;;  %v398_v49 = vpop.f32.mrf.mxu1  ;;  %v1072_v51 = vadd.f32 %v1071_v44, %v3651_v37  ;;  %v1137_v52 = vadd.f32 %v1136_v47, %v3653_v38  ;;  %v3299_v47 = vld [vmem:[%s3550_s18 + $0x1b8] sm:$0xff] }
  0xbb   : > { %v334_v53 = vadd.f32 %v333_v48, %v3651_v37  ;;  %v399_v54 = vadd.f32 %v398_v49, %v3653_v38  ;;  %513 = vadd.xlane.f32.xlu1 %v512_v43 }
  0xbc   : > { %v1181_v56 = vmax.f32 %v1072_v51, 0.0  ;;  %v1182_v57 = vmax.f32 %v1137_v52, 0.0 }
  0xbd   : > { %v442_v58 = vmax.f32 %v334_v53, 0.0  ;;  %v443_v59 = vmax.f32 %v399_v54, 0.0  ;;  %3263 = vmatmul.msk.f32.gmra.mxu0 %vm255_vm0, %v3247_v50  ;;  %3279 = vmatmul.msk.f32.gmra.mxu1 %vm255_vm0, %v3247_v50 }
  0xbe   : > { %3312 = vmatmul.msk.f32.gmra.mxu2 %vm255_vm0, %v3296_v55  ;;  %3328 = vmatmul.msk.f32.gmra.mxu3 %vm255_vm0, %v3296_v55  ;;  %v1213_v60 = vmul.f32 %v1181_v56, %v3661_v45  ;;  %v1214_v61 = vmul.f32 %v1182_v57, %v3663_v46 }
  0xbf   : > { %v479_v62 = vmul.f32 %v3661_v45, %v442_v58  ;;  %v480_v63 = vmul.f32 %v3663_v46, %v443_v59 }
  0xc0   : > { %v3732_v0 = vadd.f32 %v1214_v61, %v1213_v60  ;;  %v3251_v60 = vld [vmem:[%s3550_s18 + $0x140] sm:$0xff] }
  0xc1   : > { %v515_v1 = vadd.f32 %v480_v63, %v479_v62  ;;  %v3734_v2 = vpop.f32.mrf.mxu2  ;;  %v3736_v3 = vpop.f32.mrf.mxu3  ;;  %v3300_v63 = vld [vmem:[%s3550_s18 + $0x1c0] sm:$0xff] }
  0xc2   : > { %v336_v4 = vpop.f32.mrf.mxu0  ;;  %v401_v5 = vpop.f32.mrf.mxu1 }
  0xc3   : > { %v337_v8 = vadd.f32 %v336_v4, %v3651_v37  ;;  %v402_v9 = vadd.f32 %v401_v5, %v3653_v38  ;;  %516 = vadd.xlane.f32.xlu2 %v515_v1 }
  0xc5   : > { %v444_v11 = vmax.f32 %v337_v8, 0.0  ;;  %v445_v12 = vmax.f32 %v402_v9, 0.0  ;;  %3264 = vmatmul.msk.f32.gmra.mxu0 %vm255_vm0, %v3248_v6  ;;  %3280 = vmatmul.msk.f32.gmra.mxu1 %vm255_vm0, %v3248_v6 }
  0xc6   : > { %3313 = vmatmul.msk.f32.gmra.mxu2 %vm255_vm0, %v3297_v10  ;;  %3329 = vmatmul.msk.f32.gmra.mxu3 %vm255_vm0, %v3297_v10 }
  0xc7   : > { %v481_v13 = vmul.f32 %v3661_v45, %v444_v11  ;;  %v482_v14 = vmul.f32 %v3663_v46, %v445_v12 }
  0xc9   : > { %v518_v15 = vadd.f32 %v482_v14, %v481_v13  ;;  %v1077_v16 = vpop.f32.mrf.mxu2  ;;  %v1142_v17 = vpop.f32.mrf.mxu3  ;;  %v3252_v13 = vld [vmem:[%s3550_s18 + $0x148] sm:$0xff] }
  0xca   : > { %v339_v18 = vpop.f32.mrf.mxu0  ;;  %v404_v19 = vpop.f32.mrf.mxu1  ;;  %v1078_v24 = vadd.f32 %v1077_v16, %v3651_v37  ;;  %v1143_v25 = vadd.f32 %v1142_v17, %v3653_v38  ;;  %v3301_v16 = vld [vmem:[%s3550_s18 + $0x1c8] sm:$0xff] }
  0xcb   : > { %v340_v21 = vadd.f32 %v339_v18, %v3651_v37  ;;  %v405_v22 = vadd.f32 %v404_v19, %v3653_v38  ;;  %519 = vadd.xlane.f32.xlu2 %v518_v15 }
  0xcc   : > { %v1185_v33 = vmax.f32 %v1078_v24, 0.0  ;;  %v1186_v34 = vmax.f32 %v1143_v25, 0.0 }
  0xcd   : > { %v446_v26 = vmax.f32 %v340_v21, 0.0  ;;  %v447_v28 = vmax.f32 %v405_v22, 0.0  ;;  %3265 = vmatmul.msk.f32.gmra.mxu0 %vm255_vm0, %v3249_v20  ;;  %3281 = vmatmul.msk.f32.gmra.mxu1 %vm255_vm0, %v3249_v20 }
  0xce   : > { %3314 = vmatmul.msk.f32.gmra.mxu2 %vm255_vm0, %v3298_v23  ;;  %3330 = vmatmul.msk.f32.gmra.mxu3 %vm255_vm0, %v3298_v23  ;;  %v1217_v48 = vmul.f32 %v1185_v33, %v3661_v45  ;;  %v1218_v49 = vmul.f32 %v1186_v34, %v3663_v46 }
  0xcf   : > { %v483_v31 = vmul.f32 %v3661_v45, %v446_v26  ;;  %v484_v32 = vmul.f32 %v3663_v46, %v447_v28  ;;  %v3253_v26 = vld [vmem:[%s3550_s18 + $0x150] sm:$0xff] }
  0xd0   : > { %v3774_v52 = vadd.f32 %v1218_v49, %v1217_v48  ;;  %v3254_v48 = vld [vmem:[%s3550_s18 + $0x158] sm:$0xff] }
  0xd1   : > { %v521_v35 = vadd.f32 %v484_v32, %v483_v31  ;;  %v3760_v36 = vpop.f32.mrf.mxu2  ;;  %v3762_v39 = vpop.f32.mrf.mxu3  ;;  %v3302_v32 = vld [vmem:[%s3550_s18 + $0x1d0] sm:$0xff] }
  0xd2   : > { %v342_v40 = vpop.f32.mrf.mxu0  ;;  %v407_v41 = vpop.f32.mrf.mxu1 }
  0xd3   : > { %v343_v43 = vadd.f32 %v342_v40, %v3651_v37  ;;  %v408_v44 = vadd.f32 %v407_v41, %v3653_v38  ;;  %522 = vadd.xlane.f32.xlu0 %v521_v35 }
  0xd5   : > { %v448_v50 = vmax.f32 %v343_v43, 0.0  ;;  %v449_v51 = vmax.f32 %v408_v44, 0.0  ;;  %3266 = vmatmul.msk.f32.gmra.mxu0 %vm255_vm0, %v3250_v42  ;;  %3282 = vmatmul.msk.f32.gmra.mxu1 %vm255_vm0, %v3250_v42 }
  0xd6   : > { %3315 = vmatmul.msk.f32.gmra.mxu2 %vm255_vm0, %v3299_v47  ;;  %3331 = vmatmul.msk.f32.gmra.mxu3 %vm255_vm0, %v3299_v47 }
  0xd7   : > { %v485_v53 = vmul.f32 %v3661_v45, %v448_v50  ;;  %v486_v54 = vmul.f32 %v3663_v46, %v449_v51  ;;  %v3303_v51 = vld [vmem:[%s3550_s18 + $0x1d8] sm:$0xff] }
  0xd9   : > { %v524_v55 = vadd.f32 %v486_v54, %v485_v53  ;;  %v3778_v56 = vpop.f32.mrf.mxu2  ;;  %v3780_v57 = vpop.f32.mrf.mxu3 }
  0xda   : > { %v345_v58 = vpop.f32.mrf.mxu0  ;;  %v410_v59 = vpop.f32.mrf.mxu1 }
  0xdb   : > { %v346_v61 = vadd.f32 %v345_v58, %v3651_v37  ;;  %v411_v62 = vadd.f32 %v410_v59, %v3653_v38  ;;  %525 = vadd.xlane.f32.xlu1 %v524_v55 }
  0xdd   : > { %v450_v1 = vmax.f32 %v346_v61, 0.0  ;;  %v451_v4 = vmax.f32 %v411_v62, 0.0  ;;  %3267 = vmatmul.msk.f32.gmra.mxu0 %vm255_vm0, %v3251_v60  ;;  %3283 = vmatmul.msk.f32.gmra.mxu1 %vm255_vm0, %v3251_v60 }
  0xde   : > { %3316 = vmatmul.msk.f32.gmra.mxu2 %vm255_vm0, %v3300_v63  ;;  %3332 = vmatmul.msk.f32.gmra.mxu3 %vm255_vm0, %v3300_v63 }
  0xdf   : > { %v487_v5 = vmul.f32 %v3661_v45, %v450_v1  ;;  %v488_v6 = vmul.f32 %v3663_v46, %v451_v4  ;;  %v3255_v1 = vld [vmem:[%s3550_s18 + $0x160] sm:$0xff] }
  0xe1   : > { %v527_v8 = vadd.f32 %v488_v6, %v487_v5  ;;  %v3792_v9 = vpop.f32.mrf.mxu2  ;;  %v3794_v10 = vpop.f32.mrf.mxu3  ;;  %v3304_v6 = vld [vmem:[%s3550_s18 + $0x1e0] sm:$0xff] }
  0xe2   : > { %v348_v11 = vpop.f32.mrf.mxu0  ;;  %v413_v12 = vpop.f32.mrf.mxu1 }
  0xe3   : > { %v349_v14 = vadd.f32 %v348_v11, %v3651_v37  ;;  %v414_v15 = vadd.f32 %v413_v12, %v3653_v38  ;;  %528 = vadd.xlane.f32.xlu2 %v527_v8  ;;  %v1069_v8 = vadd.f32 %v3704_v29, %v3651_v37  ;;  %v1134_v11 = vadd.f32 %v3706_v30, %v3653_v38 }
  0xe5   : > { %v452_v17 = vmax.f32 %v349_v14, 0.0  ;;  %v453_v18 = vmax.f32 %v414_v15, 0.0  ;;  %3268 = vmatmul.msk.f32.gmra.mxu0 %vm255_vm0, %v3252_v13  ;;  %3284 = vmatmul.msk.f32.gmra.mxu1 %vm255_vm0, %v3252_v13  ;;  %v1180_v29 = vmax.f32 %v1134_v11, 0.0 }
  0xe6   : > { %3317 = vmatmul.msk.f32.gmra.mxu2 %vm255_vm0, %v3301_v16  ;;  %3333 = vmatmul.msk.f32.gmra.mxu3 %vm255_vm0, %v3301_v16  ;;  %v1179_v16 = vmax.f32 %v1069_v8, 0.0 }
  0xe7   : > { %v489_v19 = vmul.f32 %v3661_v45, %v452_v17  ;;  %v490_v20 = vmul.f32 %v3663_v46, %v453_v18 }
  0xe9   : > { %v530_v21 = vadd.f32 %v490_v20, %v489_v19  ;;  %v3806_v22 = vpop.f32.mrf.mxu2  ;;  %v3808_v23 = vpop.f32.mrf.mxu3  ;;  %v3256_v19 = vld [vmem:[%s3550_s18 + $0x168] sm:$0xff] }
  0xea   : > { %v351_v24 = vpop.f32.mrf.mxu0  ;;  %v416_v25 = vpop.f32.mrf.mxu1 }
  0xeb   : > { %v352_v28 = vadd.f32 %v351_v24, %v3651_v37  ;;  %v417_v31 = vadd.f32 %v416_v25, %v3653_v38  ;;  %531 = vadd.xlane.f32.xlu0 %v530_v21 }
  0xed   : > { %v454_v33 = vmax.f32 %v352_v28, 0.0  ;;  %v455_v34 = vmax.f32 %v417_v31, 0.0  ;;  %3269 = vmatmul.msk.f32.gmra.mxu0 %vm255_vm0, %v3253_v26  ;;  %3285 = vmatmul.msk.f32.gmra.mxu1 %vm255_vm0, %v3253_v26  ;;  %v3305_v26 = vld [vmem:[%s3550_s18 + $0x1e8] sm:$0xff]  ;;  %v1211_v28 = vmul.f32 %v1179_v16, %v3661_v45  ;;  %v1081_v31 = vadd.f32 %v3760_v36, %v3651_v37 }
  0xee   : > { %3318 = vmatmul.msk.f32.gmra.mxu2 %vm255_vm0, %v3302_v32  ;;  %3334 = vmatmul.msk.f32.gmra.mxu3 %vm255_vm0, %v3302_v32 }
  0xef   : > { %v491_v35 = vmul.f32 %v3661_v45, %v454_v33  ;;  %v492_v40 = vmul.f32 %v3663_v46, %v455_v34  ;;  %v1212_v34 = vmul.f32 %v1180_v29, %v3663_v46 }
  0xf1   : > { %v533_v41 = vadd.f32 %v492_v40, %v491_v35  ;;  %v3820_v42 = vpop.f32.mrf.mxu2  ;;  %v3822_v43 = vpop.f32.mrf.mxu3  ;;  %v1146_v35 = vadd.f32 %v3762_v39, %v3653_v38  ;;  %v1075_v39 = vadd.f32 %v3734_v2, %v3651_v37 }
  0xf2   : > { %v354_v44 = vpop.f32.mrf.mxu0  ;;  %v419_v47 = vpop.f32.mrf.mxu1 }
  0xf3   : > { %v355_v49 = vadd.f32 %v354_v44, %v3651_v37  ;;  %v420_v50 = vadd.f32 %v419_v47, %v3653_v38  ;;  %534 = vadd.xlane.f32.xlu1 %v533_v41  ;;  %v1187_v41 = vmax.f32 %v1081_v31, 0.0  ;;  %v1245_v47 = vadd.f32 %v1212_v34, %v1211_v28 }
  0xf4   : > { %v1183_v8 = vmax.f32 %v1075_v39, 0.0 }
  0xf5   : > { %v456_v53 = vmax.f32 %v355_v49, 0.0  ;;  %v457_v54 = vmax.f32 %v420_v50, 0.0  ;;  %3270 = vmatmul.msk.f32.gmra.mxu0 %vm255_vm0, %v3254_v48  ;;  %3286 = vmatmul.msk.f32.gmra.mxu1 %vm255_vm0, %v3254_v48  ;;  %v1188_v48 = vmax.f32 %v1146_v35, 0.0 }
  0xf6   : > { %3319 = vmatmul.msk.f32.gmra.mxu2 %vm255_vm0, %v3303_v51  ;;  %3335 = vmatmul.msk.f32.gmra.mxu3 %vm255_vm0, %v3303_v51  ;;  %v1215_v16 = vmul.f32 %v1183_v8, %v3661_v45 }
  0xf7   : > { %v493_v55 = vmul.f32 %v3661_v45, %v456_v53  ;;  %v494_v58 = vmul.f32 %v3663_v46, %v457_v54  ;;  %v1140_v54 = vadd.f32 %v3736_v3, %v3653_v38  ;;  %v1220_v2 = vmul.f32 %v1188_v48, %v3663_v46 }
  0xf9   : > { %v536_v59 = vadd.f32 %v494_v58, %v493_v55  ;;  %v3834_v60 = vpop.f32.mrf.mxu2  ;;  %v3836_v61 = vpop.f32.mrf.mxu3  ;;  %v3306_v55 = vld [vmem:[%s3550_s18 + $0x1f0] sm:$0xff]  ;;  %v1184_v11 = vmax.f32 %v1140_v54, 0.0 }
  0xfa   : > { %v357_v62 = vpop.f32.mrf.mxu0  ;;  %v422_v63 = vpop.f32.mrf.mxu1 }
  0xfb   : > { %v358_v4 = vadd.f32 %v357_v62, %v3651_v37  ;;  %v423_v5 = vadd.f32 %v422_v63, %v3653_v38  ;;  %537 = vadd.xlane.f32.xlu2 %v536_v59  ;;  %v1219_v62 = vmul.f32 %v1187_v41, %v3661_v45  ;;  %v1216_v29 = vmul.f32 %v1184_v11, %v3663_v46 }
  0xfc   : > { %v1087_v11 = vadd.f32 %v3792_v9, %v3651_v37 }
  0xfd   : > { %v458_v12 = vmax.f32 %v358_v4, 0.0  ;;  %v459_v13 = vmax.f32 %v423_v5, 0.0  ;;  %3271 = vmatmul.msk.f32.gmra.mxu0 %vm255_vm0, %v3255_v1  ;;  %3287 = vmatmul.msk.f32.gmra.mxu1 %vm255_vm0, %v3255_v1  ;;  %v1090_v4 = vadd.f32 %v3806_v22, %v3651_v37  ;;  %v1155_v5 = vadd.f32 %v3808_v23, %v3653_v38 }
  0xfe   : > { %3320 = vmatmul.msk.f32.gmra.mxu2 %vm255_vm0, %v3304_v6  ;;  %3336 = vmatmul.msk.f32.gmra.mxu3 %vm255_vm0, %v3304_v6  ;;  %v1084_v22 = vadd.f32 %v3778_v56, %v3651_v37  ;;  %v3892_v23 = vstv %s233_s6  ;;  %v1251_v31 = vadd.f32 %v1216_v29, %v1215_v16 }
  0xff   : > { %v495_v14 = vmul.f32 %v3661_v45, %v458_v12  ;;  %v496_v15 = vmul.f32 %v3663_v46, %v459_v13  ;;  %v1193_v13 = vmax.f32 %v1090_v4, 0.0 }
 0x100   : > { %v1189_v28 = vmax.f32 %v1084_v22, 0.0 }
 0x101   : > { %v539_v17 = vadd.f32 %v496_v15, %v495_v14  ;;  %v1098_v24 = vpop.f32.mrf.mxu2  ;;  %v1163_v25 = vpop.f32.mrf.mxu3  ;;  %v1194_v14 = vmax.f32 %v1155_v5, 0.0  ;;  %v1257_v15 = vadd.f32 %v1220_v2, %v1219_v62 }
 0x102   : > { %v360_v18 = vpop.f32.mrf.mxu0  ;;  %v425_v30 = vpop.f32.mrf.mxu1 }
 0x103   : > { %v361_v20 = vadd.f32 %v360_v18, %v3651_v37  ;;  %v426_v21 = vadd.f32 %v425_v30, %v3653_v38  ;;  %540 = vadd.xlane.f32.xlu0 %v539_v17  ;;  %v1149_v17 = vadd.f32 %v3780_v57, %v3653_v38  ;;  %v1225_v18 = vmul.f32 %v1193_v13, %v3661_v45 }
 0x104   : > { %v1226_v30 = vmul.f32 %v1194_v14, %v3663_v46 }
 0x105   : > { %v460_v32 = vmax.f32 %v361_v20, 0.0  ;;  %v461_v33 = vmax.f32 %v426_v21, 0.0  ;;  %3272 = vmatmul.msk.f32.gmra.mxu0 %vm255_vm0, %v3256_v19  ;;  %3288 = vmatmul.msk.f32.gmra.mxu1 %vm255_vm0, %v3256_v19  ;;  %v1099_v19 = vadd.f32 %v1098_v24, %v3651_v37 }
 0x106   : > { %3321 = vmatmul.msk.f32.gmra.mxu2 %vm255_vm0, %v3305_v26  ;;  %3337 = vmatmul.msk.f32.gmra.mxu3 %vm255_vm0, %v3305_v26  ;;  %v1266_v41 = vadd.f32 %v1226_v30, %v1225_v18 }
 0x107   : > { %v497_v40 = vmul.f32 %v3661_v45, %v460_v32  ;;  %v498_v36 = vmul.f32 %v3663_v46, %v461_v33  ;;  %v1190_v32 = vmax.f32 %v1149_v17, 0.0  ;;  %v1199_v35 = vmax.f32 %v1099_v19, 0.0 }
 0x108   : > { %v1191_v17 = vmax.f32 %v1087_v11, 0.0 }
 0x109   : > { %v542_v44 = vadd.f32 %v498_v36, %v497_v40  ;;  %v3876_v63 = vpop.f32.mrf.mxu2  ;;  %v3878_v1 = vpop.f32.mrf.mxu3  ;;  %v1231_v54 = vmul.f32 %v1199_v35, %v3661_v45 }
 0x10a   : > { %v363_v49 = vpop.f32.mrf.mxu0  ;;  %v428_v50 = vpop.f32.mrf.mxu1  ;;  %v1102_v9 = vadd.f32 %v3876_v63, %v3651_v37  ;;  %v1223_v63 = vmul.f32 %v1191_v17, %v3661_v45 }
 0x10b   : > { %v364_v51 = vadd.f32 %v363_v49, %v3651_v37  ;;  %v429_v53 = vadd.f32 %v428_v50, %v3653_v38  ;;  %543 = vadd.xlane.f32.xlu1 %v542_v44  ;;  %1246 = vadd.xlane.f32.xlu0 %v1245_v47  ;;  %v1221_v50 = vmul.f32 %v1189_v28, %v3661_v45 }
 0x10d   : > { %v462_v58 = vmax.f32 %v364_v51, 0.0  ;;  %v463_v59 = vmax.f32 %v429_v53, 0.0  ;;  %v1093_v51 = vadd.f32 %v3820_v42, %v3651_v37  ;;  %v1158_v53 = vadd.f32 %v3822_v43, %v3653_v38 }
 0x10e   : > { %3322 = vmatmul.msk.f32.gmra.mxu2 %vm255_vm0, %v3306_v55  ;;  %3338 = vmatmul.msk.f32.gmra.mxu3 %vm255_vm0, %v3306_v55 }
 0x10f   : > { %v499_v3 = vmul.f32 %v3661_v45, %v462_v58  ;;  %v500_v6 = vmul.f32 %v3663_v46, %v463_v59  ;;  %v1195_v5 = vmax.f32 %v1093_v51, 0.0  ;;  %v1196_v42 = vmax.f32 %v1158_v53, 0.0 }
 0x111   : > { %v545_v12 = vadd.f32 %v500_v6, %v499_v3  ;;  %v3903_v21 = vpop.f32.mrf.mxu2  ;;  %v3905_v26 = vpop.f32.mrf.mxu3  ;;  %v1227_v16 = vmul.f32 %v1195_v5, %v3661_v45  ;;  %v1228_v29 = vmul.f32 %v1196_v42, %v3663_v46 }
 0x112   : > { %v366_v24 = vpop.f32.mrf.mxu0  ;;  %v431_v44 = vpop.f32.mrf.mxu1 }
 0x113   : > { %546 = vadd.xlane.f32.xlu2 %v545_v12  ;;  %1243 = vadd.xlane.f32.xlu1 %v3702_v27  ;;  %v1164_v27 = vadd.f32 %v1163_v25, %v3653_v38  ;;  %v367_v47 = vadd.f32 %v366_v24, %v3651_v37  ;;  %v432_v48 = vadd.f32 %v431_v44, %v3653_v38 }
 0x114   : > { %1258 = vadd.xlane.f32.xlu0 %v1257_v15  ;;  %v1152_v12 = vadd.f32 %v3794_v10, %v3653_v38  ;;  %v1161_v44 = vadd.f32 %v3836_v61, %v3653_v38 }
 0x115   : > { %v1200_v40 = vmax.f32 %v1164_v27, 0.0  ;;  %v464_v62 = vmax.f32 %v367_v47, 0.0  ;;  %v465_v4 = vmax.f32 %v432_v48, 0.0 }
 0x116   : > { %v505_v20 = vpop.xlane.xlu0 %504  ;;  %v1192_v18 = vmax.f32 %v1152_v12, 0.0  ;;  %v1198_v53 = vmax.f32 %v1161_v44, 0.0 }
 0x117   : > { %v552_v56 = vadd.f32 %v3892_v23, %v505_v20  ;;  %v1232_v55 = vmul.f32 %v1200_v40, %v3663_v46  ;;  %v501_v13 = vmul.f32 %v3661_v45, %v464_v62  ;;  %v502_v14 = vmul.f32 %v3663_v46, %v465_v4 }
 0x118   : > { %v1096_v40 = vadd.f32 %v3834_v60, %v3651_v37 }
 0x119   : > { %v584_v33 = vperm.slane %v552_v56, 0  ;;  %v585_v57 = vperm.slane %v552_v56, 1  ;;  %v586_v34 = vperm.slane %v552_v56, 2  ;;  %v587_v36 = vperm.slane %v552_v56, 3  ;;  %v1107_v43 = vpop.f32.mrf.mxu2  ;;  %v1172_v3 = vpop.f32.mrf.mxu3 }
 0x11a   : > { %v588_v25 = vperm.slane %v552_v56, 4  ;;  %v589_v49 = vperm.slane %v552_v56, 5  ;;  %v590_v39 = vperm.slane %v552_v56, 6  ;;  %v591_v58 = vperm.slane %v552_v56, 7  ;;  %v3947_v48 = vpop.f32.mrf.mxu0 }
 0x11b   : > { %712 = vst [vmem:[#allocation1] ss:$9 sm:$0xff] %v584_v33  ;;  %1240 = vadd.xlane.f32.xlu2 %v3686_v7  ;;  %1252 = vadd.xlane.f32.xlu1 %v1251_v31  ;;  %v1222_v7 = vmul.f32 %v1190_v32, %v3663_v46  ;;  %v1275_v8 = vadd.f32 %v1232_v55, %v1231_v54  ;;  %v1201_v31 = vmax.f32 %v1102_v9, 0.0 }
 0x11c   : > { %714 = vst [vmem:[#allocation1 + $0x1] ss:$9 sm:$0xff] %v585_v57  ;;  %1267 = vadd.xlane.f32.xlu0 %v1266_v41  ;;  %v1108_v15 = vadd.f32 %v1107_v43, %v3651_v37  ;;  %v1173_v22 = vadd.f32 %v1172_v3, %v3653_v38  ;;  %v548_v56 = vadd.f32 %v502_v14, %v501_v13 }
 0x11d   : > { %716 = vst [vmem:[#allocation1 + $0x2] ss:$9 sm:$0xff] %v586_v34  ;;  %v1260_v2 = vadd.f32 %v1222_v7, %v1221_v50  ;;  %v1269_v57 = vadd.f32 %v1228_v29, %v1227_v16  ;;  %v1197_v50 = vmax.f32 %v1096_v40, 0.0  ;;  %v1230_v55 = vmul.f32 %v1198_v53, %v3663_v46 }
 0x11e   : > { %718 = vst [vmem:[#allocation1 + $0x3] ss:$9 sm:$0xff] %v587_v36  ;;  %v508_v59 = vpop.xlane.xlu0 %507  ;;  %v1205_v27 = vmax.f32 %v1108_v15, 0.0  ;;  %v1206_v20 = vmax.f32 %v1173_v22, 0.0 }
 0x11f   : > { %720 = vst [vmem:[#allocation1 + $0x4] ss:$9 sm:$0xff] %v588_v25  ;;  %v553_v6 = vadd.f32 %v3892_v23, %v508_v59  ;;  %v1233_v25 = vmul.f32 %v1201_v31, %v3661_v45  ;;  %v1229_v54 = vmul.f32 %v1197_v50, %v3661_v45  ;;  %v1170_v59 = vadd.f32 %v3905_v26, %v3653_v38 }
 0x120   : > { %722 = vst [vmem:[#allocation1 + $0x5] ss:$9 sm:$0xff] %v589_v49  ;;  %v1237_v41 = vmul.f32 %v1205_v27, %v3661_v45  ;;  %v1238_v24 = vmul.f32 %v1206_v20, %v3663_v46  ;;  %v3949_v49 = vpop.f32.mrf.mxu1 }
 0x121   : > { %724 = vst [vmem:[#allocation1 + $0x6] ss:$9 sm:$0xff] %v590_v39  ;;  %v592_v10 = vperm.slane %v553_v6, 0  ;;  %v593_v30 = vperm.slane %v553_v6, 1  ;;  %v594_v19 = vperm.slane %v553_v6, 2  ;;  %v595_v33 = vperm.slane %v553_v6, 3 }
 0x122   : > { %726 = vst [vmem:[#allocation1 + $0x7] ss:$9 sm:$0xff] %v591_v58  ;;  %v596_v34 = vperm.slane %v553_v6, 4  ;;  %v597_v35 = vperm.slane %v553_v6, 5  ;;  %v598_v36 = vperm.slane %v553_v6, 6  ;;  %v1284_v51 = vadd.f32 %v1238_v24, %v1237_v41  ;;  %v1765_v5 = vpop.f32.mrf.mxu0 }
 0x123   : > { %1249 = vadd.xlane.f32.xlu2 %v3732_v0  ;;  %1261 = vadd.xlane.f32.xlu1 %v1260_v2  ;;  %v1167_v0 = vadd.f32 %v3878_v1, %v3653_v38  ;;  %v1224_v1 = vmul.f32 %v1192_v18, %v3663_v46  ;;  %v1105_v58 = vadd.f32 %v3903_v21, %v3651_v37 }
 0x124   : > { %1276 = vadd.xlane.f32.xlu0 %v1275_v8  ;;  %v1204_v8 = vmax.f32 %v1170_v59, 0.0  ;;  %v1272_v12 = vadd.f32 %v1230_v55, %v1229_v54 }
 0x125   : > { %v1202_v32 = vmax.f32 %v1167_v0, 0.0  ;;  %v1263_v39 = vadd.f32 %v1224_v1, %v1223_v63  ;;  %v1828_v63 = vadd.f32 %v3949_v49, %v3653_v38  ;;  %v1766_v1 = vadd.f32 %v1765_v5, %v3651_v37 }
 0x126   : > { %v511_v60 = vpop.xlane.xlu1 %510  ;;  %v1236_v15 = vmul.f32 %v1204_v8, %v3663_v46 }
 0x127   : > { %v1234_v47 = vmul.f32 %v1202_v32, %v3663_v46  ;;  %v554_v61 = vadd.f32 %v3892_v23, %v511_v60  ;;  %v1876_v24 = vmax.f32 %v1828_v63, 0.0  ;;  %v1877_v44 = vmax.f32 %v1766_v1, 0.0 }
 0x128   : > { %v1830_v43 = vpop.f32.mrf.mxu1 }
 0x129   : > { %v3934_v28 = vld [vmem:[#allocation1] sm:$0xff]  ;;  %v1278_v7 = vadd.f32 %v1234_v47, %v1233_v25  ;;  %v600_v62 = vperm.slane %v554_v61, 0  ;;  %v601_v4 = vperm.slane %v554_v61, 1  ;;  %v602_v42 = vperm.slane %v554_v61, 2 }
 0x12a   : > { %728 = vst [vmem:[#allocation1] ss:$9 sm:$0xff] %v592_v10  ;;  %v603_v3 = vperm.slane %v554_v61, 3  ;;  %v604_v11 = vperm.slane %v554_v61, 4  ;;  %v605_v13 = vperm.slane %v554_v61, 5  ;;  %v606_v14 = vperm.slane %v554_v61, 6  ;;  %v3963_v29 = vpop.f32.mrf.mxu0 }
 0x12b   : > { %729 = vst [vmem:[#allocation1 + $0x1] ss:$9 sm:$0xff] %v593_v30  ;;  %1255 = vadd.xlane.f32.xlu2 %v3774_v52  ;;  %1270 = vadd.xlane.f32.xlu1 %v1269_v57  ;;  %v599_v52 = vperm.slane %v553_v6, 7  ;;  %v1203_v6 = vmax.f32 %v1105_v58, 0.0  ;;  %v607_v21 = vperm.slane %v554_v61, 7  ;;  %v1908_v49 = vmul.f32 %v1876_v24, %v3663_v46 }
 0x12c   : > { %730 = vst [vmem:[#allocation1 + $0x2] ss:$9 sm:$0xff] %v594_v19  ;;  %549 = vadd.xlane.f32.xlu0 %v548_v56  ;;  %v1909_v50 = vmul.f32 %v1877_v44, %v3661_v45 }
 0x12d   : > { %731 = vst [vmem:[#allocation1 + $0x3] ss:$9 sm:$0xff] %v595_v33  ;;  %v1235_v26 = vmul.f32 %v1203_v6, %v3661_v45 }
 0x12e   : > { %732 = vst [vmem:[#allocation1 + $0x4] ss:$9 sm:$0xff] %v596_v34  ;;  %v514_v22 = vpop.xlane.xlu1 %513  ;;  %v1763_v34 = vadd.f32 %v3947_v48, %v3651_v37 }
 0x12f   : > { %733 = vst [vmem:[#allocation1 + $0x5] ss:$9 sm:$0xff] %v597_v35  ;;  %v555_v16 = vadd.f32 %v3892_v23, %v514_v22  ;;  %v1281_v9 = vadd.f32 %v1236_v15, %v1235_v26  ;;  %v1831_v35 = vadd.f32 %v1830_v43, %v3653_v38  ;;  %v2527_v43 = vpop.f32.mrf.mxu3 }
 0x130   : > { %734 = vst [vmem:[#allocation1 + $0x6] ss:$9 sm:$0xff] %v598_v36  ;;  %v3965_v0 = vpop.f32.mrf.mxu1  ;;  %v3452_v36 = vmov 0   ;;  %v1875_v41 = vmax.f32 %v1763_v34, 0.0  ;;  %v2528_v6 = vadd.f32 %v2527_v43, %v3653_v38 }
 0x131   : > { %735 = vst [vmem:[#allocation1 + $0x7] ss:$9 sm:$0xff] %v599_v52  ;;  %v608_v10 = vperm.slane %v555_v16, 0  ;;  %v609_v17 = vperm.slane %v555_v16, 1  ;;  %v610_v18 = vperm.slane %v555_v16, 2  ;;  %v611_v19 = vperm.slane %v555_v16, 3  ;;  %3385 = vset.pattern.permute.xlu0 %v3452_v36  ;;  %3386 = vset.pattern.permute.xlu1 %v3452_v36 }
 0x132   : > { %v612_v27 = vperm.slane %v555_v16, 4  ;;  %v613_v20 = vperm.slane %v555_v16, 5  ;;  %v614_v56 = vperm.slane %v555_v16, 6  ;;  %v615_v31 = vperm.slane %v555_v16, 7  ;;  %v3967_v32 = vpop.f32.mrf.mxu0  ;;  %3387 = vset.pattern.permute.xlu2 %v3452_v36 }
 0x133   : > { %1264 = vadd.xlane.f32.xlu2 %v1263_v39  ;;  %1279 = vadd.xlane.f32.xlu1 %v1278_v7  ;;  %v1878_v25 = vmax.f32 %v1831_v35, 0.0  ;;  %v1907_v52 = vmul.f32 %v1875_v41, %v3661_v45 }
 0x134   : > { %1285 = vadd.xlane.f32.xlu0 %v1284_v51 }
 0x135   : > { %v1910_v51 = vmul.f32 %v1878_v25, %v3663_v46  ;;  %v1939_v59 = vadd.f32 %v1908_v49, %v1907_v52 }
 0x136   : > { %v517_v57 = vpop.xlane.xlu2 %516 }
 0x137   : > { %v556_v40 = vadd.f32 %v3892_v23, %v517_v57 }
 0x138   : > { %v3958_v2 = vld [vmem:[#allocation1] sm:$0xff]  ;;  %v3969_v33 = vpop.f32.mrf.mxu1 }
 0x139   : > { %737 = vst [vmem:[#allocation1] ss:$9 sm:$0xff] %v600_v62  ;;  %v616_v47 = vperm.slane %v556_v40, 0  ;;  %v617_v48 = vperm.slane %v556_v40, 1  ;;  %v618_v60 = vperm.slane %v556_v40, 2  ;;  %v619_v61 = vperm.slane %v556_v40, 3 }
 0x13a   : > { %738 = vst [vmem:[#allocation1 + $0x1] ss:$9 sm:$0xff] %v601_v4  ;;  %v3984_v39 = vpop.f32.mrf.mxu0  ;;  %v620_v54 = vperm.slane %v556_v40, 4  ;;  %v621_v55 = vperm.slane %v556_v40, 5  ;;  %v622_v58 = vperm.slane %v556_v40, 6  ;;  %v623_v62 = vperm.slane %v556_v40, 7 }
 0x13b   : > { %739 = vst [vmem:[#allocation1 + $0x2] ss:$9 sm:$0xff] %v602_v42  ;;  %1273 = vadd.xlane.f32.xlu2 %v1272_v12  ;;  %v1942_v4 = vadd.f32 %v1910_v51, %v1909_v50  ;;  %v2462_v42 = vpop.f32.mrf.mxu2 }
 0x13c   : > { %740 = vst [vmem:[#allocation1 + $0x3] ss:$9 sm:$0xff] %v603_v3  ;;  %v2463_v3 = vadd.f32 %v2462_v42, %v3651_v37 }
 0x13d   : > { %741 = vst [vmem:[#allocation1 + $0x4] ss:$9 sm:$0xff] %v604_v11  ;;  %1943 = vadd.xlane.f32.xlu1 %v1942_v4  ;;  %v1772_v4 = vadd.f32 %v3967_v32, %v3651_v37  ;;  %v1769_v32 = vadd.f32 %v3963_v29, %v3651_v37 }
 0x13e   : > { %742 = vst [vmem:[#allocation1 + $0x5] ss:$9 sm:$0xff] %v605_v13  ;;  %v520_v5 = vpop.xlane.xlu2 %519  ;;  %v2575_v13 = vmax.f32 %v2463_v3, 0.0 }
 0x13f   : > { %743 = vst [vmem:[#allocation1 + $0x6] ss:$9 sm:$0xff] %v606_v14  ;;  %v557_v8 = vadd.f32 %v3892_v23, %v520_v5  ;;  %v2576_v14 = vmax.f32 %v2528_v6, 0.0  ;;  %v1837_v5 = vadd.f32 %v3969_v33, %v3653_v38 }
 0x140   : > { %744 = vst [vmem:[#allocation1 + $0x7] ss:$9 sm:$0xff] %v607_v21  ;;  %v3986_v7 = vpop.f32.mrf.mxu1  ;;  %v2607_v22 = vmul.f32 %v2575_v13, %v3661_v45  ;;  %v1881_v13 = vmax.f32 %v1772_v4, 0.0 }
 0x141   : > { %v624_v21 = vperm.slane %v557_v8, 0  ;;  %v625_v26 = vperm.slane %v557_v8, 1  ;;  %v626_v15 = vperm.slane %v557_v8, 2  ;;  %v2608_v16 = vmul.f32 %v2576_v14, %v3663_v46 }
 0x142   : > { %v3991_v11 = vpop.f32.mrf.mxu0  ;;  %v1882_v14 = vmax.f32 %v1837_v5, 0.0 }
 0x143   : > { %1282 = vadd.xlane.f32.xlu2 %v1281_v9 }
 0x147   : > { %v745_v30 = vld [vmem:[#allocation1] sm:$0xff] }
 0x148   : > { %746 = vst [vmem:[#allocation1] ss:$9 sm:$0xff] %v608_v10  ;;  %870 = vperm.xlu0 %3385, %v745_v30   ;;  %v3993_v12 = vpop.f32.mrf.mxu1  ;;  %v627_v10 = vperm.slane %v557_v8, 3  ;;  %v628_v30 = vperm.slane %v557_v8, 4 }
 0x149   : > { %747 = vst [vmem:[#allocation1 + $0x1] ss:$9 sm:$0xff] %v609_v17  ;;  %v2465_v17 = vpop.f32.mrf.mxu2 }
 0x14a   : > { %748 = vst [vmem:[#allocation1 + $0x2] ss:$9 sm:$0xff] %v610_v18  ;;  %v2530_v18 = vpop.f32.mrf.mxu3  ;;  %v3999_v57 = vpop.f32.mrf.mxu0  ;;  %v2466_v63 = vadd.f32 %v2465_v17, %v3651_v37  ;;  %v1879_v17 = vmax.f32 %v1769_v32, 0.0 }
 0x14b   : > { %749 = vst [vmem:[#allocation1 + $0x3] ss:$9 sm:$0xff] %v611_v19  ;;  %1940 = vadd.xlane.f32.xlu2 %v1939_v59  ;;  %v629_v19 = vperm.slane %v557_v8, 5  ;;  %v2531_v1 = vadd.f32 %v2530_v18, %v3653_v38  ;;  %v1913_v18 = vmul.f32 %v1881_v13, %v3661_v45 }
 0x14c   : > { %750 = vst [vmem:[#allocation1 + $0x4] ss:$9 sm:$0xff] %v612_v27  ;;  %v630_v27 = vperm.slane %v557_v8, 6  ;;  %v2577_v40 = vmax.f32 %v2466_v63, 0.0 }
 0x14d   : > { %751 = vst [vmem:[#allocation1 + $0x5] ss:$9 sm:$0xff] %v613_v20  ;;  %v631_v20 = vperm.slane %v557_v8, 7  ;;  %v2578_v36 = vmax.f32 %v2531_v1, 0.0 }
 0x14e   : > { %752 = vst [vmem:[#allocation1 + $0x6] ss:$9 sm:$0xff] %v614_v56  ;;  %v523_v56 = vpop.xlane.xlu0 %522 }
 0x14f   : > { %753 = vst [vmem:[#allocation1 + $0x7] ss:$9 sm:$0xff] %v615_v31  ;;  %v2639_v31 = vadd.f32 %v2608_v16, %v2607_v22  ;;  %v558_v35 = vadd.f32 %v3892_v23, %v523_v56  ;;  %v2610_v52 = vmul.f32 %v2578_v36, %v3663_v46 }
 0x150   : > { %v4001_v34 = vpop.f32.mrf.mxu1 }
 0x151   : > { %2640 = vadd.xlane.f32.xlu1 %v2639_v31  ;;  %v2468_v41 = vpop.f32.mrf.mxu2  ;;  %v632_v44 = vperm.slane %v558_v35, 0  ;;  %v633_v25 = vperm.slane %v558_v35, 1 }
 0x152   : > { %v2533_v24 = vpop.f32.mrf.mxu3  ;;  %v4010_v50 = vpop.f32.mrf.mxu0  ;;  %v2469_v3 = vadd.f32 %v2468_v41, %v3651_v37  ;;  %v1911_v41 = vmul.f32 %v1879_v17, %v3661_v45 }
 0x153   : > { %v2534_v6 = vadd.f32 %v2533_v24, %v3653_v38 }
 0x155   : > { %v2580_v22 = vmax.f32 %v2534_v6, 0.0 }
 0x156   : > { %v3982_v53 = vld [vmem:[#allocation1] sm:$0xff] }
 0x157   : > { %755 = vst [vmem:[#allocation1] ss:$9 sm:$0xff] %v616_v47  ;;  %v634_v47 = vperm.slane %v558_v35, 2 }
 0x158   : > { %756 = vst [vmem:[#allocation1 + $0x1] ss:$9 sm:$0xff] %v617_v48  ;;  %v2609_v48 = vmul.f32 %v2577_v40, %v3661_v45  ;;  %v4012_v51 = vpop.f32.mrf.mxu1 }
 0x159   : > { %757 = vst [vmem:[#allocation1 + $0x2] ss:$9 sm:$0xff] %v618_v60  ;;  %v635_v60 = vperm.slane %v558_v35, 3  ;;  %v4018_v42 = vpop.f32.mrf.mxu2 }
 0x15a   : > { %758 = vst [vmem:[#allocation1 + $0x3] ss:$9 sm:$0xff] %v619_v61  ;;  %v636_v61 = vperm.slane %v558_v35, 4  ;;  %v2642_v59 = vadd.f32 %v2610_v52, %v2609_v48  ;;  %v4020_v43 = vpop.f32.mrf.mxu3  ;;  %v4027_v33 = vpop.f32.mrf.mxu0 }
 0x15b   : > { %759 = vst [vmem:[#allocation1 + $0x4] ss:$9 sm:$0xff] %v620_v54  ;;  %v637_v54 = vperm.slane %v558_v35, 5 }
 0x15c   : > { %760 = vst [vmem:[#allocation1 + $0x5] ss:$9 sm:$0xff] %v621_v55  ;;  %v638_v55 = vperm.slane %v558_v35, 6  ;;  %2643 = vadd.xlane.f32.xlu1 %v2642_v59 }
 0x15d   : > { %761 = vst [vmem:[#allocation1 + $0x6] ss:$9 sm:$0xff] %v622_v58  ;;  %v639_v58 = vperm.slane %v558_v35, 7 }
 0x15e   : > { %762 = vst [vmem:[#allocation1 + $0x7] ss:$9 sm:$0xff] %v623_v62  ;;  %v526_v62 = vpop.xlane.xlu1 %525 }
 0x15f   : > { %v559_v8 = vadd.f32 %v3892_v23, %v526_v62 }
 0x161   : > { %v640_v16 = vperm.slane %v559_v8, 0  ;;  %v643_v31 = vperm.slane %v559_v8, 3  ;;  %v644_v63 = vperm.slane %v559_v8, 4  ;;  %v645_v35 = vperm.slane %v559_v8, 5 }
 0x162   : > { %v2539_v1 = vpop.f32.mrf.mxu3  ;;  %v646_v40 = vperm.slane %v559_v8, 6  ;;  %v1789_v48 = vpop.f32.mrf.mxu0 }
 0x165   : > { %v3997_v9 = vld [vmem:[#allocation1] sm:$0xff] }
 0x166   : > { %764 = vst [vmem:[#allocation1] ss:$9 sm:$0xff] %v624_v21  ;;  %v4029_v21 = vpop.f32.mrf.mxu1 }
 0x167   : > { %765 = vst [vmem:[#allocation1 + $0x1] ss:$9 sm:$0xff] %v625_v26  ;;  %v1834_v26 = vadd.f32 %v3965_v0, %v3653_v38  ;;  %v2474_v0 = vpop.f32.mrf.mxu2 }
 0x168   : > { %766 = vst [vmem:[#allocation1 + $0x2] ss:$9 sm:$0xff] %v626_v15  ;;  %v2579_v15 = vmax.f32 %v2469_v3, 0.0 }
 0x169   : > { %767 = vst [vmem:[#allocation1 + $0x3] ss:$9 sm:$0xff] %v627_v10  ;;  %v641_v10 = vperm.slane %v559_v8, 1  ;;  %v1880_v29 = vmax.f32 %v1834_v26, 0.0 }
 0x16a   : > { %768 = vst [vmem:[#allocation1 + $0x4] ss:$9 sm:$0xff] %v628_v30  ;;  %v1914_v30 = vmul.f32 %v1882_v14, %v3663_v46  ;;  %v4046_v59 = vpop.f32.mrf.mxu3 }
 0x16b   : > { %769 = vst [vmem:[#allocation1 + $0x5] ss:$9 sm:$0xff] %v629_v19  ;;  %v642_v19 = vperm.slane %v559_v8, 2  ;;  %v1912_v24 = vmul.f32 %v1880_v29, %v3663_v46  ;;  %v1843_v29 = vadd.f32 %v3993_v12, %v3653_v38 }
 0x16c   : > { %770 = vst [vmem:[#allocation1 + $0x6] ss:$9 sm:$0xff] %v630_v27  ;;  %v2611_v27 = vmul.f32 %v2579_v15, %v3661_v45  ;;  %v1948_v36 = vadd.f32 %v1914_v30, %v1913_v18  ;;  %v532_v30 = vpop.xlane.xlu0 %531 }
 0x16d   : > { %771 = vst [vmem:[#allocation1 + $0x7] ss:$9 sm:$0xff] %v631_v20  ;;  %v2612_v20 = vmul.f32 %v2580_v22, %v3663_v46 }
 0x16e   : > { %1949 = vadd.xlane.f32.xlu2 %v1948_v36  ;;  %v1854_v52 = vpop.f32.mrf.mxu1 }
 0x174   : > { %v4008_v49 = vld [vmem:[#allocation1] sm:$0xff] }
 0x175   : > { %773 = vst [vmem:[#allocation1] ss:$9 sm:$0xff] %v632_v44  ;;  %v647_v44 = vperm.slane %v559_v8, 7 }
 0x176   : > { %774 = vst [vmem:[#allocation1 + $0x1] ss:$9 sm:$0xff] %v633_v25  ;;  %v529_v25 = vpop.xlane.xlu2 %528 }
 0x177   : > { %775 = vst [vmem:[#allocation1 + $0x2] ss:$9 sm:$0xff] %v634_v47  ;;  %v2645_v47 = vadd.f32 %v2612_v20, %v2611_v27  ;;  %v4062_v20 = vpop.f32.mrf.mxu3 }
 0x178   : > { %776 = vst [vmem:[#allocation1 + $0x3] ss:$9 sm:$0xff] %v635_v60  ;;  %v1790_v60 = vadd.f32 %v1789_v48, %v3651_v37 }
 0x179   : > { %777 = vst [vmem:[#allocation1 + $0x4] ss:$9 sm:$0xff] %v636_v61  ;;  %2646 = vadd.xlane.f32.xlu1 %v2645_v47  ;;  %v1855_v61 = vadd.f32 %v1854_v52, %v3653_v38 }
 0x17a   : > { %778 = vst [vmem:[#allocation1 + $0x5] ss:$9 sm:$0xff] %v637_v54  ;;  %v560_v54 = vadd.f32 %v3892_v23, %v529_v25  ;;  %v1893_v62 = vmax.f32 %v1790_v60, 0.0 }
 0x17b   : > { %779 = vst [vmem:[#allocation1 + $0x6] ss:$9 sm:$0xff] %v638_v55  ;;  %v1945_v55 = vadd.f32 %v1912_v24, %v1911_v41  ;;  %v1894_v4 = vmax.f32 %v1855_v61, 0.0 }
 0x17c   : > { %780 = vst [vmem:[#allocation1 + $0x7] ss:$9 sm:$0xff] %v639_v58  ;;  %v4044_v58 = vpop.f32.mrf.mxu2  ;;  %v648_v5 = vperm.slane %v560_v54, 0  ;;  %v649_v3 = vperm.slane %v560_v54, 1  ;;  %v650_v6 = vperm.slane %v560_v54, 2  ;;  %v651_v32 = vperm.slane %v560_v54, 3 }
 0x17d   : > { %1946 = vadd.xlane.f32.xlu0 %v1945_v55  ;;  %v1925_v13 = vmul.f32 %v1893_v62, %v3661_v45  ;;  %v1926_v14 = vmul.f32 %v1894_v4, %v3663_v46  ;;  %v652_v26 = vperm.slane %v560_v54, 4  ;;  %v653_v15 = vperm.slane %v560_v54, 5  ;;  %v4077_v55 = vpop.f32.mrf.mxu1 }
 0x17e   : > { %v654_v22 = vperm.slane %v560_v54, 6  ;;  %v655_v17 = vperm.slane %v560_v54, 7  ;;  %v4075_v54 = vpop.f32.mrf.mxu0 }
 0x17f   : > { %v1966_v18 = vadd.f32 %v1926_v14, %v1925_v13 }
 0x181   : > { %1967 = vadd.xlane.f32.xlu1 %v1966_v18 }
 0x183   : > { %v4037_v56 = vld [vmem:[#allocation1] sm:$0xff] }
 0x184   : > { %782 = vst [vmem:[#allocation1] ss:$9 sm:$0xff] %v640_v16  ;;  %v1775_v16 = vadd.f32 %v3984_v39, %v3651_v37  ;;  %v4060_v27 = vpop.f32.mrf.mxu2  ;;  %v2475_v39 = vadd.f32 %v2474_v0, %v3651_v37 }
 0x185   : > { %783 = vst [vmem:[#allocation1 + $0x1] ss:$9 sm:$0xff] %v641_v10  ;;  %v1840_v10 = vadd.f32 %v3986_v7, %v3653_v38  ;;  %v2540_v7 = vadd.f32 %v2539_v1, %v3653_v38 }
 0x186   : > { %784 = vst [vmem:[#allocation1 + $0x2] ss:$9 sm:$0xff] %v642_v19  ;;  %v1778_v19 = vadd.f32 %v3991_v11, %v3651_v37  ;;  %v2583_v36 = vmax.f32 %v2475_v39, 0.0 }
 0x187   : > { %785 = vst [vmem:[#allocation1 + $0x3] ss:$9 sm:$0xff] %v643_v31  ;;  %v1883_v31 = vmax.f32 %v1775_v16, 0.0  ;;  %v2584_v12 = vmax.f32 %v2540_v7, 0.0  ;;  %v1846_v16 = vadd.f32 %v4001_v34, %v3653_v38 }
 0x188   : > { %786 = vst [vmem:[#allocation1 + $0x4] ss:$9 sm:$0xff] %v644_v63  ;;  %v1884_v63 = vmax.f32 %v1840_v10, 0.0  ;;  %v1885_v11 = vmax.f32 %v1778_v19, 0.0  ;;  %v2615_v48 = vmul.f32 %v2583_v36, %v3661_v45  ;;  %v2478_v10 = vadd.f32 %v4044_v58, %v3651_v37 }
 0x189   : > { %787 = vst [vmem:[#allocation1 + $0x5] ss:$9 sm:$0xff] %v645_v35  ;;  %v561_v35 = vadd.f32 %v3892_v23, %v532_v30  ;;  %v1915_v41 = vmul.f32 %v1883_v31, %v3661_v45  ;;  %v2616_v52 = vmul.f32 %v2584_v12, %v3663_v46  ;;  %v1888_v19 = vmax.f32 %v1846_v16, 0.0 }
 0x18a   : > { %788 = vst [vmem:[#allocation1 + $0x6] ss:$9 sm:$0xff] %v646_v40  ;;  %v1886_v40 = vmax.f32 %v1843_v29, 0.0  ;;  %v1916_v24 = vmul.f32 %v1884_v63, %v3663_v46  ;;  %v1917_v0 = vmul.f32 %v1885_v11, %v3661_v45  ;;  %v4092_v29 = vpop.f32.mrf.mxu0  ;;  %v2585_v39 = vmax.f32 %v2478_v10, 0.0 }
 0x18b   : > { %789 = vst [vmem:[#allocation1 + $0x7] ss:$9 sm:$0xff] %v647_v44  ;;  %v656_v44 = vperm.slane %v561_v35, 0  ;;  %v657_v25 = vperm.slane %v561_v35, 1  ;;  %v658_v47 = vperm.slane %v561_v35, 2  ;;  %v659_v61 = vperm.slane %v561_v35, 3 }
 0x18c   : > { %v1918_v1 = vmul.f32 %v1886_v40, %v3663_v46  ;;  %v660_v62 = vperm.slane %v561_v35, 4  ;;  %v4079_v4 = vpop.f32.mrf.mxu2  ;;  %v663_v14 = vperm.slane %v561_v35, 7  ;;  %v1849_v63 = vadd.f32 %v4012_v51, %v3653_v38 }
 0x18d   : > { %v1920_v40 = vmul.f32 %v1888_v19, %v3663_v46  ;;  %v2617_v12 = vmul.f32 %v2585_v39, %v3661_v45  ;;  %v1787_v16 = vadd.f32 %v4027_v33, %v3651_v37  ;;  %v1852_v10 = vadd.f32 %v4029_v21, %v3653_v38 }
 0x18e   : > { %v1954_v13 = vadd.f32 %v1918_v1, %v1917_v0 }
 0x18f   : > { %v1891_v39 = vmax.f32 %v1787_v16, 0.0 }
 0x190   : > { %1955 = vadd.xlane.f32.xlu2 %v1954_v13 }
 0x192   : > { %v4048_v8 = vld [vmem:[#allocation1] sm:$0xff] }
 0x193   : > { %791 = vst [vmem:[#allocation1] ss:$9 sm:$0xff] %v648_v5  ;;  %v4081_v5 = vpop.f32.mrf.mxu3 }
 0x194   : > { %792 = vst [vmem:[#allocation1 + $0x1] ss:$9 sm:$0xff] %v649_v3  ;;  %v1951_v3 = vadd.f32 %v1916_v24, %v1915_v41  ;;  %v4096_v7 = vpop.f32.mrf.mxu2 }
 0x195   : > { %793 = vst [vmem:[#allocation1 + $0x2] ss:$9 sm:$0xff] %v650_v6  ;;  %v661_v6 = vperm.slane %v561_v35, 5 }
 0x196   : > { %794 = vst [vmem:[#allocation1 + $0x3] ss:$9 sm:$0xff] %v651_v32  ;;  %v662_v32 = vperm.slane %v561_v35, 6  ;;  %1952 = vadd.xlane.f32.xlu0 %v1951_v3 }
 0x197   : > { %795 = vst [vmem:[#allocation1 + $0x4] ss:$9 sm:$0xff] %v652_v26  ;;  %v2651_v26 = vadd.f32 %v2616_v52, %v2615_v48  ;;  %v538_v52 = vpop.xlane.xlu2 %537 }
 0x198   : > { %796 = vst [vmem:[#allocation1 + $0x5] ss:$9 sm:$0xff] %v653_v15  ;;  %v535_v15 = vpop.xlane.xlu1 %534 }
 0x199   : > { %797 = vst [vmem:[#allocation1 + $0x6] ss:$9 sm:$0xff] %v654_v22  ;;  %v1781_v22 = vadd.f32 %v3999_v57, %v3651_v37  ;;  %2652 = vadd.xlane.f32.xlu1 %v2651_v26  ;;  %v562_v18 = vadd.f32 %v3892_v23, %v535_v15  ;;  %v4094_v57 = vpop.f32.mrf.mxu1  ;;  %v2481_v26 = vadd.f32 %v4060_v27, %v3651_v37 }
 0x19a   : > { %798 = vst [vmem:[#allocation1 + $0x7] ss:$9 sm:$0xff] %v655_v17  ;;  %v2543_v17 = vadd.f32 %v4046_v59, %v3653_v38  ;;  %v1784_v59 = vadd.f32 %v4010_v50, %v3651_v37  ;;  %v1890_v50 = vmax.f32 %v1849_v63, 0.0  ;;  %v2546_v15 = vadd.f32 %v4062_v20, %v3653_v38 }
 0x19b   : > { %v1887_v30 = vmax.f32 %v1781_v22, 0.0  ;;  %v4098_v31 = vpop.f32.mrf.mxu3  ;;  %v664_v58 = vperm.slane %v562_v18, 0  ;;  %v665_v35 = vperm.slane %v562_v18, 1  ;;  %v666_v36 = vperm.slane %v562_v18, 2 }
 0x19c   : > { %v2586_v34 = vmax.f32 %v2543_v17, 0.0  ;;  %v1889_v0 = vmax.f32 %v1784_v59, 0.0  ;;  %v669_v1 = vperm.slane %v562_v18, 5  ;;  %v670_v51 = vperm.slane %v562_v18, 6  ;;  %v4116_v13 = vpop.f32.mrf.mxu2 }
 0x19d   : > { %v1919_v11 = vmul.f32 %v1887_v30, %v3661_v45  ;;  %v671_v48 = vperm.slane %v562_v18, 7  ;;  %v563_v22 = vadd.f32 %v3892_v23, %v538_v52  ;;  %v2588_v30 = vmax.f32 %v2546_v15, 0.0 }
 0x19e   : > { %v2618_v41 = vmul.f32 %v2586_v34, %v3663_v46  ;;  %v1892_v34 = vmax.f32 %v1852_v10, 0.0  ;;  %v2549_v52 = vadd.f32 %v4081_v5, %v3653_v38 }
 0x19f   : > { %v672_v19 = vperm.slane %v563_v22, 0  ;;  %v673_v27 = vperm.slane %v563_v22, 1  ;;  %v676_v21 = vperm.slane %v563_v22, 4 }
 0x1a1   : > { %v4073_v60 = vld [vmem:[#allocation1] sm:$0xff]  ;;  %v4112_v3 = vpop.f32.mrf.mxu1 }
 0x1a2   : > { %800 = vst [vmem:[#allocation1] ss:$9 sm:$0xff] %v656_v44  ;;  %v667_v44 = vperm.slane %v562_v18, 3 }
 0x1a3   : > { %801 = vst [vmem:[#allocation1 + $0x1] ss:$9 sm:$0xff] %v657_v25  ;;  %v668_v25 = vperm.slane %v562_v18, 4  ;;  %v2587_v18 = vmax.f32 %v2481_v26, 0.0 }
 0x1a4   : > { %802 = vst [vmem:[#allocation1 + $0x2] ss:$9 sm:$0xff] %v658_v47  ;;  %v1957_v47 = vadd.f32 %v1920_v40, %v1919_v11  ;;  %v2492_v59 = vpop.f32.mrf.mxu2  ;;  %v541_v11 = vpop.xlane.xlu0 %540  ;;  %v2620_v40 = vmul.f32 %v2588_v30, %v3663_v46 }
 0x1a5   : > { %803 = vst [vmem:[#allocation1 + $0x3] ss:$9 sm:$0xff] %v659_v61  ;;  %v2654_v61 = vadd.f32 %v2618_v41, %v2617_v12  ;;  %v2619_v33 = vmul.f32 %v2587_v18, %v3661_v45  ;;  %v1923_v41 = vmul.f32 %v1891_v39, %v3661_v45  ;;  %v564_v16 = vadd.f32 %v3892_v23, %v541_v11 }
 0x1a6   : > { %804 = vst [vmem:[#allocation1 + $0x4] ss:$9 sm:$0xff] %v660_v62  ;;  %v4110_v62 = vpop.f32.mrf.mxu0  ;;  %1958 = vadd.xlane.f32.xlu0 %v1957_v47  ;;  %v2493_v47 = vadd.f32 %v2492_v59, %v3651_v37 }
 0x1a7   : > { %805 = vst [vmem:[#allocation1 + $0x5] ss:$9 sm:$0xff] %v661_v6  ;;  %v1921_v6 = vmul.f32 %v1889_v0, %v3661_v45  ;;  %2655 = vadd.xlane.f32.xlu1 %v2654_v61  ;;  %v678_v0 = vperm.slane %v563_v22, 6  ;;  %v680_v59 = vperm.slane %v564_v16, 0  ;;  %v681_v11 = vperm.slane %v564_v16, 1 }
 0x1a8   : > { %806 = vst [vmem:[#allocation1 + $0x6] ss:$9 sm:$0xff] %v662_v32  ;;  %v1922_v32 = vmul.f32 %v1890_v50, %v3663_v46  ;;  %v679_v50 = vperm.slane %v563_v22, 7  ;;  %v2595_v15 = vmax.f32 %v2493_v47, 0.0 }
 0x1a9   : > { %807 = vst [vmem:[#allocation1 + $0x7] ss:$9 sm:$0xff] %v663_v14  ;;  %v4118_v14 = vpop.f32.mrf.mxu3  ;;  %v1866_v12 = vpop.f32.mrf.mxu1 }
 0x1aa   : > { %v1960_v17 = vadd.f32 %v1922_v32, %v1921_v6  ;;  %v2657_v6 = vadd.f32 %v2620_v40, %v2619_v33 }
 0x1ac   : > { %1961 = vadd.xlane.f32.xlu2 %v1960_v17  ;;  %v2627_v17 = vmul.f32 %v2595_v15, %v3661_v45  ;;  %v4148_v30 = vpop.f32.mrf.mxu2 }
 0x1af   : > { %2658 = vadd.xlane.f32.xlu1 %v2657_v6 }
 0x1b0   : > { %v4108_v24 = vld [vmem:[#allocation1] sm:$0xff] }
 0x1b1   : > { %809 = vst [vmem:[#allocation1] ss:$9 sm:$0xff] %v664_v58  ;;  %v674_v58 = vperm.slane %v563_v22, 2  ;;  %v2557_v20 = vpop.f32.mrf.mxu3 }
 0x1b2   : > { %810 = vst [vmem:[#allocation1 + $0x1] ss:$9 sm:$0xff] %v665_v35  ;;  %v675_v35 = vperm.slane %v563_v22, 3  ;;  %v2558_v61 = vadd.f32 %v2557_v20, %v3653_v38 }
 0x1b3   : > { %811 = vst [vmem:[#allocation1 + $0x2] ss:$9 sm:$0xff] %v666_v36  ;;  %v1801_v36 = vpop.f32.mrf.mxu0 }
 0x1b4   : > { %812 = vst [vmem:[#allocation1 + $0x3] ss:$9 sm:$0xff] %v667_v44  ;;  %v1924_v44 = vmul.f32 %v1892_v34, %v3663_v46  ;;  %v2596_v10 = vmax.f32 %v2558_v61, 0.0  ;;  %v2590_v34 = vmax.f32 %v2549_v52, 0.0 }
 0x1b5   : > { %813 = vst [vmem:[#allocation1 + $0x4] ss:$9 sm:$0xff] %v668_v25  ;;  %v677_v25 = vperm.slane %v563_v22, 5 }
 0x1b6   : > { %814 = vst [vmem:[#allocation1 + $0x5] ss:$9 sm:$0xff] %v669_v1  ;;  %v1802_v1 = vadd.f32 %v1801_v36, %v3651_v37  ;;  %v1963_v22 = vadd.f32 %v1924_v44, %v1923_v41  ;;  %v2628_v18 = vmul.f32 %v2596_v10, %v3663_v46  ;;  %v2622_v40 = vmul.f32 %v2590_v34, %v3663_v46 }
 0x1b7   : > { %815 = vst [vmem:[#allocation1 + $0x6] ss:$9 sm:$0xff] %v670_v51  ;;  %v1867_v51 = vadd.f32 %v1866_v12, %v3653_v38  ;;  %v683_v12 = vperm.slane %v564_v16, 3  ;;  %v684_v41 = vperm.slane %v564_v16, 4  ;;  %v685_v44 = vperm.slane %v564_v16, 5 }
 0x1b8   : > { %816 = vst [vmem:[#allocation1 + $0x7] ss:$9 sm:$0xff] %v671_v48  ;;  %v2484_v48 = vadd.f32 %v4079_v4, %v3651_v37  ;;  %v1901_v32 = vmax.f32 %v1802_v1, 0.0  ;;  %1964 = vadd.xlane.f32.xlu0 %v1963_v22  ;;  %v2498_v1 = vpop.f32.mrf.mxu2 }
 0x1b9   : > { %v1902_v26 = vmax.f32 %v1867_v51, 0.0  ;;  %v2499_v52 = vadd.f32 %v2498_v1, %v3651_v37 }
 0x1ba   : > { %v1933_v4 = vmul.f32 %v1901_v32, %v3661_v45  ;;  %v2589_v39 = vmax.f32 %v2484_v48, 0.0  ;;  %v544_v48 = vpop.xlane.xlu1 %543 }
 0x1bb   : > { %v1934_v5 = vmul.f32 %v1902_v26, %v3663_v46  ;;  %v565_v6 = vadd.f32 %v3892_v23, %v544_v48  ;;  %v2599_v32 = vmax.f32 %v2499_v52, 0.0 }
 0x1bc   : > { %v2621_v33 = vmul.f32 %v2589_v39, %v3661_v45 }
 0x1bd   : > { %v1978_v20 = vadd.f32 %v1934_v5, %v1933_v4  ;;  %v688_v15 = vperm.slane %v565_v6, 0  ;;  %v689_v22 = vperm.slane %v565_v6, 1  ;;  %v2631_v10 = vmul.f32 %v2599_v32, %v3661_v45 }
 0x1be   : > { %v692_v39 = vperm.slane %v565_v6, 4  ;;  %v693_v34 = vperm.slane %v565_v6, 5 }
 0x1bf   : > { %v4129_v63 = vld [vmem:[#allocation1] sm:$0xff]  ;;  %1979 = vadd.xlane.f32.xlu2 %v1978_v20  ;;  %v695_v20 = vperm.slane %v565_v6, 7 }
 0x1c0   : > { %818 = vst [vmem:[#allocation1] ss:$9 sm:$0xff] %v672_v19  ;;  %v4150_v19 = vpop.f32.mrf.mxu3 }
 0x1c1   : > { %819 = vst [vmem:[#allocation1 + $0x1] ss:$9 sm:$0xff] %v673_v27  ;;  %v4152_v27 = vpop.xlane.xlu0 %1246 }
 0x1c2   : > { %820 = vst [vmem:[#allocation1 + $0x2] ss:$9 sm:$0xff] %v674_v58  ;;  %v3257_v58 = vld [vmem:[%s3550_s18 + $0x170] sm:$0xff] }
 0x1c3   : > { %821 = vst [vmem:[#allocation1 + $0x3] ss:$9 sm:$0xff] %v675_v35  ;;  %3273 = vmatmul.msk.f32.gmra.mxu0 %vm255_vm0, %v3257_v58  ;;  %3289 = vmatmul.msk.f32.gmra.mxu1 %vm255_vm0, %v3257_v58  ;;  %v2669_v35 = vadd.f32 %v2628_v18, %v2627_v17  ;;  %v691_v17 = vperm.slane %v565_v6, 3  ;;  %v694_v58 = vperm.slane %v565_v6, 6 }
 0x1c4   : > { %822 = vst [vmem:[#allocation1 + $0x4] ss:$9 sm:$0xff] %v676_v21  ;;  %v682_v21 = vperm.slane %v564_v16, 2 }
 0x1c5   : > { %823 = vst [vmem:[#allocation1 + $0x5] ss:$9 sm:$0xff] %v677_v25  ;;  %2670 = vadd.xlane.f32.xlu1 %v2669_v35  ;;  %v686_v25 = vperm.slane %v564_v16, 6 }
 0x1c6   : > { %824 = vst [vmem:[#allocation1 + $0x6] ss:$9 sm:$0xff] %v678_v0  ;;  %v2660_v0 = vadd.f32 %v2622_v40, %v2621_v33 }
 0x1c7   : > { %825 = vst [vmem:[#allocation1 + $0x7] ss:$9 sm:$0xff] %v679_v50  ;;  %v687_v50 = vperm.slane %v564_v16, 7  ;;  %v690_v16 = vperm.slane %v565_v6, 2 }
 0x1c8   : > { %v2563_v51 = vpop.f32.mrf.mxu3  ;;  %2661 = vadd.xlane.f32.xlu2 %v2660_v0 }
 0x1c9   : > { %v4161_v47 = vpop.xlane.xlu0 %1258  ;;  %v2564_v61 = vadd.f32 %v2563_v51, %v3653_v38 }
 0x1cb   : > { %v2600_v26 = vmax.f32 %v2564_v61, 0.0 }
 0x1cc   : > { %891 = vperm.xlu0 %3385, %v4108_v24   ;;  %v547_v24 = vpop.xlane.xlu2 %546 }
 0x1cd   : > { %v2632_v4 = vmul.f32 %v2600_v26, %v3663_v46  ;;  %v566_v35 = vadd.f32 %v3892_v23, %v547_v24 }
 0x1ce   : > { %v4159_v36 = vld [vmem:[#allocation1] sm:$0xff] }
 0x1cf   : > { %827 = vst [vmem:[#allocation1] ss:$9 sm:$0xff] %v680_v59  ;;  %v2675_v59 = vadd.f32 %v2632_v4, %v2631_v10  ;;  %v696_v33 = vperm.slane %v566_v35, 0  ;;  %v697_v40 = vperm.slane %v566_v35, 1  ;;  %v702_v0 = vperm.slane %v566_v35, 6 }
 0x1d0   : > { %828 = vst [vmem:[#allocation1 + $0x1] ss:$9 sm:$0xff] %v681_v11 }
 0x1d1   : > { %829 = vst [vmem:[#allocation1 + $0x2] ss:$9 sm:$0xff] %v682_v21  ;;  %v4171_v18 = vpop.xlane.xlu0 %1267  ;;  %2676 = vadd.xlane.f32.xlu2 %v2675_v59  ;;  %v698_v21 = vperm.slane %v566_v35, 2 }
 0x1d2   : > { %830 = vst [vmem:[#allocation1 + $0x3] ss:$9 sm:$0xff] %v683_v12 }
 0x1d3   : > { %831 = vst [vmem:[#allocation1 + $0x4] ss:$9 sm:$0xff] %v684_v41  ;;  %v699_v41 = vperm.slane %v566_v35, 3 }
 0x1d4   : > { %832 = vst [vmem:[#allocation1 + $0x5] ss:$9 sm:$0xff] %v685_v44  ;;  %v700_v44 = vperm.slane %v566_v35, 4 }
 0x1d5   : > { %833 = vst [vmem:[#allocation1 + $0x6] ss:$9 sm:$0xff] %v686_v25  ;;  %v701_v25 = vperm.slane %v566_v35, 5 }
 0x1d6   : > { %834 = vst [vmem:[#allocation1 + $0x7] ss:$9 sm:$0xff] %v687_v50  ;;  %v703_v50 = vperm.slane %v566_v35, 7 }
 0x1d9   : > { %v4174_v11 = vpop.xlane.xlu0 %1276 }
 0x1dd   : > { %v4169_v5 = vld [vmem:[#allocation1] sm:$0xff] }
 0x1de   : > { %836 = vst [vmem:[#allocation1] ss:$9 sm:$0xff] %v688_v15  ;;  %864 = vperm.xlu1 %3386, %v3934_v28  }
 0x1df   : > { %837 = vst [vmem:[#allocation1 + $0x1] ss:$9 sm:$0xff] %v689_v22  ;;  %v1241_v22 = vpop.xlane.xlu2 %1240 }
 0x1e0   : > { %838 = vst [vmem:[#allocation1 + $0x2] ss:$9 sm:$0xff] %v690_v16  ;;  %v2566_v16 = vpop.f32.mrf.mxu3  ;;  %v1287_v10 = vadd.f32 %v1241_v22, %v3892_v23 }
 0x1e1   : > { %839 = vst [vmem:[#allocation1 + $0x3] ss:$9 sm:$0xff] %v691_v17  ;;  %v550_v1 = vpop.xlane.xlu0 %549  ;;  %v2567_v17 = vadd.f32 %v2566_v16, %v3653_v38 }
 0x1e2   : > { %840 = vst [vmem:[#allocation1 + $0x4] ss:$9 sm:$0xff] %v692_v39  ;;  %v567_v28 = vadd.f32 %v3892_v23, %v550_v1  ;;  %v1319_v39 = vperm.slane %v1287_v10, 0  ;;  %v1322_v24 = vperm.slane %v1287_v10, 3  ;;  %v1323_v35 = vperm.slane %v1287_v10, 4 }
 0x1e3   : > { %841 = vst [vmem:[#allocation1 + $0x5] ss:$9 sm:$0xff] %v693_v34  ;;  %v1320_v34 = vperm.slane %v1287_v10, 1  ;;  %v2602_v59 = vmax.f32 %v2567_v17, 0.0 }
 0x1e4   : > { %842 = vst [vmem:[#allocation1 + $0x6] ss:$9 sm:$0xff] %v694_v58  ;;  %v704_v51 = vperm.slane %v567_v28, 0  ;;  %v705_v48 = vperm.slane %v567_v28, 1  ;;  %v706_v52 = vperm.slane %v567_v28, 2  ;;  %v707_v6 = vperm.slane %v567_v28, 3 }
 0x1e5   : > { %843 = vst [vmem:[#allocation1 + $0x7] ss:$9 sm:$0xff] %v695_v20  ;;  %v708_v32 = vperm.slane %v567_v28, 4  ;;  %v709_v26 = vperm.slane %v567_v28, 5  ;;  %v711_v15 = vperm.slane %v567_v28, 7  ;;  %v1321_v20 = vperm.slane %v1287_v10, 2 }
 0x1e6   : > { %876 = vperm.xlu1 %3386, %v3997_v9   ;;  %v710_v9 = vperm.slane %v567_v28, 6 }
 0x1e8   : > { %v2569_v17 = vpop.f32.mrf.mxu3 }
 0x1ec   : > { %v4177_v12 = vld [vmem:[#allocation1] sm:$0xff] }
 0x1ed   : > { %845 = vst [vmem:[#allocation1] ss:$9 sm:$0xff] %v696_v33  ;;  %v1324_v33 = vperm.slane %v1287_v10, 5 }
 0x1ee   : > { %846 = vst [vmem:[#allocation1 + $0x1] ss:$9 sm:$0xff] %v697_v40  ;;  %882 = vperm.xlu1 %3386, %v4037_v56   ;;  %v2501_v56 = vpop.f32.mrf.mxu2 }
 0x1ef   : > { %847 = vst [vmem:[#allocation1 + $0x2] ss:$9 sm:$0xff] %v698_v21  ;;  %v2502_v4 = vadd.f32 %v2501_v56, %v3651_v37  ;;  %v2634_v21 = vmul.f32 %v2602_v59, %v3663_v46  ;;  %v2570_v59 = vadd.f32 %v2569_v17, %v3653_v38 }
 0x1f0   : > { %848 = vst [vmem:[#allocation1 + $0x3] ss:$9 sm:$0xff] %v699_v41  ;;  %v1325_v41 = vperm.slane %v1287_v10, 6 }
 0x1f1   : > { %849 = vst [vmem:[#allocation1 + $0x4] ss:$9 sm:$0xff] %v700_v44  ;;  %v2601_v58 = vmax.f32 %v2502_v4, 0.0  ;;  %v1244_v44 = vpop.xlane.xlu1 %1243 }
 0x1f2   : > { %850 = vst [vmem:[#allocation1 + $0x5] ss:$9 sm:$0xff] %v701_v25 }
 0x1f3   : > { %851 = vst [vmem:[#allocation1 + $0x6] ss:$9 sm:$0xff] %v702_v0  ;;  %v2633_v40 = vmul.f32 %v2601_v58, %v3661_v45  ;;  %v1288_v0 = vadd.f32 %v1244_v44, %v3892_v23 }
 0x1f4   : > { %852 = vst [vmem:[#allocation1 + $0x7] ss:$9 sm:$0xff] %v703_v50 }
 0x1f5   : > { %v2678_v25 = vadd.f32 %v2634_v21, %v2633_v40  ;;  %v1327_v50 = vperm.slane %v1288_v0, 0  ;;  %v1328_v1 = vperm.slane %v1288_v0, 1 }
 0x1f6   : > { %888 = vperm.xlu1 %3386, %v4073_v60   ;;  %v2504_v4 = vpop.f32.mrf.mxu2 }
 0x1f7   : > { %2679 = vadd.xlane.f32.xlu2 %v2678_v25 }
 0x1fb   : > { %v853_v61 = vld [vmem:[#allocation1] sm:$0xff] }
 0x1fc   : > { %854 = vst [vmem:[#allocation1] ss:$9 sm:$0xff] %v704_v51  ;;  %v1329_v51 = vperm.slane %v1288_v0, 2 }
 0x1fd   : > { %855 = vst [vmem:[#allocation1 + $0x1] ss:$9 sm:$0xff] %v705_v48  ;;  %v1330_v48 = vperm.slane %v1288_v0, 3 }
 0x1fe   : > { %856 = vst [vmem:[#allocation1 + $0x2] ss:$9 sm:$0xff] %v706_v52  ;;  %897 = vperm.xlu1 %3386, %v4159_v36   ;;  %v1326_v36 = vperm.slane %v1287_v10, 7  ;;  %v1331_v52 = vperm.slane %v1288_v0, 4 }
 0x1ff   : > { %857 = vst [vmem:[#allocation1 + $0x3] ss:$9 sm:$0xff] %v707_v6  ;;  %v1333_v6 = vperm.slane %v1288_v0, 6 }
 0x200   : > { %858 = vst [vmem:[#allocation1 + $0x4] ss:$9 sm:$0xff] %v708_v32  ;;  %v1334_v32 = vperm.slane %v1288_v0, 7 }
 0x201   : > { %859 = vst [vmem:[#allocation1 + $0x5] ss:$9 sm:$0xff] %v709_v26  ;;  %v1289_v26 = vadd.f32 %v4152_v27, %v3892_v23  ;;  %v2505_v27 = vadd.f32 %v2504_v4, %v3651_v37 }
 0x202   : > { %860 = vst [vmem:[#allocation1 + $0x6] ss:$9 sm:$0xff] %v710_v9 }
 0x203   : > { %861 = vst [vmem:[#allocation1 + $0x7] ss:$9 sm:$0xff] %v711_v15  ;;  %v1335_v9 = vperm.slane %v1289_v26, 0  ;;  %v1336_v15 = vperm.slane %v1289_v26, 1  ;;  %v1337_v56 = vperm.slane %v1289_v26, 2  ;;  %v1338_v16 = vperm.slane %v1289_v26, 3 }
 0x204   : > { %v1339_v10 = vperm.slane %v1289_v26, 4  ;;  %v1342_v58 = vperm.slane %v1289_v26, 7 }
 0x206   : > { %906 = vperm.xlu1 %3386, %v853_v61   ;;  %v1332_v61 = vperm.slane %v1288_v0, 5 }
 0x20a   : > { %v4187_v60 = vld [vmem:[#allocation1] sm:$0xff] }
 0x20b   : > { %1447 = vst [vmem:[#allocation1] ss:$9 sm:$0xff] %v1319_v39  ;;  %v1340_v39 = vperm.slane %v1289_v26, 5 }
 0x20c   : > { %1449 = vst [vmem:[#allocation1 + $0x1] ss:$9 sm:$0xff] %v1320_v34  ;;  %v1341_v34 = vperm.slane %v1289_v26, 6 }
 0x20d   : > { %1451 = vst [vmem:[#allocation1 + $0x2] ss:$9 sm:$0xff] %v1321_v20  ;;  %v1250_v20 = vpop.xlane.xlu2 %1249 }
 0x20e   : > { %1453 = vst [vmem:[#allocation1 + $0x3] ss:$9 sm:$0xff] %v1322_v24  ;;  %v1290_v24 = vadd.f32 %v1250_v20, %v3892_v23 }
 0x20f   : > { %1455 = vst [vmem:[#allocation1 + $0x4] ss:$9 sm:$0xff] %v1323_v35  ;;  %v2603_v35 = vmax.f32 %v2505_v27, 0.0 }
 0x210   : > { %1457 = vst [vmem:[#allocation1 + $0x5] ss:$9 sm:$0xff] %v1324_v33  ;;  %v2604_v33 = vmax.f32 %v2570_v59, 0.0  ;;  %v1343_v40 = vperm.slane %v1290_v24, 0  ;;  %v1345_v25 = vperm.slane %v1290_v24, 2  ;;  %v1346_v0 = vperm.slane %v1290_v24, 3 }
 0x211   : > { %1459 = vst [vmem:[#allocation1 + $0x6] ss:$9 sm:$0xff] %v1325_v41  ;;  %v2635_v21 = vmul.f32 %v2603_v35, %v3661_v45 }
 0x212   : > { %1461 = vst [vmem:[#allocation1 + $0x7] ss:$9 sm:$0xff] %v1326_v36  ;;  %v2636_v41 = vmul.f32 %v2604_v33, %v3663_v46  ;;  %v1344_v36 = vperm.slane %v1290_v24, 1 }
 0x215   : > { %v1256_v17 = vpop.xlane.xlu2 %1255 }
 0x219   : > { %v1462_v28 = vld [vmem:[#allocation1] sm:$0xff] }
 0x21a   : > { %1463 = vst [vmem:[#allocation1] ss:$9 sm:$0xff] %v1327_v50  ;;  %1599 = vperm.xlu1 %3386, %v1462_v28   ;;  %v1347_v50 = vperm.slane %v1290_v24, 4  ;;  %v1348_v28 = vperm.slane %v1290_v24, 5 }
 0x21b   : > { %1464 = vst [vmem:[#allocation1 + $0x1] ss:$9 sm:$0xff] %v1328_v1  ;;  %v2681_v1 = vadd.f32 %v2636_v41, %v2635_v21 }
 0x21c   : > { %1465 = vst [vmem:[#allocation1 + $0x2] ss:$9 sm:$0xff] %v1329_v51  ;;  %v1349_v51 = vperm.slane %v1290_v24, 6 }
 0x21d   : > { %1466 = vst [vmem:[#allocation1 + $0x3] ss:$9 sm:$0xff] %v1330_v48  ;;  %2682 = vadd.xlane.f32.xlu2 %v2681_v1  ;;  %v1350_v48 = vperm.slane %v1290_v24, 7 }
 0x21e   : > { %1467 = vst [vmem:[#allocation1 + $0x4] ss:$9 sm:$0xff] %v1331_v52  ;;  %v1253_v52 = vpop.xlane.xlu1 %1252 }
 0x21f   : > { %1468 = vst [vmem:[#allocation1 + $0x5] ss:$9 sm:$0xff] %v1332_v61  ;;  %v1291_v61 = vadd.f32 %v1253_v52, %v3892_v23 }
 0x220   : > { %1469 = vst [vmem:[#allocation1 + $0x6] ss:$9 sm:$0xff] %v1333_v6 }
 0x221   : > { %1470 = vst [vmem:[#allocation1 + $0x7] ss:$9 sm:$0xff] %v1334_v32  ;;  %v1351_v6 = vperm.slane %v1291_v61, 0  ;;  %v1352_v32 = vperm.slane %v1291_v61, 1  ;;  %v1358_v4 = vperm.slane %v1291_v61, 7 }
 0x228   : > { %v4194_v22 = vld [vmem:[#allocation1] sm:$0xff] }
 0x229   : > { %1472 = vst [vmem:[#allocation1] ss:$9 sm:$0xff] %v1335_v9  ;;  %v1353_v9 = vperm.slane %v1291_v61, 2 }
 0x22a   : > { %1473 = vst [vmem:[#allocation1 + $0x1] ss:$9 sm:$0xff] %v1336_v15  ;;  %v1354_v15 = vperm.slane %v1291_v61, 3 }
 0x22b   : > { %1474 = vst [vmem:[#allocation1 + $0x2] ss:$9 sm:$0xff] %v1337_v56  ;;  %v1355_v56 = vperm.slane %v1291_v61, 4 }
 0x22c   : > { %1475 = vst [vmem:[#allocation1 + $0x3] ss:$9 sm:$0xff] %v1338_v16  ;;  %v1356_v16 = vperm.slane %v1291_v61, 5 }
 0x22d   : > { %1476 = vst [vmem:[#allocation1 + $0x4] ss:$9 sm:$0xff] %v1339_v10  ;;  %v1357_v10 = vperm.slane %v1291_v61, 6 }
 0x22e   : > { %1477 = vst [vmem:[#allocation1 + $0x5] ss:$9 sm:$0xff] %v1340_v39  ;;  %v1292_v39 = vadd.f32 %v1256_v17, %v3892_v23 }
 0x22f   : > { %1478 = vst [vmem:[#allocation1 + $0x6] ss:$9 sm:$0xff] %v1341_v34 }
 0x230   : > { %1479 = vst [vmem:[#allocation1 + $0x7] ss:$9 sm:$0xff] %v1342_v58  ;;  %v1359_v34 = vperm.slane %v1292_v39, 0  ;;  %v1360_v58 = vperm.slane %v1292_v39, 1  ;;  %v1361_v59 = vperm.slane %v1292_v39, 2  ;;  %v1362_v20 = vperm.slane %v1292_v39, 3 }
 0x231   : > { %v1363_v24 = vperm.slane %v1292_v39, 4  ;;  %v1364_v35 = vperm.slane %v1292_v39, 5  ;;  %v1365_v33 = vperm.slane %v1292_v39, 6 }
 0x235   : > { %867 = vperm.xlu2 %3387, %v3958_v2   ;;  %v1293_v2 = vadd.f32 %v4161_v47, %v3892_v23 }
 0x237   : > { %v4201_v44 = vld [vmem:[#allocation1] sm:$0xff]  ;;  %v1367_v21 = vperm.slane %v1293_v2, 0  ;;  %v1368_v41 = vperm.slane %v1293_v2, 1  ;;  %v1372_v1 = vperm.slane %v1293_v2, 5 }
 0x238   : > { %1481 = vst [vmem:[#allocation1] ss:$9 sm:$0xff] %v1343_v40  ;;  %v1366_v40 = vperm.slane %v1292_v39, 7  ;;  %v1861_v39 = vadd.f32 %v4094_v57, %v3653_v38 }
 0x239   : > { %1482 = vst [vmem:[#allocation1 + $0x1] ss:$9 sm:$0xff] %v1344_v36 }
 0x23a   : > { %1483 = vst [vmem:[#allocation1 + $0x2] ss:$9 sm:$0xff] %v1345_v25  ;;  %v1369_v25 = vperm.slane %v1293_v2, 2 }
 0x23b   : > { %1484 = vst [vmem:[#allocation1 + $0x3] ss:$9 sm:$0xff] %v1346_v0  ;;  %v1370_v0 = vperm.slane %v1293_v2, 3 }
 0x23c   : > { %1485 = vst [vmem:[#allocation1 + $0x4] ss:$9 sm:$0xff] %v1347_v50  ;;  %v1371_v50 = vperm.slane %v1293_v2, 4 }
 0x23d   : > { %1486 = vst [vmem:[#allocation1 + $0x5] ss:$9 sm:$0xff] %v1348_v28  ;;  %873 = vperm.xlu2 %3387, %v3982_v53   ;;  %v1373_v28 = vperm.slane %v1293_v2, 6  ;;  %v1374_v53 = vperm.slane %v1293_v2, 7 }
 0x23e   : > { %1487 = vst [vmem:[#allocation1 + $0x6] ss:$9 sm:$0xff] %v1349_v51  ;;  %v1262_v51 = vpop.xlane.xlu1 %1261 }
 0x23f   : > { %1488 = vst [vmem:[#allocation1 + $0x7] ss:$9 sm:$0xff] %v1350_v48  ;;  %v1294_v47 = vadd.f32 %v1262_v51, %v3892_v23 }
 0x241   : > { %v1376_v48 = vperm.slane %v1294_v47, 1  ;;  %v1377_v61 = vperm.slane %v1294_v47, 2 }
 0x245   : > { %879 = vperm.xlu2 %3387, %v4008_v49   ;;  %v1375_v49 = vperm.slane %v1294_v47, 0 }
 0x246   : > { %v1489_v26 = vld [vmem:[#allocation1] sm:$0xff] }
 0x247   : > { %1490 = vst [vmem:[#allocation1] ss:$9 sm:$0xff] %v1351_v6  ;;  %1608 = vperm.xlu1 %3386, %v1489_v26   ;;  %v1378_v6 = vperm.slane %v1294_v47, 3  ;;  %v1793_v26 = vadd.f32 %v4075_v54, %v3651_v37 }
 0x248   : > { %1491 = vst [vmem:[#allocation1 + $0x1] ss:$9 sm:$0xff] %v1352_v32  ;;  %v1379_v32 = vperm.slane %v1294_v47, 4 }
 0x249   : > { %1492 = vst [vmem:[#allocation1 + $0x2] ss:$9 sm:$0xff] %v1353_v9  ;;  %v1380_v9 = vperm.slane %v1294_v47, 5 }
 0x24a   : > { %1493 = vst [vmem:[#allocation1 + $0x3] ss:$9 sm:$0xff] %v1354_v15  ;;  %v1381_v15 = vperm.slane %v1294_v47, 6 }
 0x24b   : > { %1494 = vst [vmem:[#allocation1 + $0x4] ss:$9 sm:$0xff] %v1355_v56  ;;  %v1382_v56 = vperm.slane %v1294_v47, 7 }
 0x24c   : > { %1495 = vst [vmem:[#allocation1 + $0x5] ss:$9 sm:$0xff] %v1356_v16  ;;  %v1265_v16 = vpop.xlane.xlu2 %1264 }
 0x24d   : > { %1496 = vst [vmem:[#allocation1 + $0x6] ss:$9 sm:$0xff] %v1357_v10  ;;  %885 = vperm.xlu2 %3387, %v4048_v8   ;;  %v1858_v8 = vadd.f32 %v4077_v55, %v3653_v38  ;;  %v1796_v55 = vadd.f32 %v4092_v29, %v3651_v37 }
 0x24e   : > { %1497 = vst [vmem:[#allocation1 + $0x7] ss:$9 sm:$0xff] %v1358_v4  ;;  %v1295_v4 = vadd.f32 %v1265_v16, %v3892_v23 }
 0x24f   : > { %v1896_v10 = vmax.f32 %v1858_v8, 0.0 }
 0x250   : > { %v1388_v29 = vperm.slane %v1295_v4, 5 }
 0x251   : > { %v1928_v17 = vmul.f32 %v1896_v10, %v3663_v46 }
 0x255   : > { %v4206_v27 = vld [vmem:[#allocation1] sm:$0xff]  ;;  %894 = vperm.xlu2 %3387, %v4129_v63   ;;  %v1895_v63 = vmax.f32 %v1793_v26, 0.0 }
 0x256   : > { %1499 = vst [vmem:[#allocation1] ss:$9 sm:$0xff] %v1359_v34  ;;  %v1383_v34 = vperm.slane %v1295_v4, 0 }
 0x257   : > { %1500 = vst [vmem:[#allocation1 + $0x1] ss:$9 sm:$0xff] %v1360_v58  ;;  %v1927_v54 = vmul.f32 %v1895_v63, %v3661_v45  ;;  %v1384_v58 = vperm.slane %v1295_v4, 1  ;;  %v1274_v63 = vpop.xlane.xlu2 %1273 }
 0x258   : > { %1501 = vst [vmem:[#allocation1 + $0x2] ss:$9 sm:$0xff] %v1361_v59  ;;  %v1298_v10 = vadd.f32 %v1274_v63, %v3892_v23 }
 0x259   : > { %1502 = vst [vmem:[#allocation1 + $0x3] ss:$9 sm:$0xff] %v1362_v20  ;;  %v1897_v20 = vmax.f32 %v1796_v55, 0.0 }
 0x25a   : > { %1503 = vst [vmem:[#allocation1 + $0x4] ss:$9 sm:$0xff] %v1363_v24  ;;  %v1898_v24 = vmax.f32 %v1861_v39, 0.0  ;;  %v1410_v55 = vperm.slane %v1298_v10, 3  ;;  %v1411_v39 = vperm.slane %v1298_v10, 4 }
 0x25b   : > { %1504 = vst [vmem:[#allocation1 + $0x5] ss:$9 sm:$0xff] %v1364_v35  ;;  %v1385_v35 = vperm.slane %v1295_v4, 2  ;;  %v1929_v57 = vmul.f32 %v1897_v20, %v3661_v45  ;;  %v1414_v20 = vperm.slane %v1298_v10, 7 }
 0x25c   : > { %1505 = vst [vmem:[#allocation1 + $0x6] ss:$9 sm:$0xff] %v1365_v33  ;;  %v1386_v33 = vperm.slane %v1295_v4, 3  ;;  %v1930_v2 = vmul.f32 %v1898_v24, %v3663_v46  ;;  %v1299_v24 = vadd.f32 %v4174_v11, %v3892_v23 }
 0x25d   : > { %1506 = vst [vmem:[#allocation1 + $0x7] ss:$9 sm:$0xff] %v1366_v40  ;;  %903 = vperm.xlu2 %3387, %v4177_v12   ;;  %v1969_v12 = vadd.f32 %v1928_v17, %v1927_v54  ;;  %v1387_v40 = vperm.slane %v1295_v4, 4  ;;  %v1408_v54 = vperm.slane %v1298_v10, 1 }
 0x25f   : > { %1970 = vadd.xlane.f32.xlu0 %v1969_v12  ;;  %v1416_v12 = vperm.slane %v1299_v24, 1 }
 0x264   : > { %v4211_v36 = vld [vmem:[#allocation1] sm:$0xff] }
 0x265   : > { %1508 = vst [vmem:[#allocation1] ss:$9 sm:$0xff] %v1367_v21  ;;  %1602 = vperm.xlu2 %3387, %v4194_v22   ;;  %v1389_v21 = vperm.slane %v1295_v4, 6  ;;  %v1972_v22 = vadd.f32 %v1930_v2, %v1929_v57  ;;  %v1419_v57 = vperm.slane %v1299_v24, 4  ;;  %v1420_v2 = vperm.slane %v1299_v24, 5 }
 0x266   : > { %1509 = vst [vmem:[#allocation1 + $0x1] ss:$9 sm:$0xff] %v1368_v41  ;;  %v1390_v41 = vperm.slane %v1295_v4, 7  ;;  %v1407_v4 = vperm.slane %v1298_v10, 0 }
 0x267   : > { %1510 = vst [vmem:[#allocation1 + $0x2] ss:$9 sm:$0xff] %v1369_v25  ;;  %v3258_v25 = vld [vmem:[%s3550_s18 + $0x178] sm:$0xff]  ;;  %1973 = vadd.xlane.f32.xlu0 %v1972_v22 }
 0x268   : > { %1511 = vst [vmem:[#allocation1 + $0x3] ss:$9 sm:$0xff] %v1370_v0  ;;  %3274 = vmatmul.msk.f32.gmra.mxu0 %vm255_vm0, %v3258_v25  ;;  %3290 = vmatmul.msk.f32.gmra.mxu1 %vm255_vm0, %v3258_v25  ;;  %v1296_v0 = vadd.f32 %v4171_v18, %v3892_v23  ;;  %v1271_v18 = vpop.xlane.xlu1 %1270  ;;  %v3307_v22 = vld [vmem:[%s3550_s18 + $0x1f8] sm:$0xff] }
 0x269   : > { %1512 = vst [vmem:[#allocation1 + $0x4] ss:$9 sm:$0xff] %v1371_v50  ;;  %3323 = vmatmul.msk.f32.gmra.mxu2 %vm255_vm0, %v3307_v22  ;;  %3339 = vmatmul.msk.f32.gmra.mxu3 %vm255_vm0, %v3307_v22 }
 0x26a   : > { %1513 = vst [vmem:[#allocation1 + $0x5] ss:$9 sm:$0xff] %v1372_v1  ;;  %v1391_v50 = vperm.slane %v1296_v0, 0  ;;  %v1392_v1 = vperm.slane %v1296_v0, 1  ;;  %v1394_v51 = vperm.slane %v1296_v0, 3  ;;  %v1395_v47 = vperm.slane %v1296_v0, 4 }
 0x26b   : > { %1514 = vst [vmem:[#allocation1 + $0x6] ss:$9 sm:$0xff] %v1373_v28 }
 0x26c   : > { %1515 = vst [vmem:[#allocation1 + $0x7] ss:$9 sm:$0xff] %v1374_v53  ;;  %v1393_v53 = vperm.slane %v1296_v0, 2 }
 0x26d   : > { %1614 = vperm.xlu2 %3387, %v4211_v36   ;;  %v1297_v36 = vadd.f32 %v1271_v18, %v3892_v23 }
 0x26f   : > { %v1401_v26 = vperm.slane %v1297_v36, 2  ;;  %v1402_v8 = vperm.slane %v1297_v36, 3  ;;  %v1406_v16 = vperm.slane %v1297_v36, 7 }
 0x270   : > { %v1280_v25 = vpop.xlane.xlu1 %1279 }
 0x271   : > { %v1300_v11 = vadd.f32 %v1280_v25, %v3892_v23 }
 0x273   : > { %v1516_v52 = vld [vmem:[#allocation1] sm:$0xff] }
 0x274   : > { %1517 = vst [vmem:[#allocation1] ss:$9 sm:$0xff] %v1375_v49  ;;  %1617 = vperm.xlu1 %3386, %v1516_v52   ;;  %v1396_v49 = vperm.slane %v1296_v0, 5  ;;  %v1398_v52 = vperm.slane %v1296_v0, 7 }
 0x275   : > { %1518 = vst [vmem:[#allocation1 + $0x1] ss:$9 sm:$0xff] %v1376_v48  ;;  %v1397_v48 = vperm.slane %v1296_v0, 6  ;;  %v1423_v0 = vperm.slane %v1300_v11, 0 }
 0x276   : > { %1519 = vst [vmem:[#allocation1 + $0x2] ss:$9 sm:$0xff] %v1377_v61  ;;  %v1399_v61 = vperm.slane %v1297_v36, 0 }
 0x277   : > { %1520 = vst [vmem:[#allocation1 + $0x3] ss:$9 sm:$0xff] %v1378_v6  ;;  %v1400_v6 = vperm.slane %v1297_v36, 1 }
 0x278   : > { %1521 = vst [vmem:[#allocation1 + $0x4] ss:$9 sm:$0xff] %v1379_v32 }
 0x279   : > { %1522 = vst [vmem:[#allocation1 + $0x5] ss:$9 sm:$0xff] %v1380_v9  ;;  %v1403_v9 = vperm.slane %v1297_v36, 4 }
 0x27a   : > { %1523 = vst [vmem:[#allocation1 + $0x6] ss:$9 sm:$0xff] %v1381_v15  ;;  %v1404_v15 = vperm.slane %v1297_v36, 5 }
 0x27b   : > { %1524 = vst [vmem:[#allocation1 + $0x7] ss:$9 sm:$0xff] %v1382_v56  ;;  %900 = vperm.xlu0 %3385, %v4169_v5   ;;  %v1405_v56 = vperm.slane %v1297_v36, 6  ;;  %v1409_v5 = vperm.slane %v1298_v10, 2 }
 0x282   : > { %v4229_v59 = vld [vmem:[#allocation1] sm:$0xff] }
 0x283   : > { %1526 = vst [vmem:[#allocation1] ss:$9 sm:$0xff] %v1383_v34  ;;  %v1412_v34 = vperm.slane %v1298_v10, 5 }
 0x284   : > { %1527 = vst [vmem:[#allocation1 + $0x1] ss:$9 sm:$0xff] %v1384_v58  ;;  %v1413_v58 = vperm.slane %v1298_v10, 6 }
 0x285   : > { %1528 = vst [vmem:[#allocation1 + $0x2] ss:$9 sm:$0xff] %v1385_v35  ;;  %v1415_v35 = vperm.slane %v1299_v24, 0 }
 0x286   : > { %1529 = vst [vmem:[#allocation1 + $0x3] ss:$9 sm:$0xff] %v1386_v33 }
 0x287   : > { %1530 = vst [vmem:[#allocation1 + $0x4] ss:$9 sm:$0xff] %v1387_v40  ;;  %v1417_v40 = vperm.slane %v1299_v24, 2 }
 0x288   : > { %1531 = vst [vmem:[#allocation1 + $0x5] ss:$9 sm:$0xff] %v1388_v29  ;;  %v1418_v29 = vperm.slane %v1299_v24, 3 }
 0x289   : > { %1532 = vst [vmem:[#allocation1 + $0x6] ss:$9 sm:$0xff] %v1389_v21  ;;  %v1421_v21 = vperm.slane %v1299_v24, 6 }
 0x28a   : > { %1533 = vst [vmem:[#allocation1 + $0x7] ss:$9 sm:$0xff] %v1390_v41  ;;  %v1422_v41 = vperm.slane %v1299_v24, 7 }
 0x291   : > { %v1534_v28 = vld [vmem:[#allocation1] sm:$0xff] }
 0x292   : > { %1535 = vst [vmem:[#allocation1] ss:$9 sm:$0xff] %v1391_v50  ;;  %1623 = vperm.xlu2 %3387, %v1534_v28   ;;  %v1424_v50 = vperm.slane %v1300_v11, 1  ;;  %v1425_v28 = vperm.slane %v1300_v11, 2 }
 0x293   : > { %1536 = vst [vmem:[#allocation1 + $0x1] ss:$9 sm:$0xff] %v1392_v1 }
 0x294   : > { %1537 = vst [vmem:[#allocation1 + $0x2] ss:$9 sm:$0xff] %v1393_v53  ;;  %v1426_v53 = vperm.slane %v1300_v11, 3 }
 0x295   : > { %1538 = vst [vmem:[#allocation1 + $0x3] ss:$9 sm:$0xff] %v1394_v51  ;;  %v1427_v51 = vperm.slane %v1300_v11, 4 }
 0x296   : > { %1539 = vst [vmem:[#allocation1 + $0x4] ss:$9 sm:$0xff] %v1395_v47  ;;  %v1428_v47 = vperm.slane %v1300_v11, 5 }
 0x297   : > { %1540 = vst [vmem:[#allocation1 + $0x5] ss:$9 sm:$0xff] %v1396_v49  ;;  %v1429_v49 = vperm.slane %v1300_v11, 6 }
 0x298   : > { %1541 = vst [vmem:[#allocation1 + $0x6] ss:$9 sm:$0xff] %v1397_v48  ;;  %v1430_v48 = vperm.slane %v1300_v11, 7 }
 0x299   : > { %1542 = vst [vmem:[#allocation1 + $0x7] ss:$9 sm:$0xff] %v1398_v52  ;;  %v1283_v52 = vpop.xlane.xlu2 %1282 }
 0x29a   : > { %v1301_v18 = vadd.f32 %v1283_v52, %v3892_v23 }
 0x29c   : > { %v1431_v36 = vperm.slane %v1301_v18, 0 }
 0x2a0   : > { %v1543_v32 = vld [vmem:[#allocation1] sm:$0xff] }
 0x2a1   : > { %1544 = vst [vmem:[#allocation1] ss:$9 sm:$0xff] %v1399_v61  ;;  %1626 = vperm.xlu1 %3386, %v1543_v32   ;;  %v1432_v61 = vperm.slane %v1301_v18, 1  ;;  %v1433_v32 = vperm.slane %v1301_v18, 2 }
 0x2a2   : > { %1545 = vst [vmem:[#allocation1 + $0x1] ss:$9 sm:$0xff] %v1400_v6 }
 0x2a3   : > { %1546 = vst [vmem:[#allocation1 + $0x2] ss:$9 sm:$0xff] %v1401_v26  ;;  %v1434_v26 = vperm.slane %v1301_v18, 3 }
 0x2a4   : > { %1547 = vst [vmem:[#allocation1 + $0x3] ss:$9 sm:$0xff] %v1402_v8  ;;  %v1435_v8 = vperm.slane %v1301_v18, 4 }
 0x2a5   : > { %1548 = vst [vmem:[#allocation1 + $0x4] ss:$9 sm:$0xff] %v1403_v9  ;;  %v1436_v9 = vperm.slane %v1301_v18, 5 }
 0x2a6   : > { %1549 = vst [vmem:[#allocation1 + $0x5] ss:$9 sm:$0xff] %v1404_v15  ;;  %v1437_v15 = vperm.slane %v1301_v18, 6 }
 0x2a7   : > { %1550 = vst [vmem:[#allocation1 + $0x6] ss:$9 sm:$0xff] %v1405_v56  ;;  %v1438_v56 = vperm.slane %v1301_v18, 7 }
 0x2a8   : > { %1551 = vst [vmem:[#allocation1 + $0x7] ss:$9 sm:$0xff] %v1406_v16  ;;  %v1286_v16 = vpop.xlane.xlu0 %1285 }
 0x2a9   : > { %v1302_v63 = vadd.f32 %v1286_v16, %v3892_v23 }
 0x2ab   : > { %v1439_v10 = vperm.slane %v1302_v63, 0  ;;  %v1445_v24 = vperm.slane %v1302_v63, 6 }
 0x2af   : > { %v4243_v17 = vld [vmem:[#allocation1] sm:$0xff] }
 0x2b0   : > { %1553 = vst [vmem:[#allocation1] ss:$9 sm:$0xff] %v1407_v4  ;;  %v1440_v4 = vperm.slane %v1302_v63, 1 }
 0x2b1   : > { %1554 = vst [vmem:[#allocation1 + $0x1] ss:$9 sm:$0xff] %v1408_v54 }
 0x2b2   : > { %1555 = vst [vmem:[#allocation1 + $0x2] ss:$9 sm:$0xff] %v1409_v5  ;;  %v1441_v5 = vperm.slane %v1302_v63, 2 }
 0x2b3   : > { %1556 = vst [vmem:[#allocation1 + $0x3] ss:$9 sm:$0xff] %v1410_v55  ;;  %v1799_v55 = vadd.f32 %v4110_v62, %v3651_v37 }
 0x2b4   : > { %1557 = vst [vmem:[#allocation1 + $0x4] ss:$9 sm:$0xff] %v1411_v39  ;;  %v1864_v39 = vadd.f32 %v4112_v3, %v3653_v38 }
 0x2b5   : > { %1558 = vst [vmem:[#allocation1 + $0x5] ss:$9 sm:$0xff] %v1412_v34  ;;  %v1442_v34 = vperm.slane %v1302_v63, 3 }
 0x2b6   : > { %1559 = vst [vmem:[#allocation1 + $0x6] ss:$9 sm:$0xff] %v1413_v58  ;;  %v1443_v58 = vperm.slane %v1302_v63, 4 }
 0x2b7   : > { %1560 = vst [vmem:[#allocation1 + $0x7] ss:$9 sm:$0xff] %v1414_v20  ;;  %v1444_v20 = vperm.slane %v1302_v63, 5 }
 0x2be   : > { %v1561_v33 = vld [vmem:[#allocation1] sm:$0xff] }
 0x2bf   : > { %1562 = vst [vmem:[#allocation1] ss:$9 sm:$0xff] %v1415_v35  ;;  %1632 = vperm.xlu2 %3387, %v1561_v33   ;;  %v1899_v35 = vmax.f32 %v1799_v55, 0.0  ;;  %v1446_v33 = vperm.slane %v1302_v63, 7 }
 0x2c0   : > { %1563 = vst [vmem:[#allocation1 + $0x1] ss:$9 sm:$0xff] %v1416_v12  ;;  %v1900_v12 = vmax.f32 %v1864_v39, 0.0 }
 0x2c1   : > { %1564 = vst [vmem:[#allocation1 + $0x2] ss:$9 sm:$0xff] %v1417_v40  ;;  %v1941_v40 = vpop.xlane.xlu2 %1940  ;;  %v1931_v62 = vmul.f32 %v1899_v35, %v3661_v45 }
 0x2c2   : > { %1565 = vst [vmem:[#allocation1 + $0x3] ss:$9 sm:$0xff] %v1418_v29  ;;  %v1932_v29 = vmul.f32 %v1900_v12, %v3663_v46  ;;  %v1987_v3 = vadd.f32 %v1941_v40, %v3892_v23 }
 0x2c3   : > { %1566 = vst [vmem:[#allocation1 + $0x4] ss:$9 sm:$0xff] %v1419_v57 }
 0x2c4   : > { %1567 = vst [vmem:[#allocation1 + $0x5] ss:$9 sm:$0xff] %v1420_v2  ;;  %v2019_v57 = vperm.slane %v1987_v3, 0  ;;  %v1975_v2 = vadd.f32 %v1932_v29, %v1931_v62  ;;  %v2021_v25 = vperm.slane %v1987_v3, 2  ;;  %v2022_v11 = vperm.slane %v1987_v3, 3 }
 0x2c5   : > { %1568 = vst [vmem:[#allocation1 + $0x6] ss:$9 sm:$0xff] %v1421_v21  ;;  %v2023_v22 = vperm.slane %v1987_v3, 4 }
 0x2c6   : > { %1569 = vst [vmem:[#allocation1 + $0x7] ss:$9 sm:$0xff] %v1422_v41  ;;  %v2020_v41 = vperm.slane %v1987_v3, 1  ;;  %1976 = vadd.xlane.f32.xlu0 %v1975_v2 }
 0x2c9   : > { %v1950_v62 = vpop.xlane.xlu2 %1949 }
 0x2ca   : > { %v1990_v29 = vadd.f32 %v1950_v62, %v3892_v23 }
 0x2cd   : > { %v1570_v1 = vld [vmem:[#allocation1] sm:$0xff] }
 0x2ce   : > { %1571 = vst [vmem:[#allocation1] ss:$9 sm:$0xff] %v1423_v0  ;;  %1635 = vperm.xlu1 %3386, %v1570_v1   ;;  %v2024_v0 = vperm.slane %v1987_v3, 5  ;;  %v2026_v1 = vperm.slane %v1987_v3, 7 }
 0x2cf   : > { %1572 = vst [vmem:[#allocation1 + $0x1] ss:$9 sm:$0xff] %v1424_v50  ;;  %v2025_v50 = vperm.slane %v1987_v3, 6  ;;  %v2043_v3 = vperm.slane %v1990_v29, 0 }
 0x2d0   : > { %1573 = vst [vmem:[#allocation1 + $0x2] ss:$9 sm:$0xff] %v1425_v28  ;;  %v1944_v28 = vpop.xlane.xlu1 %1943 }
 0x2d1   : > { %1574 = vst [vmem:[#allocation1 + $0x3] ss:$9 sm:$0xff] %v1426_v53  ;;  %v1804_v53 = vpop.f32.mrf.mxu0 }
 0x2d2   : > { %1575 = vst [vmem:[#allocation1 + $0x4] ss:$9 sm:$0xff] %v1427_v51  ;;  %v1869_v51 = vpop.f32.mrf.mxu1 }
 0x2d3   : > { %1576 = vst [vmem:[#allocation1 + $0x5] ss:$9 sm:$0xff] %v1428_v47  ;;  %v1805_v47 = vadd.f32 %v1804_v53, %v3651_v37 }
 0x2d4   : > { %1577 = vst [vmem:[#allocation1 + $0x6] ss:$9 sm:$0xff] %v1429_v49  ;;  %v1870_v49 = vadd.f32 %v1869_v51, %v3653_v38 }
 0x2d5   : > { %1578 = vst [vmem:[#allocation1 + $0x7] ss:$9 sm:$0xff] %v1430_v48  ;;  %v1988_v48 = vadd.f32 %v1944_v28, %v3892_v23  ;;  %v1903_v52 = vmax.f32 %v1805_v47, 0.0 }
 0x2d6   : > { %v1904_v18 = vmax.f32 %v1870_v49, 0.0  ;;  %v2472_v49 = vadd.f32 %v4018_v42, %v3651_v37 }
 0x2d7   : > { %v2030_v16 = vperm.slane %v1988_v48, 3  ;;  %v2031_v63 = vperm.slane %v1988_v48, 4 }
 0x2dc   : > { %v4252_v6 = vld [vmem:[#allocation1] sm:$0xff] }
 0x2dd   : > { %1580 = vst [vmem:[#allocation1] ss:$9 sm:$0xff] %v1431_v36  ;;  %v1935_v36 = vmul.f32 %v1903_v52, %v3661_v45 }
 0x2de   : > { %1581 = vst [vmem:[#allocation1 + $0x1] ss:$9 sm:$0xff] %v1432_v61  ;;  %v1936_v61 = vmul.f32 %v1904_v18, %v3663_v46 }
 0x2df   : > { %1582 = vst [vmem:[#allocation1 + $0x2] ss:$9 sm:$0xff] %v1433_v32  ;;  %v4267_v32 = vpop.permute.xlu0 %870 }
 0x2e0   : > { %1583 = vst [vmem:[#allocation1 + $0x3] ss:$9 sm:$0xff] %v1434_v26  ;;  %v2027_v26 = vperm.slane %v1988_v48, 0 }
 0x2e1   : > { %1584 = vst [vmem:[#allocation1 + $0x4] ss:$9 sm:$0xff] %v1435_v8 }
 0x2e2   : > { %1585 = vst [vmem:[#allocation1 + $0x5] ss:$9 sm:$0xff] %v1436_v9  ;;  %v2028_v9 = vperm.slane %v1988_v48, 1 }
 0x2e3   : > { %1586 = vst [vmem:[#allocation1 + $0x6] ss:$9 sm:$0xff] %v1437_v15  ;;  %v1981_v15 = vadd.f32 %v1936_v61, %v1935_v36  ;;  %v1956_v61 = vpop.xlane.xlu2 %1955 }
 0x2e4   : > { %1587 = vst [vmem:[#allocation1 + $0x7] ss:$9 sm:$0xff] %v1438_v56  ;;  %v2029_v56 = vperm.slane %v1988_v48, 2 }
 0x2e5   : > { %1982 = vadd.xlane.f32.xlu0 %v1981_v15  ;;  %v2581_v15 = vmax.f32 %v2472_v49, 0.0 }
 0x2e7   : > { %v2613_v42 = vmul.f32 %v2581_v15, %v3661_v45 }
 0x2eb   : > { %v1588_v54 = vld [vmem:[#allocation1] sm:$0xff] }
 0x2ec   : > { %1589 = vst [vmem:[#allocation1] ss:$9 sm:$0xff] %v1439_v10  ;;  %1641 = vperm.xlu1 %3386, %v1588_v54   ;;  %v2032_v10 = vperm.slane %v1988_v48, 5  ;;  %v2034_v54 = vperm.slane %v1988_v48, 7 }
 0x2ed   : > { %1590 = vst [vmem:[#allocation1 + $0x1] ss:$9 sm:$0xff] %v1440_v4  ;;  %v2033_v4 = vperm.slane %v1988_v48, 6  ;;  %v2537_v48 = vadd.f32 %v4020_v43, %v3653_v38 }
 0x2ee   : > { %1591 = vst [vmem:[#allocation1 + $0x2] ss:$9 sm:$0xff] %v1441_v5  ;;  %v1947_v5 = vpop.xlane.xlu0 %1946 }
 0x2ef   : > { %1592 = vst [vmem:[#allocation1 + $0x3] ss:$9 sm:$0xff] %v1442_v34  ;;  %v1989_v55 = vadd.f32 %v1947_v5, %v3892_v23 }
 0x2f0   : > { %1593 = vst [vmem:[#allocation1 + $0x4] ss:$9 sm:$0xff] %v1443_v58 }
 0x2f1   : > { %1594 = vst [vmem:[#allocation1 + $0x5] ss:$9 sm:$0xff] %v1444_v20  ;;  %v2035_v39 = vperm.slane %v1989_v55, 0  ;;  %v2036_v58 = vperm.slane %v1989_v55, 1  ;;  %v2037_v20 = vperm.slane %v1989_v55, 2  ;;  %v2039_v35 = vperm.slane %v1989_v55, 4 }
 0x2f2   : > { %1595 = vst [vmem:[#allocation1 + $0x6] ss:$9 sm:$0xff] %v1445_v24  ;;  %v2038_v24 = vperm.slane %v1989_v55, 3  ;;  %v2040_v12 = vperm.slane %v1989_v55, 5  ;;  %v2042_v40 = vperm.slane %v1989_v55, 7 }
 0x2f3   : > { %1596 = vst [vmem:[#allocation1 + $0x7] ss:$9 sm:$0xff] %v1446_v33  ;;  %v2041_v33 = vperm.slane %v1989_v55, 6 }
 0x2f9   : > { %909 = vperm.xlu0 %3385, %v4187_v60   ;;  %v4274_v60 = vpop.xlane.xlu1 %2640 }
 0x2fa   : > { %v1597_v21 = vld [vmem:[#allocation1] sm:$0xff] }
 0x2fb   : > { %2147 = vst [vmem:[#allocation1] ss:$9 sm:$0xff] %v2019_v57  ;;  %1644 = vperm.xlu2 %3387, %v1597_v21   ;;  %v2044_v57 = vperm.slane %v1990_v29, 1  ;;  %v2045_v21 = vperm.slane %v1990_v29, 2 }
 0x2fc   : > { %2149 = vst [vmem:[#allocation1 + $0x1] ss:$9 sm:$0xff] %v2020_v41  ;;  %v2046_v41 = vperm.slane %v1990_v29, 3 }
 0x2fd   : > { %2151 = vst [vmem:[#allocation1 + $0x2] ss:$9 sm:$0xff] %v2021_v25  ;;  %v2047_v25 = vperm.slane %v1990_v29, 4 }
 0x2fe   : > { %2153 = vst [vmem:[#allocation1 + $0x3] ss:$9 sm:$0xff] %v2022_v11  ;;  %v2048_v11 = vperm.slane %v1990_v29, 5 }
 0x2ff   : > { %2155 = vst [vmem:[#allocation1 + $0x4] ss:$9 sm:$0xff] %v2023_v22  ;;  %v2049_v22 = vperm.slane %v1990_v29, 6 }
 0x300   : > { %2157 = vst [vmem:[#allocation1 + $0x5] ss:$9 sm:$0xff] %v2024_v0  ;;  %v2050_v0 = vperm.slane %v1990_v29, 7  ;;  %v1807_v29 = vpop.f32.mrf.mxu0 }
 0x301   : > { %2159 = vst [vmem:[#allocation1 + $0x6] ss:$9 sm:$0xff] %v2025_v50  ;;  %v1953_v50 = vpop.xlane.xlu0 %1952  ;;  %v4283_v52 = vpop.xlane.xlu1 %2643 }
 0x302   : > { %2161 = vst [vmem:[#allocation1 + $0x7] ss:$9 sm:$0xff] %v2026_v1  ;;  %v1991_v1 = vadd.f32 %v1953_v50, %v3892_v23 }
 0x304   : > { %v2051_v28 = vperm.slane %v1991_v1, 0  ;;  %v2052_v51 = vperm.slane %v1991_v1, 1  ;;  %v2053_v47 = vperm.slane %v1991_v1, 2  ;;  %v2054_v18 = vperm.slane %v1991_v1, 3 }
 0x305   : > { %v2055_v36 = vperm.slane %v1991_v1, 4 }
 0x309   : > { %v4269_v8 = vld [vmem:[#allocation1] sm:$0xff]  ;;  %v1959_v62 = vpop.xlane.xlu0 %1958 }
 0x30a   : > { %2163 = vst [vmem:[#allocation1] ss:$9 sm:$0xff] %v2027_v26  ;;  %v2056_v26 = vperm.slane %v1991_v1, 5 }
 0x30b   : > { %2164 = vst [vmem:[#allocation1 + $0x1] ss:$9 sm:$0xff] %v2028_v9  ;;  %v2057_v9 = vperm.slane %v1991_v1, 6 }
 0x30c   : > { %2165 = vst [vmem:[#allocation1 + $0x2] ss:$9 sm:$0xff] %v2029_v56  ;;  %v2582_v56 = vmax.f32 %v2537_v48, 0.0 }
 0x30d   : > { %2166 = vst [vmem:[#allocation1 + $0x3] ss:$9 sm:$0xff] %v2030_v16  ;;  %v2058_v16 = vperm.slane %v1991_v1, 7 }
 0x30e   : > { %2167 = vst [vmem:[#allocation1 + $0x4] ss:$9 sm:$0xff] %v2031_v63  ;;  %v2614_v43 = vmul.f32 %v2582_v56, %v3663_v46  ;;  %v1992_v63 = vadd.f32 %v1956_v61, %v3892_v23  ;;  %v2487_v61 = vadd.f32 %v4096_v7, %v3651_v37 }
 0x30f   : > { %2168 = vst [vmem:[#allocation1 + $0x5] ss:$9 sm:$0xff] %v2032_v10  ;;  %v4288_v10 = vpop.xlane.xlu1 %2646 }
 0x310   : > { %2169 = vst [vmem:[#allocation1 + $0x6] ss:$9 sm:$0xff] %v2033_v4  ;;  %v1962_v4 = vpop.xlane.xlu2 %1961  ;;  %v2648_v5 = vadd.f32 %v2614_v43, %v2613_v42  ;;  %v2060_v55 = vperm.slane %v1992_v63, 1  ;;  %v2591_v56 = vmax.f32 %v2487_v61, 0.0  ;;  %v2561_v61 = vadd.f32 %v4150_v19, %v3653_v38  ;;  %v2507_v19 = vpop.f32.mrf.mxu2 }
 0x311   : > { %2170 = vst [vmem:[#allocation1 + $0x7] ss:$9 sm:$0xff] %v2034_v54  ;;  %v2059_v54 = vperm.slane %v1992_v63, 0  ;;  %v1994_v42 = vadd.f32 %v1962_v4, %v3892_v23 }
 0x312   : > { %v2623_v7 = vmul.f32 %v2591_v56, %v3661_v45  ;;  %v2598_v56 = vmax.f32 %v2561_v61, 0.0 }
 0x318   : > { %v2171_v34 = vld [vmem:[#allocation1] sm:$0xff] }
 0x319   : > { %2172 = vst [vmem:[#allocation1] ss:$9 sm:$0xff] %v2035_v39  ;;  %2302 = vperm.xlu2 %3387, %v2171_v34   ;;  %v2061_v34 = vperm.slane %v1992_v63, 2 }
 0x31a   : > { %2173 = vst [vmem:[#allocation1 + $0x1] ss:$9 sm:$0xff] %v2036_v58  ;;  %v2062_v58 = vperm.slane %v1992_v63, 3 }
 0x31b   : > { %2174 = vst [vmem:[#allocation1 + $0x2] ss:$9 sm:$0xff] %v2037_v20  ;;  %v2063_v20 = vperm.slane %v1992_v63, 4 }
 0x31c   : > { %2175 = vst [vmem:[#allocation1 + $0x3] ss:$9 sm:$0xff] %v2038_v24  ;;  %v2064_v24 = vperm.slane %v1992_v63, 5 }
 0x31d   : > { %2176 = vst [vmem:[#allocation1 + $0x4] ss:$9 sm:$0xff] %v2039_v35  ;;  %v2065_v35 = vperm.slane %v1992_v63, 6 }
 0x31e   : > { %2177 = vst [vmem:[#allocation1 + $0x5] ss:$9 sm:$0xff] %v2040_v12  ;;  %v4290_v12 = vpop.xlane.xlu2 %1979 }
 0x31f   : > { %2178 = vst [vmem:[#allocation1 + $0x6] ss:$9 sm:$0xff] %v2041_v33  ;;  %v2066_v33 = vperm.slane %v1992_v63, 7 }
 0x320   : > { %2179 = vst [vmem:[#allocation1 + $0x7] ss:$9 sm:$0xff] %v2042_v40  ;;  %v4292_v40 = vpop.xlane.xlu1 %1967 }
 0x327   : > { %v2180_v2 = vld [vmem:[#allocation1] sm:$0xff] }
 0x328   : > { %2181 = vst [vmem:[#allocation1] ss:$9 sm:$0xff] %v2043_v3  ;;  %2305 = vperm.xlu1 %3386, %v2180_v2   ;;  %v1872_v3 = vpop.f32.mrf.mxu1  ;;  %v1808_v2 = vadd.f32 %v1807_v29, %v3651_v37  ;;  %v4301_v49 = vpop.xlane.xlu1 %2652  ;;  %v2081_v29 = vperm.slane %v1994_v42, 6 }
 0x329   : > { %2182 = vst [vmem:[#allocation1 + $0x1] ss:$9 sm:$0xff] %v2044_v57  ;;  %v1993_v57 = vadd.f32 %v1959_v62, %v3892_v23  ;;  %v2080_v62 = vperm.slane %v1994_v42, 5 }
 0x32a   : > { %2183 = vst [vmem:[#allocation1 + $0x2] ss:$9 sm:$0xff] %v2045_v21  ;;  %v1873_v21 = vadd.f32 %v1872_v3, %v3653_v38 }
 0x32b   : > { %2184 = vst [vmem:[#allocation1 + $0x3] ss:$9 sm:$0xff] %v2046_v41  ;;  %v1905_v41 = vmax.f32 %v1808_v2, 0.0  ;;  %v2068_v1 = vperm.slane %v1993_v57, 1  ;;  %v2074_v15 = vperm.slane %v1993_v57, 7  ;;  %v1965_v2 = vpop.xlane.xlu0 %1964 }
 0x32c   : > { %2185 = vst [vmem:[#allocation1 + $0x4] ss:$9 sm:$0xff] %v2047_v25  ;;  %v1906_v25 = vmax.f32 %v1873_v21, 0.0 }
 0x32d   : > { %2186 = vst [vmem:[#allocation1 + $0x5] ss:$9 sm:$0xff] %v2048_v11  ;;  %v2067_v11 = vperm.slane %v1993_v57, 0 }
 0x32e   : > { %2187 = vst [vmem:[#allocation1 + $0x6] ss:$9 sm:$0xff] %v2049_v22  ;;  %v1937_v22 = vmul.f32 %v1905_v41, %v3661_v45  ;;  %v1995_v41 = vadd.f32 %v1965_v2, %v3892_v23 }
 0x32f   : > { %2188 = vst [vmem:[#allocation1 + $0x7] ss:$9 sm:$0xff] %v2050_v0  ;;  %v1938_v0 = vmul.f32 %v1906_v25, %v3663_v46 }
 0x330   : > { %v4310_v63 = vpop.xlane.xlu1 %2655 }
 0x331   : > { %v1984_v48 = vadd.f32 %v1938_v0, %v1937_v22  ;;  %v2084_v0 = vperm.slane %v1995_v41, 1 }
 0x333   : > { %1985 = vadd.xlane.f32.xlu0 %v1984_v48  ;;  %v2087_v48 = vperm.slane %v1995_v41, 4 }
 0x336   : > { %v4277_v53 = vld [vmem:[#allocation1] sm:$0xff] }
 0x337   : > { %2190 = vst [vmem:[#allocation1] ss:$9 sm:$0xff] %v2051_v28  ;;  %v4299_v28 = vpop.xlane.xlu2 %2661 }
 0x338   : > { %2191 = vst [vmem:[#allocation1 + $0x1] ss:$9 sm:$0xff] %v2052_v51  ;;  %v2069_v51 = vperm.slane %v1993_v57, 2  ;;  %v4322_v21 = vpop.xlane.xlu1 %2658 }
 0x339   : > { %2192 = vst [vmem:[#allocation1 + $0x2] ss:$9 sm:$0xff] %v2053_v47  ;;  %v2070_v47 = vperm.slane %v1993_v57, 3 }
 0x33a   : > { %2193 = vst [vmem:[#allocation1 + $0x3] ss:$9 sm:$0xff] %v2054_v18  ;;  %v2071_v18 = vperm.slane %v1993_v57, 4 }
 0x33b   : > { %2194 = vst [vmem:[#allocation1 + $0x4] ss:$9 sm:$0xff] %v2055_v36  ;;  %v2072_v36 = vperm.slane %v1993_v57, 5  ;;  %2649 = vadd.xlane.f32.xlu0 %v2648_v5 }
 0x33c   : > { %2195 = vst [vmem:[#allocation1 + $0x5] ss:$9 sm:$0xff] %v2056_v26  ;;  %v2552_v26 = vadd.f32 %v4098_v31, %v3653_v38  ;;  %v2490_v31 = vadd.f32 %v4116_v13, %v3651_v37 }
 0x33d   : > { %2196 = vst [vmem:[#allocation1 + $0x6] ss:$9 sm:$0xff] %v2057_v9  ;;  %v2073_v9 = vperm.slane %v1993_v57, 6  ;;  %v2082_v57 = vperm.slane %v1994_v42, 7 }
 0x33e   : > { %2197 = vst [vmem:[#allocation1 + $0x7] ss:$9 sm:$0xff] %v2058_v16  ;;  %v2592_v16 = vmax.f32 %v2552_v26, 0.0  ;;  %v2593_v4 = vmax.f32 %v2490_v31, 0.0  ;;  %v2089_v26 = vperm.slane %v1995_v41, 6  ;;  %v2572_v31 = vpop.f32.mrf.mxu3 }
 0x33f   : > { %v4308_v43 = vpop.xlane.xlu2 %2676 }
 0x345   : > { %v2198_v39 = vld [vmem:[#allocation1] sm:$0xff] }
 0x346   : > { %2199 = vst [vmem:[#allocation1] ss:$9 sm:$0xff] %v2059_v54  ;;  %2311 = vperm.xlu2 %3387, %v2198_v39   ;;  %v2624_v54 = vmul.f32 %v2592_v16, %v3663_v46  ;;  %v2075_v39 = vperm.slane %v1994_v42, 0  ;;  %v1996_v16 = vadd.f32 %v4292_v40, %v3892_v23  ;;  %v2508_v40 = vadd.f32 %v2507_v19, %v3651_v37 }
 0x347   : > { %2200 = vst [vmem:[#allocation1 + $0x1] ss:$9 sm:$0xff] %v2060_v55  ;;  %v2555_v55 = vadd.f32 %v4118_v14, %v3653_v38  ;;  %v4318_v13 = vpop.xlane.xlu2 %2679  ;;  %v2625_v14 = vmul.f32 %v2593_v4, %v3661_v45  ;;  %v2573_v4 = vadd.f32 %v2572_v31, %v3653_v38 }
 0x348   : > { %2201 = vst [vmem:[#allocation1 + $0x2] ss:$9 sm:$0xff] %v2061_v34  ;;  %v2076_v34 = vperm.slane %v1994_v42, 1  ;;  %v2663_v5 = vadd.f32 %v2624_v54, %v2623_v7  ;;  %v2630_v54 = vmul.f32 %v2598_v56, %v3663_v46 }
 0x349   : > { %2202 = vst [vmem:[#allocation1 + $0x3] ss:$9 sm:$0xff] %v2062_v58 }
 0x34a   : > { %2203 = vst [vmem:[#allocation1 + $0x4] ss:$9 sm:$0xff] %v2063_v20  ;;  %v2077_v20 = vperm.slane %v1994_v42, 2  ;;  %2664 = vadd.xlane.f32.xlu0 %v2663_v5  ;;  %v2095_v5 = vperm.slane %v1996_v16, 4 }
 0x34b   : > { %2204 = vst [vmem:[#allocation1 + $0x5] ss:$9 sm:$0xff] %v2064_v24  ;;  %v2594_v24 = vmax.f32 %v2555_v55, 0.0  ;;  %v2091_v55 = vperm.slane %v1996_v16, 0 }
 0x34c   : > { %2205 = vst [vmem:[#allocation1 + $0x6] ss:$9 sm:$0xff] %v2065_v35  ;;  %v2078_v35 = vperm.slane %v1994_v42, 3 }
 0x34d   : > { %2206 = vst [vmem:[#allocation1 + $0x7] ss:$9 sm:$0xff] %v2066_v33  ;;  %v2079_v33 = vperm.slane %v1994_v42, 4  ;;  %v2626_v3 = vmul.f32 %v2594_v24, %v3663_v46  ;;  %v2094_v24 = vperm.slane %v1996_v16, 3 }
 0x34f   : > { %v2666_v25 = vadd.f32 %v2626_v3, %v2625_v14  ;;  %v2097_v14 = vperm.slane %v1996_v16, 6 }
 0x352   : > { %2667 = vadd.xlane.f32.xlu0 %v2666_v25 }
 0x354   : > { %v2207_v50 = vld [vmem:[#allocation1] sm:$0xff] }
 0x355   : > { %2208 = vst [vmem:[#allocation1] ss:$9 sm:$0xff] %v2067_v11  ;;  %2314 = vperm.xlu1 %3386, %v2207_v50   ;;  %v2083_v11 = vperm.slane %v1995_v41, 0  ;;  %v4325_v50 = vpop.xlane.xlu2 %2682 }
 0x356   : > { %2209 = vst [vmem:[#allocation1 + $0x1] ss:$9 sm:$0xff] %v2068_v1  ;;  %v2085_v1 = vperm.slane %v1995_v41, 2 }
 0x357   : > { %2210 = vst [vmem:[#allocation1 + $0x2] ss:$9 sm:$0xff] %v2069_v51  ;;  %v2086_v51 = vperm.slane %v1995_v41, 3 }
 0x358   : > { %2211 = vst [vmem:[#allocation1 + $0x3] ss:$9 sm:$0xff] %v2070_v47  ;;  %v4327_v47 = vpop.xlane.xlu1 %2670 }
 0x359   : > { %2212 = vst [vmem:[#allocation1 + $0x4] ss:$9 sm:$0xff] %v2071_v18  ;;  %v2088_v18 = vperm.slane %v1995_v41, 5 }
 0x35a   : > { %2213 = vst [vmem:[#allocation1 + $0x5] ss:$9 sm:$0xff] %v2072_v36  ;;  %v2496_v36 = vadd.f32 %v4148_v30, %v3651_v37  ;;  %v2098_v37 = vperm.slane %v1996_v16, 7 }
 0x35b   : > { %2214 = vst [vmem:[#allocation1 + $0x6] ss:$9 sm:$0xff] %v2073_v9  ;;  %v2090_v9 = vperm.slane %v1995_v41, 7 }
 0x35c   : > { %2215 = vst [vmem:[#allocation1 + $0x7] ss:$9 sm:$0xff] %v2074_v15  ;;  %v2597_v15 = vmax.f32 %v2496_v36, 0.0 }
 0x35d   : > { %v4335_v42 = vpop.permute.xlu2 %867 }
 0x35e   : > { %v2629_v30 = vmul.f32 %v2597_v15, %v3661_v45 }
 0x360   : > { %v4337_v7 = vpop.permute.xlu1 %864 }
 0x363   : > { %v2216_v58 = vld [vmem:[#allocation1] sm:$0xff] }
 0x364   : > { %2217 = vst [vmem:[#allocation1] ss:$9 sm:$0xff] %v2075_v39  ;;  %2317 = vperm.xlu2 %3387, %v2216_v58   ;;  %v4341_v39 = vpop.permute.xlu0 %891 }
 0x365   : > { %2218 = vst [vmem:[#allocation1 + $0x1] ss:$9 sm:$0xff] %v2076_v34  ;;  %v2092_v34 = vperm.slane %v1996_v16, 1  ;;  %v874_v3 = vpop.permute.xlu2 %873 }
 0x366   : > { %2219 = vst [vmem:[#allocation1 + $0x2] ss:$9 sm:$0xff] %v2077_v20  ;;  %v2093_v20 = vperm.slane %v1996_v16, 2 }
 0x367   : > { %2220 = vst [vmem:[#allocation1 + $0x3] ss:$9 sm:$0xff] %v2078_v35  ;;  %v2672_v35 = vadd.f32 %v2630_v54, %v2629_v30 }
 0x368   : > { %2221 = vst [vmem:[#allocation1 + $0x4] ss:$9 sm:$0xff] %v2079_v33  ;;  %v2605_v33 = vmax.f32 %v2508_v40, 0.0  ;;  %v877_v41 = vpop.permute.xlu1 %876 }
 0x369   : > { %2222 = vst [vmem:[#allocation1 + $0x5] ss:$9 sm:$0xff] %v2080_v62  ;;  %v2606_v62 = vmax.f32 %v2573_v4, 0.0  ;;  %2673 = vadd.xlane.f32.xlu0 %v2672_v35 }
 0x36a   : > { %2223 = vst [vmem:[#allocation1 + $0x6] ss:$9 sm:$0xff] %v2081_v29  ;;  %v2096_v29 = vperm.slane %v1996_v16, 5 }
 0x36b   : > { %2224 = vst [vmem:[#allocation1 + $0x7] ss:$9 sm:$0xff] %v2082_v57  ;;  %v2637_v57 = vmul.f32 %v2605_v33, %v3661_v45  ;;  %v2638_v2 = vmul.f32 %v2606_v62, %v3663_v46 }
 0x36c   : > { %v1971_v38 = vpop.xlane.xlu0 %1970 }
 0x36d   : > { %v2684_v25 = vadd.f32 %v2638_v2, %v2637_v57 }
 0x371   : > { %2685 = vadd.xlane.f32.xlu0 %v2684_v25 }
 0x372   : > { %v2225_v22 = vld [vmem:[#allocation1] sm:$0xff] }
 0x373   : > { %2226 = vst [vmem:[#allocation1] ss:$9 sm:$0xff] %v2083_v11  ;;  %2320 = vperm.xlu2 %3387, %v2225_v22   ;;  %v911_v11 = vlaneseq  ;;  %v1997_v22 = vadd.f32 %v1971_v38, %v3892_v23 }
 0x374   : > { %2227 = vst [vmem:[#allocation1 + $0x1] ss:$9 sm:$0xff] %v2084_v0  ;;  %v1974_v61 = vpop.xlane.xlu0 %1973 }
 0x375   : > { %2228 = vst [vmem:[#allocation1 + $0x2] ss:$9 sm:$0xff] %v2085_v1  ;;  %v4351_v0 = vand.u32 127, %v911_v11  ;;  %v2099_v1 = vperm.slane %v1997_v22, 0  ;;  %v2100_v45 = vperm.slane %v1997_v22, 1  ;;  %v2102_v36 = vperm.slane %v1997_v22, 3 }
 0x376   : > { %2229 = vst [vmem:[#allocation1 + $0x3] ss:$9 sm:$0xff] %v2086_v51  ;;  %v2104_v15 = vperm.slane %v1997_v22, 5  ;;  %v2105_v30 = vperm.slane %v1997_v22, 6  ;;  %v2106_v19 = vperm.slane %v1997_v22, 7  ;;  %vm4448_vm0 = vcmp.lt.s32.totalorder %v911_v11, 128 }
 0x377   : > { %2230 = vst [vmem:[#allocation1 + $0x4] ss:$9 sm:$0xff] %v2087_v48  ;;  %v880_v48 = vpop.permute.xlu2 %879  ;;  %v4354_v46 = vadd.s32 4294967288, %v4351_v0  ;;  %v4359_v16 = vadd.s32 4294967272, %v4351_v0  ;;  %v4362_v54 = vadd.s32 4294967280, %v4351_v0  ;;  %v913_v31 = vperm.slane %v4337_v7, %v4351_v0 }
 0x378   : > { %2231 = vst [vmem:[#allocation1 + $0x5] ss:$9 sm:$0xff] %v2088_v18  ;;  %v2101_v18 = vperm.slane %v1997_v22, 2  ;;  %v4374_v40 = vadd.s32 4294967264, %v4351_v0  ;;  %v1998_v7 = vadd.f32 %v1974_v61, %v3892_v23 }
 0x379   : > { %2232 = vst [vmem:[#allocation1 + $0x6] ss:$9 sm:$0xff] %v2089_v26  ;;  %v883_v26 = vpop.permute.xlu1 %882  ;;  %v915_v56 = vperm.slane %v4335_v42, %v4354_v46  ;;  %v923_v42 = vperm.slane %v874_v3, %v4359_v16 }
 0x37a   : > { %2233 = vst [vmem:[#allocation1 + $0x7] ss:$9 sm:$0xff] %v2090_v9  ;;  %v2103_v9 = vperm.slane %v1997_v22, 4  ;;  %v2107_v3 = vperm.slane %v1998_v7, 0  ;;  %v2108_v2 = vperm.slane %v1998_v7, 1  ;;  %v2109_v38 = vperm.slane %v1998_v7, 2 }
 0x37b   : > { %v2113_v61 = vperm.slane %v1998_v7, 6 }
 0x37f   : > { %v886_v4 = vpop.permute.xlu2 %885 }
 0x381   : > { %v4343_v58 = vld [vmem:[#allocation1] sm:$0xff]  ;;  %v889_v33 = vpop.permute.xlu1 %888 }
 0x382   : > { %2235 = vst [vmem:[#allocation1] ss:$9 sm:$0xff] %v2091_v55  ;;  %v917_v55 = vsel %vm916_vm1, %v915_v56, %v913_v31  ;;  %v2114_v56 = vperm.slane %v1998_v7, 7 }
 0x383   : > { %2236 = vst [vmem:[#allocation1 + $0x1] ss:$9 sm:$0xff] %v2092_v34  ;;  %v4369_v34 = vadd.s32 4294967256, %v4351_v0 }
 0x384   : > { %2237 = vst [vmem:[#allocation1 + $0x2] ss:$9 sm:$0xff] %v2093_v20  ;;  %v919_v20 = vperm.slane %v4267_v32, %v4362_v54  ;;  %v927_v32 = vperm.slane %v877_v41, %v4374_v40 }
 0x385   : > { %2238 = vst [vmem:[#allocation1 + $0x3] ss:$9 sm:$0xff] %v2094_v24  ;;  %v4377_v24 = vpop.permute.xlu0 %900  ;;  %v931_v62 = vperm.slane %v880_v48, %v4369_v34  ;;  %1605 = vperm.xlu0 %3385, %v4201_v44   ;;  %v2111_v48 = vperm.slane %v1998_v7, 4  ;;  %v4402_v44 = vadd.s32 4294967224, %v4351_v0 }
 0x386   : > { %2239 = vst [vmem:[#allocation1 + $0x4] ss:$9 sm:$0xff] %v2095_v5  ;;  %v921_v35 = vsel %vm920_vm2, %v919_v20, %v917_v55 }
 0x387   : > { %2240 = vst [vmem:[#allocation1 + $0x5] ss:$9 sm:$0xff] %v2096_v29  ;;  %v925_v5 = vsel %vm924_vm3, %v923_v42, %v921_v35  ;;  %v4383_v29 = vadd.s32 4294967240, %v4351_v0  ;;  %v4409_v42 = vadd.s32 4294967200, %v4351_v0  ;;  %v947_v20 = vperm.slane %v4341_v39, %v4402_v44 }
 0x388   : > { %2241 = vst [vmem:[#allocation1 + $0x6] ss:$9 sm:$0xff] %v2097_v14  ;;  %v4387_v14 = vadd.s32 4294967248, %v4351_v0 }
 0x389   : > { %2242 = vst [vmem:[#allocation1 + $0x7] ss:$9 sm:$0xff] %v2098_v37  ;;  %v929_v37 = vsel %vm928_vm4, %v927_v32, %v925_v5  ;;  %v939_v22 = vperm.slane %v886_v4, %v4383_v29  ;;  %v4414_v4 = vadd.s32 4294967208, %v4351_v0  ;;  %v4426_v32 = vadd.s32 4294967192, %v4351_v0 }
 0x38a   : > { %v933_v25 = vsel %vm932_vm5, %v931_v62, %v929_v37  ;;  %v935_v41 = vperm.slane %v883_v26, %v4387_v14 }
 0x38d   : > { %1611 = vperm.xlu0 %3385, %v4206_v27  }
 0x390   : > { %v2243_v51 = vld [vmem:[#allocation1] sm:$0xff] }
 0x391   : > { %2244 = vst [vmem:[#allocation1] ss:$9 sm:$0xff] %v2099_v1  ;;  %2326 = vperm.xlu1 %3386, %v2243_v51   ;;  %v2110_v1 = vperm.slane %v1998_v7, 3  ;;  %v4395_v51 = vadd.s32 4294967232, %v4351_v0 }
 0x392   : > { %2245 = vst [vmem:[#allocation1 + $0x1] ss:$9 sm:$0xff] %v2100_v45  ;;  %v1977_v45 = vpop.xlane.xlu0 %1976 }
 0x393   : > { %2246 = vst [vmem:[#allocation1 + $0x2] ss:$9 sm:$0xff] %v2101_v18  ;;  %v2112_v18 = vperm.slane %v1998_v7, 5  ;;  %v1999_v7 = vadd.f32 %v1977_v45, %v3892_v23 }
 0x394   : > { %2247 = vst [vmem:[#allocation1 + $0x3] ss:$9 sm:$0xff] %v2102_v36  ;;  %v937_v36 = vsel %vm936_vm6, %v935_v41, %v933_v25 }
 0x395   : > { %2248 = vst [vmem:[#allocation1 + $0x4] ss:$9 sm:$0xff] %v2103_v9  ;;  %v4399_v9 = vadd.s32 4294967216, %v4351_v0  ;;  %v941_v26 = vsel %vm940_vm7, %v939_v22, %v937_v36  ;;  %v2118_v22 = vperm.slane %v1999_v7, 3  ;;  %1620 = vperm.xlu0 %3385, %v4229_v59   ;;  %v2120_v45 = vperm.slane %v1999_v7, 5 }
 0x396   : > { %2249 = vst [vmem:[#allocation1 + $0x5] ss:$9 sm:$0xff] %v2104_v15  ;;  %v895_v15 = vpop.permute.xlu2 %894  ;;  %v2121_v36 = vperm.slane %v1999_v7, 6 }
 0x397   : > { %2250 = vst [vmem:[#allocation1 + $0x6] ss:$9 sm:$0xff] %v2105_v30  ;;  %v943_v30 = vperm.slane %v889_v33, %v4395_v51  ;;  %v951_v55 = vperm.slane %v895_v15, %v4399_v9  ;;  %v959_v33 = vperm.slane %v4377_v24, %v4409_v42  ;;  %v4433_v24 = vadd.s32 4294967184, %v4351_v0 }
 0x398   : > { %2251 = vst [vmem:[#allocation1 + $0x7] ss:$9 sm:$0xff] %v2106_v19  ;;  %v898_v19 = vpop.permute.xlu1 %897 }
 0x399   : > { %v945_v31 = vsel %vm944_vm8, %v943_v30, %v941_v26  ;;  %v955_v39 = vperm.slane %v898_v19, %v4414_v4  ;;  %v2122_v26 = vperm.slane %v1999_v7, 7 }
 0x39a   : > { %v949_v35 = vsel %vm948_vm9, %v947_v20, %v945_v31  ;;  %v4422_v62 = vpop.xlane.xlu0 %1982 }
 0x39b   : > { %v953_v5 = vsel %vm952_vm10, %v951_v55, %v949_v35  ;;  %v2000_v55 = vadd.f32 %v4290_v12, %v3892_v23 }
 0x39c   : > { %v957_v37 = vsel %vm956_vm11, %v955_v39, %v953_v5 }
 0x39d   : > { %v961_v25 = vsel %vm960_vm12, %v959_v33, %v957_v37  ;;  %1629 = vperm.xlu0 %3385, %v4243_v17   ;;  %v2123_v20 = vperm.slane %v2000_v55, 0  ;;  %v2125_v11 = vperm.slane %v2000_v55, 2  ;;  %v2126_v5 = vperm.slane %v2000_v55, 3 }
 0x39e   : > { %v904_v27 = vpop.permute.xlu2 %903  ;;  %v2127_v33 = vperm.slane %v2000_v55, 4  ;;  %v2128_v39 = vperm.slane %v2000_v55, 5  ;;  %v2129_v12 = vperm.slane %v2000_v55, 6  ;;  %v2001_v17 = vadd.f32 %v4422_v62, %v3892_v23 }
 0x39f   : > { %v2252_v57 = vld [vmem:[#allocation1] sm:$0xff]  ;;  %v963_v41 = vperm.slane %v904_v27, %v4426_v32 }
 0x3a0   : > { %2253 = vst [vmem:[#allocation1] ss:$9 sm:$0xff] %v2107_v3  ;;  %2329 = vperm.xlu2 %3387, %v2252_v57   ;;  %v2115_v3 = vperm.slane %v1999_v7, 0  ;;  %v2131_v27 = vperm.slane %v2001_v17, 0  ;;  %v2132_v37 = vperm.slane %v2001_v17, 1  ;;  %v2138_v62 = vperm.slane %v2001_v17, 7 }
 0x3a1   : > { %2254 = vst [vmem:[#allocation1 + $0x1] ss:$9 sm:$0xff] %v2108_v2  ;;  %v2116_v2 = vperm.slane %v1999_v7, 1 }
 0x3a2   : > { %2255 = vst [vmem:[#allocation1 + $0x2] ss:$9 sm:$0xff] %v2109_v38  ;;  %v2117_v38 = vperm.slane %v1999_v7, 2 }
 0x3a3   : > { %2256 = vst [vmem:[#allocation1 + $0x3] ss:$9 sm:$0xff] %v2110_v1  ;;  %v907_v1 = vpop.permute.xlu1 %906 }
 0x3a4   : > { %2257 = vst [vmem:[#allocation1 + $0x4] ss:$9 sm:$0xff] %v2111_v48  ;;  %v2119_v48 = vperm.slane %v1999_v7, 4  ;;  %v967_v15 = vperm.slane %v907_v1, %v4433_v24  ;;  %v2124_v7 = vperm.slane %v2000_v55, 1  ;;  %v2137_v1 = vperm.slane %v2001_v17, 6 }
 0x3a5   : > { %2258 = vst [vmem:[#allocation1 + $0x5] ss:$9 sm:$0xff] %v2112_v18  ;;  %v965_v18 = vsel %vm964_vm13, %v963_v41, %v961_v25  ;;  %1638 = vperm.xlu0 %3385, %v4252_v6   ;;  %v2134_v25 = vperm.slane %v2001_v17, 3  ;;  %v2135_v6 = vperm.slane %v2001_v17, 4 }
 0x3a6   : > { %2259 = vst [vmem:[#allocation1 + $0x6] ss:$9 sm:$0xff] %v2113_v61  ;;  %v4442_v61 = vadd.s32 4294967176, %v4351_v0  ;;  %v969_v30 = vsel %vm968_vm14, %v967_v15, %v965_v18 }
 0x3a7   : > { %2260 = vst [vmem:[#allocation1 + $0x7] ss:$9 sm:$0xff] %v2114_v56  ;;  %v910_v56 = vpop.permute.xlu0 %909 }
 0x3a8   : > { %v971_v59 = vperm.slane %v910_v56, %v4442_v61 }
 0x3aa   : > { %v973_v31 = vsel %vm972_vm15, %v971_v59, %v969_v30 }
 0x3ab   : > { %979 = vst.msk [vmem:[%s4455_s9] sm:$0x1] %vm4448_vm0, %v973_v31 }
 0x3ad   : > { %2299 = vperm.xlu0 %3385, %v4269_v8  }
 0x3ae   : > { %v4428_v57 = vld [vmem:[#allocation1] sm:$0xff] }
 0x3af   : > { %2262 = vst [vmem:[#allocation1] ss:$9 sm:$0xff] %v2115_v3  ;;  %v2130_v3 = vperm.slane %v2000_v55, 7  ;;  %v1986_v41 = vpop.xlane.xlu0 %1985 }
 0x3b0   : > { %2263 = vst [vmem:[#allocation1 + $0x1] ss:$9 sm:$0xff] %v2116_v2  ;;  %v2002_v8 = vadd.f32 %v1986_v41, %v3892_v23 }
 0x3b1   : > { %2264 = vst [vmem:[#allocation1 + $0x2] ss:$9 sm:$0xff] %v2117_v38  ;;  %v2133_v38 = vperm.slane %v2001_v17, 2 }
 0x3b2   : > { %2265 = vst [vmem:[#allocation1 + $0x3] ss:$9 sm:$0xff] %v2118_v22  ;;  %v2136_v22 = vperm.slane %v2001_v17, 5  ;;  %v2141_v18 = vperm.slane %v2002_v8, 2  ;;  %v2142_v15 = vperm.slane %v2002_v8, 3  ;;  %v2144_v56 = vperm.slane %v2002_v8, 5 }
 0x3b3   : > { %2266 = vst [vmem:[#allocation1 + $0x4] ss:$9 sm:$0xff] %v2119_v48  ;;  %v2139_v48 = vperm.slane %v2002_v8, 0  ;;  %v2145_v59 = vperm.slane %v2002_v8, 6 }
 0x3b4   : > { %2267 = vst [vmem:[#allocation1 + $0x5] ss:$9 sm:$0xff] %v2120_v45  ;;  %v2140_v45 = vperm.slane %v2002_v8, 1 }
 0x3b5   : > { %2268 = vst [vmem:[#allocation1 + $0x6] ss:$9 sm:$0xff] %v2121_v36  ;;  %2308 = vperm.xlu0 %3385, %v4277_v53   ;;  %v2146_v53 = vperm.slane %v2002_v8, 7 }
 0x3b6   : > { %2269 = vst [vmem:[#allocation1 + $0x7] ss:$9 sm:$0xff] %v2122_v26  ;;  %v2143_v26 = vperm.slane %v2002_v8, 4 }
 0x3bd   : > { %v2270_v35 = vld [vmem:[#allocation1] sm:$0xff]  ;;  %2323 = vperm.xlu0 %3385, %v4343_v58   ;;  %v2687_v58 = vadd.f32 %v4274_v60, %v3892_v23  ;;  %v2688_v60 = vadd.f32 %v4283_v52, %v3892_v23  ;;  %v2689_v52 = vadd.f32 %v4288_v10, %v3892_v23 }
 0x3be   : > { %2271 = vst [vmem:[#allocation1] ss:$9 sm:$0xff] %v2123_v20  ;;  %2335 = vperm.xlu1 %3386, %v2270_v35  }
 0x3bf   : > { %2272 = vst [vmem:[#allocation1 + $0x1] ss:$9 sm:$0xff] %v2124_v7  ;;  %v2719_v30 = vperm.slane %v2687_v58, 0  ;;  %v2720_v31 = vperm.slane %v2687_v58, 1  ;;  %v2721_v20 = vperm.slane %v2687_v58, 2  ;;  %v2722_v7 = vperm.slane %v2687_v58, 3 }
 0x3c0   : > { %2273 = vst [vmem:[#allocation1 + $0x2] ss:$9 sm:$0xff] %v2125_v11  ;;  %v2723_v35 = vperm.slane %v2687_v58, 4  ;;  %v2724_v11 = vperm.slane %v2687_v58, 5  ;;  %v2730_v17 = vperm.slane %v2688_v60, 3  ;;  %v2737_v41 = vperm.slane %v2689_v52, 2 }
 0x3c1   : > { %2274 = vst [vmem:[#allocation1 + $0x3] ss:$9 sm:$0xff] %v2126_v5  ;;  %v2725_v5 = vperm.slane %v2687_v58, 6 }
 0x3c2   : > { %2275 = vst [vmem:[#allocation1 + $0x4] ss:$9 sm:$0xff] %v2127_v33  ;;  %v2727_v33 = vperm.slane %v2688_v60, 0 }
 0x3c3   : > { %2276 = vst [vmem:[#allocation1 + $0x5] ss:$9 sm:$0xff] %v2128_v39  ;;  %v2728_v39 = vperm.slane %v2688_v60, 1 }
 0x3c4   : > { %2277 = vst [vmem:[#allocation1 + $0x6] ss:$9 sm:$0xff] %v2129_v12 }
 0x3c5   : > { %2278 = vst [vmem:[#allocation1 + $0x7] ss:$9 sm:$0xff] %v2130_v3  ;;  %2332 = vperm.xlu0 %3385, %v4428_v57   ;;  %v2726_v57 = vperm.slane %v2687_v58, 7  ;;  %v2729_v3 = vperm.slane %v2688_v60, 2 }
 0x3cc   : > { %v2279_v2 = vld [vmem:[#allocation1] sm:$0xff] }
 0x3cd   : > { %2280 = vst [vmem:[#allocation1] ss:$9 sm:$0xff] %v2131_v27  ;;  %2338 = vperm.xlu2 %3387, %v2279_v2   ;;  %v2731_v27 = vperm.slane %v2688_v60, 4  ;;  %v2732_v2 = vperm.slane %v2688_v60, 5 }
 0x3ce   : > { %2281 = vst [vmem:[#allocation1 + $0x1] ss:$9 sm:$0xff] %v2132_v37  ;;  %v2733_v37 = vperm.slane %v2688_v60, 6 }
 0x3cf   : > { %2282 = vst [vmem:[#allocation1 + $0x2] ss:$9 sm:$0xff] %v2133_v38  ;;  %v2734_v38 = vperm.slane %v2688_v60, 7 }
 0x3d0   : > { %2283 = vst [vmem:[#allocation1 + $0x3] ss:$9 sm:$0xff] %v2134_v25  ;;  %v2650_v25 = vpop.xlane.xlu0 %2649 }
 0x3d1   : > { %2284 = vst [vmem:[#allocation1 + $0x4] ss:$9 sm:$0xff] %v2135_v6  ;;  %v2735_v6 = vperm.slane %v2689_v52, 0  ;;  %v2690_v10 = vadd.f32 %v2650_v25, %v3892_v23  ;;  %v1603_v25 = vpop.permute.xlu2 %1602 }
 0x3d2   : > { %2285 = vst [vmem:[#allocation1 + $0x5] ss:$9 sm:$0xff] %v2136_v22  ;;  %v2736_v22 = vperm.slane %v2689_v52, 1 }
 0x3d3   : > { %2286 = vst [vmem:[#allocation1 + $0x6] ss:$9 sm:$0xff] %v2137_v1  ;;  %v2746_v58 = vperm.slane %v2690_v10, 3 }
 0x3d4   : > { %2287 = vst [vmem:[#allocation1 + $0x7] ss:$9 sm:$0xff] %v2138_v62  ;;  %v2738_v62 = vperm.slane %v2689_v52, 3 }
 0x3d8   : > { %v4477_v8 = vpop.xlane.xlu0 %2664 }
 0x3db   : > { %v2288_v36 = vld [vmem:[#allocation1] sm:$0xff] }
 0x3dc   : > { %2289 = vst [vmem:[#allocation1] ss:$9 sm:$0xff] %v2139_v48  ;;  %2341 = vperm.xlu0 %3385, %v2288_v36   ;;  %v2739_v48 = vperm.slane %v2689_v52, 4  ;;  %v2742_v36 = vperm.slane %v2689_v52, 7 }
 0x3dd   : > { %2290 = vst [vmem:[#allocation1 + $0x1] ss:$9 sm:$0xff] %v2140_v45  ;;  %v2740_v45 = vperm.slane %v2689_v52, 5 }
 0x3de   : > { %2291 = vst [vmem:[#allocation1 + $0x2] ss:$9 sm:$0xff] %v2141_v18  ;;  %v2741_v18 = vperm.slane %v2689_v52, 6 }
 0x3df   : > { %2292 = vst [vmem:[#allocation1 + $0x3] ss:$9 sm:$0xff] %v2142_v15 }
 0x3e0   : > { %2293 = vst [vmem:[#allocation1 + $0x4] ss:$9 sm:$0xff] %v2143_v26  ;;  %v4480_v15 = vpop.xlane.xlu0 %2667  ;;  %v2743_v26 = vperm.slane %v2690_v10, 0 }
 0x3e1   : > { %2294 = vst [vmem:[#allocation1 + $0x5] ss:$9 sm:$0xff] %v2144_v56 }
 0x3e2   : > { %2295 = vst [vmem:[#allocation1 + $0x6] ss:$9 sm:$0xff] %v2145_v59  ;;  %v2744_v59 = vperm.slane %v2690_v10, 1 }
 0x3e3   : > { %2296 = vst [vmem:[#allocation1 + $0x7] ss:$9 sm:$0xff] %v2146_v53  ;;  %v2745_v53 = vperm.slane %v2690_v10, 2 }
 0x3ea   : > { %v4471_v55 = vld [vmem:[#allocation1] sm:$0xff] }
 0x3eb   : > { %2847 = vst [vmem:[#allocation1] ss:$9 sm:$0xff] %v2719_v30  ;;  %v2747_v30 = vperm.slane %v2690_v10, 4 }
 0x3ec   : > { %2849 = vst [vmem:[#allocation1 + $0x1] ss:$9 sm:$0xff] %v2720_v31  ;;  %v2748_v31 = vperm.slane %v2690_v10, 5 }
 0x3ed   : > { %2851 = vst [vmem:[#allocation1 + $0x2] ss:$9 sm:$0xff] %v2721_v20  ;;  %v2749_v20 = vperm.slane %v2690_v10, 6 }
 0x3ee   : > { %2853 = vst [vmem:[#allocation1 + $0x3] ss:$9 sm:$0xff] %v2722_v7  ;;  %v4482_v7 = vpop.xlane.xlu0 %2673 }
 0x3ef   : > { %2855 = vst [vmem:[#allocation1 + $0x4] ss:$9 sm:$0xff] %v2723_v35  ;;  %v2750_v35 = vperm.slane %v2690_v10, 7 }
 0x3f0   : > { %2857 = vst [vmem:[#allocation1 + $0x5] ss:$9 sm:$0xff] %v2724_v11  ;;  %v2691_v11 = vadd.f32 %v4301_v49, %v3892_v23  ;;  %v2692_v49 = vadd.f32 %v4310_v63, %v3892_v23  ;;  %v1615_v63 = vpop.permute.xlu2 %1614 }
 0x3f1   : > { %2859 = vst [vmem:[#allocation1 + $0x6] ss:$9 sm:$0xff] %v2725_v5 }
 0x3f2   : > { %2861 = vst [vmem:[#allocation1 + $0x7] ss:$9 sm:$0xff] %v2726_v57  ;;  %v2751_v5 = vperm.slane %v2691_v11, 0  ;;  %v2752_v57 = vperm.slane %v2691_v11, 1  ;;  %v2759_v52 = vperm.slane %v2692_v49, 0  ;;  %v2766_v10 = vperm.slane %v2692_v49, 7 }
 0x3f9   : > { %v2862_v12 = vld [vmem:[#allocation1] sm:$0xff] }
 0x3fa   : > { %2863 = vst [vmem:[#allocation1] ss:$9 sm:$0xff] %v2727_v33  ;;  %2999 = vperm.xlu2 %3387, %v2862_v12   ;;  %v4486_v33 = vpop.xlane.xlu0 %2685  ;;  %v2754_v12 = vperm.slane %v2691_v11, 3 }
 0x3fb   : > { %2864 = vst [vmem:[#allocation1 + $0x1] ss:$9 sm:$0xff] %v2728_v39  ;;  %v2753_v39 = vperm.slane %v2691_v11, 2 }
 0x3fc   : > { %2865 = vst [vmem:[#allocation1 + $0x2] ss:$9 sm:$0xff] %v2729_v3  ;;  %v2755_v3 = vperm.slane %v2691_v11, 4 }
 0x3fd   : > { %2866 = vst [vmem:[#allocation1 + $0x3] ss:$9 sm:$0xff] %v2730_v17  ;;  %v2756_v17 = vperm.slane %v2691_v11, 5 }
 0x3fe   : > { %2867 = vst [vmem:[#allocation1 + $0x4] ss:$9 sm:$0xff] %v2731_v27  ;;  %v2757_v27 = vperm.slane %v2691_v11, 6 }
 0x3ff   : > { %2868 = vst [vmem:[#allocation1 + $0x5] ss:$9 sm:$0xff] %v2732_v2  ;;  %v2758_v2 = vperm.slane %v2691_v11, 7 }
 0x400   : > { %2869 = vst [vmem:[#allocation1 + $0x6] ss:$9 sm:$0xff] %v2733_v37  ;;  %v1600_v37 = vpop.permute.xlu1 %1599 }
 0x401   : > { %2870 = vst [vmem:[#allocation1 + $0x7] ss:$9 sm:$0xff] %v2734_v38 }
 0x402   : > { %v1606_v38 = vpop.permute.xlu0 %1605 }
 0x408   : > { %v2871_v1 = vld [vmem:[#allocation1] sm:$0xff] }
 0x409   : > { %2872 = vst [vmem:[#allocation1] ss:$9 sm:$0xff] %v2735_v6  ;;  %3002 = vperm.xlu1 %3386, %v2871_v1   ;;  %v2760_v6 = vperm.slane %v2692_v49, 1  ;;  %v2761_v1 = vperm.slane %v2692_v49, 2 }
 0x40a   : > { %2873 = vst [vmem:[#allocation1 + $0x1] ss:$9 sm:$0xff] %v2736_v22 }
 0x40b   : > { %2874 = vst [vmem:[#allocation1 + $0x2] ss:$9 sm:$0xff] %v2737_v41  ;;  %v1609_v41 = vpop.permute.xlu1 %1608 }
 0x40c   : > { %2875 = vst [vmem:[#allocation1 + $0x3] ss:$9 sm:$0xff] %v2738_v62  ;;  %v2762_v62 = vperm.slane %v2692_v49, 3 }
 0x40d   : > { %2876 = vst [vmem:[#allocation1 + $0x4] ss:$9 sm:$0xff] %v2739_v48  ;;  %v2763_v48 = vperm.slane %v2692_v49, 4 }
 0x40e   : > { %2877 = vst [vmem:[#allocation1 + $0x5] ss:$9 sm:$0xff] %v2740_v45  ;;  %v2764_v45 = vperm.slane %v2692_v49, 5 }
 0x40f   : > { %2878 = vst [vmem:[#allocation1 + $0x6] ss:$9 sm:$0xff] %v2741_v18  ;;  %v2765_v18 = vperm.slane %v2692_v49, 6 }
 0x410   : > { %2879 = vst [vmem:[#allocation1 + $0x7] ss:$9 sm:$0xff] %v2742_v36  ;;  %v1612_v36 = vpop.permute.xlu0 %1611 }
 0x417   : > { %v2880_v56 = vld [vmem:[#allocation1] sm:$0xff] }
 0x418   : > { %2881 = vst [vmem:[#allocation1] ss:$9 sm:$0xff] %v2743_v26  ;;  %3005 = vperm.xlu0 %3385, %v2880_v56   ;;  %v1647_v26 = vperm.slane %v1603_v25, %v4354_v46  ;;  %v2693_v56 = vadd.f32 %v4322_v21, %v3892_v23 }
 0x419   : > { %2882 = vst [vmem:[#allocation1 + $0x1] ss:$9 sm:$0xff] %v2744_v59  ;;  %v1649_v59 = vperm.slane %v1606_v38, %v4362_v54 }
 0x41a   : > { %2883 = vst [vmem:[#allocation1 + $0x2] ss:$9 sm:$0xff] %v2745_v53  ;;  %v1646_v53 = vperm.slane %v1600_v37, %v4351_v0  ;;  %v2768_v11 = vperm.slane %v2693_v56, 1  ;;  %v2770_v21 = vperm.slane %v2693_v56, 3  ;;  %v1655_v37 = vperm.slane %v1615_v63, %v4369_v34 }
 0x41b   : > { %2884 = vst [vmem:[#allocation1 + $0x3] ss:$9 sm:$0xff] %v2746_v58  ;;  %v1618_v58 = vpop.permute.xlu1 %1617  ;;  %v2773_v38 = vperm.slane %v2693_v56, 6  ;;  %v2774_v25 = vperm.slane %v2693_v56, 7 }
 0x41c   : > { %2885 = vst [vmem:[#allocation1 + $0x4] ss:$9 sm:$0xff] %v2747_v30  ;;  %v1648_v30 = vsel %vm916_vm1, %v1647_v26, %v1646_v53 }
 0x41d   : > { %2886 = vst [vmem:[#allocation1 + $0x5] ss:$9 sm:$0xff] %v2748_v31  ;;  %v2767_v31 = vperm.slane %v2693_v56, 0 }
 0x41e   : > { %2887 = vst [vmem:[#allocation1 + $0x6] ss:$9 sm:$0xff] %v2749_v20  ;;  %v1650_v20 = vsel %vm920_vm2, %v1649_v59, %v1648_v30 }
 0x41f   : > { %2888 = vst [vmem:[#allocation1 + $0x7] ss:$9 sm:$0xff] %v2750_v35  ;;  %v1653_v35 = vperm.slane %v1612_v36, %v4374_v40 }
 0x423   : > { %v1627_v49 = vpop.permute.xlu1 %1626 }
 0x426   : > { %v2889_v60 = vld [vmem:[#allocation1] sm:$0xff] }
 0x427   : > { %2890 = vst [vmem:[#allocation1] ss:$9 sm:$0xff] %v2751_v5  ;;  %3008 = vperm.xlu2 %3387, %v2889_v60   ;;  %v1651_v5 = vperm.slane %v1609_v41, %v4359_v16  ;;  %v1621_v60 = vpop.permute.xlu0 %1620  ;;  %v2694_v41 = vadd.f32 %v4299_v28, %v3892_v23 }
 0x428   : > { %2891 = vst [vmem:[#allocation1 + $0x1] ss:$9 sm:$0xff] %v2752_v57 }
 0x429   : > { %2892 = vst [vmem:[#allocation1 + $0x2] ss:$9 sm:$0xff] %v2753_v39  ;;  %v2769_v39 = vperm.slane %v2693_v56, 2  ;;  %v2775_v26 = vperm.slane %v2694_v41, 0  ;;  %v2776_v59 = vperm.slane %v2694_v41, 1  ;;  %v2778_v30 = vperm.slane %v2694_v41, 3 }
 0x42a   : > { %2893 = vst [vmem:[#allocation1 + $0x3] ss:$9 sm:$0xff] %v2754_v12  ;;  %v1652_v12 = vsel %vm924_vm3, %v1651_v5, %v1650_v20  ;;  %v2779_v20 = vperm.slane %v2694_v41, 4  ;;  %v2781_v5 = vperm.slane %v2694_v41, 6 }
 0x42b   : > { %2894 = vst [vmem:[#allocation1 + $0x4] ss:$9 sm:$0xff] %v2755_v3  ;;  %v2771_v3 = vperm.slane %v2693_v56, 4 }
 0x42c   : > { %2895 = vst [vmem:[#allocation1 + $0x5] ss:$9 sm:$0xff] %v2756_v17  ;;  %v1624_v17 = vpop.permute.xlu2 %1623 }
 0x42d   : > { %2896 = vst [vmem:[#allocation1 + $0x6] ss:$9 sm:$0xff] %v2757_v27  ;;  %v1654_v27 = vsel %vm928_vm4, %v1653_v35, %v1652_v12 }
 0x42e   : > { %2897 = vst [vmem:[#allocation1 + $0x7] ss:$9 sm:$0xff] %v2758_v2  ;;  %v2772_v2 = vperm.slane %v2693_v56, 5  ;;  %v1663_v56 = vperm.slane %v1627_v49, %v4402_v44 }
 0x434   : > { %v1633_v36 = vpop.permute.xlu2 %1632 }
 0x435   : > { %v2898_v22 = vld [vmem:[#allocation1] sm:$0xff]  ;;  %v1667_v35 = vperm.slane %v1633_v36, %v4414_v4  ;;  %v2696_v36 = vadd.f32 %v4480_v15, %v3892_v23  ;;  %v2697_v15 = vadd.f32 %v4327_v47, %v3892_v23  ;;  %v2698_v47 = vadd.f32 %v4482_v7, %v3892_v23 }
 0x436   : > { %3011 = vperm.xlu1 %3386, %v2898_v22   ;;  %2899 = vst [vmem:[#allocation1] ss:$9 sm:$0xff] %v2759_v52  ;;  %v1656_v52 = vsel %vm932_vm5, %v1655_v37, %v1654_v27  ;;  %v1657_v22 = vperm.slane %v1618_v58, %v4387_v14  ;;  %v2777_v58 = vperm.slane %v2694_v41, 2  ;;  %v2699_v7 = vadd.f32 %v4308_v43, %v3892_v23 }
 0x437   : > { %2900 = vst [vmem:[#allocation1 + $0x1] ss:$9 sm:$0xff] %v2760_v6  ;;  %v1659_v6 = vperm.slane %v1621_v60, %v4383_v29  ;;  %v2700_v43 = vadd.f32 %v4318_v13, %v3892_v23  ;;  %v2701_v13 = vadd.f32 %v4325_v50, %v3892_v23  ;;  %v2702_v50 = vadd.f32 %v4486_v33, %v3892_v23 }
 0x438   : > { %2901 = vst [vmem:[#allocation1 + $0x2] ss:$9 sm:$0xff] %v2761_v1  ;;  %v1658_v1 = vsel %vm936_vm6, %v1657_v22, %v1656_v52 }
 0x439   : > { %2902 = vst [vmem:[#allocation1 + $0x3] ss:$9 sm:$0xff] %v2762_v62  ;;  %v1660_v62 = vsel %vm940_vm7, %v1659_v6, %v1658_v1 }
 0x43a   : > { %2903 = vst [vmem:[#allocation1 + $0x4] ss:$9 sm:$0xff] %v2763_v48  ;;  %v1630_v48 = vpop.permute.xlu0 %1629 }
 0x43b   : > { %2904 = vst [vmem:[#allocation1 + $0x5] ss:$9 sm:$0xff] %v2764_v45  ;;  %v1661_v45 = vperm.slane %v1624_v17, %v4395_v51  ;;  %v1665_v63 = vperm.slane %v1630_v48, %v4399_v9 }
 0x43c   : > { %2905 = vst [vmem:[#allocation1 + $0x6] ss:$9 sm:$0xff] %v2765_v18  ;;  %v1636_v18 = vpop.permute.xlu1 %1635  ;;  %v1645_v12 = vpop.permute.xlu2 %1644 }
 0x43d   : > { %2906 = vst [vmem:[#allocation1 + $0x7] ss:$9 sm:$0xff] %v2766_v10  ;;  %v1662_v10 = vsel %vm944_vm8, %v1661_v45, %v1660_v62  ;;  %v1675_v37 = vperm.slane %v1645_v12, %v4442_v61  ;;  %v2807_v12 = vperm.slane %v2698_v47, 0 }
 0x43e   : > { %v1664_v28 = vsel %vm948_vm9, %v1663_v56, %v1662_v10  ;;  %v2791_v10 = vperm.slane %v2696_v36, 0  ;;  %v2793_v56 = vperm.slane %v2696_v36, 2 }
 0x444   : > { %v2907_v57 = vld [vmem:[#allocation1] sm:$0xff] }
 0x445   : > { %3014 = vperm.xlu2 %3387, %v2907_v57   ;;  %2908 = vst [vmem:[#allocation1] ss:$9 sm:$0xff] %v2767_v31  ;;  %v1666_v31 = vsel %vm952_vm10, %v1665_v63, %v1664_v28  ;;  %v1642_v57 = vpop.permute.xlu1 %1641  ;;  %v2792_v63 = vperm.slane %v2696_v36, 1  ;;  %v2797_v28 = vperm.slane %v2696_v36, 6 }
 0x446   : > { %2909 = vst [vmem:[#allocation1 + $0x1] ss:$9 sm:$0xff] %v2768_v11  ;;  %v2780_v11 = vperm.slane %v2694_v41, 5  ;;  %v1668_v60 = vsel %vm956_vm11, %v1667_v35, %v1666_v31  ;;  %v1673_v27 = vperm.slane %v1642_v57, %v4433_v24  ;;  %v2799_v31 = vperm.slane %v2697_v15, 0 }
 0x447   : > { %2910 = vst [vmem:[#allocation1 + $0x2] ss:$9 sm:$0xff] %v2769_v39  ;;  %v2782_v39 = vperm.slane %v2694_v41, 7  ;;  %v2803_v57 = vperm.slane %v2697_v15, 4 }
 0x448   : > { %2911 = vst [vmem:[#allocation1 + $0x3] ss:$9 sm:$0xff] %v2770_v21  ;;  %v1669_v21 = vperm.slane %v1636_v18, %v4409_v42 }
 0x449   : > { %2912 = vst [vmem:[#allocation1 + $0x4] ss:$9 sm:$0xff] %v2771_v3  ;;  %v1639_v3 = vpop.permute.xlu0 %1638 }
 0x44a   : > { %2913 = vst [vmem:[#allocation1 + $0x5] ss:$9 sm:$0xff] %v2772_v2  ;;  %v1671_v17 = vperm.slane %v1639_v3, %v4426_v32  ;;  %v1670_v2 = vsel %vm960_vm12, %v1669_v21, %v1668_v60  ;;  %v2804_v60 = vperm.slane %v2697_v15, 5  ;;  %v2806_v21 = vperm.slane %v2697_v15, 7 }
 0x44b   : > { %2914 = vst [vmem:[#allocation1 + $0x6] ss:$9 sm:$0xff] %v2773_v38  ;;  %v2695_v38 = vadd.f32 %v4477_v8, %v3892_v23  ;;  %v2808_v3 = vperm.slane %v2698_v47, 1 }
 0x44c   : > { %2915 = vst [vmem:[#allocation1 + $0x7] ss:$9 sm:$0xff] %v2774_v25  ;;  %v1672_v49 = vsel %vm964_vm13, %v1671_v17, %v1670_v2  ;;  %v2810_v2 = vperm.slane %v2698_v47, 3 }
 0x44d   : > { %v1674_v25 = vsel %vm968_vm14, %v1673_v27, %v1672_v49  ;;  %v2783_v6 = vperm.slane %v2695_v38, 0  ;;  %v2784_v22 = vperm.slane %v2695_v38, 1  ;;  %v2785_v41 = vperm.slane %v2695_v38, 2 }
 0x44e   : > { %v1676_v52 = vsel %vm972_vm15, %v1675_v37, %v1674_v25  ;;  %v2786_v62 = vperm.slane %v2695_v38, 3  ;;  %v2787_v48 = vperm.slane %v2695_v38, 4  ;;  %v2788_v45 = vperm.slane %v2695_v38, 5 }
 0x44f   : > { %3242 = vst.msk [vmem:[%s4455_s9 + $0x1] sm:$0x1] %vm4448_vm0, %v1676_v52  ;;  %v2789_v8 = vperm.slane %v2695_v38, 6  ;;  %v2790_v18 = vperm.slane %v2695_v38, 7  ;;  %v2809_v27 = vperm.slane %v2698_v47, 2  ;;  %v2811_v37 = vperm.slane %v2698_v47, 4 }
 0x450   : > { %v2812_v49 = vperm.slane %v2698_v47, 5  ;;  %v2813_v38 = vperm.slane %v2698_v47, 6  ;;  %v2814_v25 = vperm.slane %v2698_v47, 7  ;;  %v2815_v52 = vperm.slane %v2699_v7, 0 }
 0x451   : > { %v2842_v47 = vperm.slane %v2702_v50, 3 }
 0x453   : > { %v2916_v53 = vld [vmem:[#allocation1] sm:$0xff] }
 0x454   : > { %3017 = vperm.xlu1 %3386, %v2916_v53   ;;  %2917 = vst [vmem:[#allocation1] ss:$9 sm:$0xff] %v2775_v26  ;;  %v2795_v53 = vperm.slane %v2696_v36, 4 }
 0x455   : > { %2918 = vst [vmem:[#allocation1 + $0x1] ss:$9 sm:$0xff] %v2776_v59  ;;  %v2794_v59 = vperm.slane %v2696_v36, 3 }
 0x456   : > { %2919 = vst [vmem:[#allocation1 + $0x2] ss:$9 sm:$0xff] %v2777_v58  ;;  %v2796_v58 = vperm.slane %v2696_v36, 5 }
 0x457   : > { %2920 = vst [vmem:[#allocation1 + $0x3] ss:$9 sm:$0xff] %v2778_v30  ;;  %v2798_v30 = vperm.slane %v2696_v36, 7  ;;  %v2824_v36 = vperm.slane %v2700_v43, 1 }
 0x458   : > { %2921 = vst [vmem:[#allocation1 + $0x4] ss:$9 sm:$0xff] %v2779_v20  ;;  %v2800_v20 = vperm.slane %v2697_v15, 1 }
 0x459   : > { %2922 = vst [vmem:[#allocation1 + $0x5] ss:$9 sm:$0xff] %v2780_v11  ;;  %v2801_v11 = vperm.slane %v2697_v15, 2 }
 0x45a   : > { %2923 = vst [vmem:[#allocation1 + $0x6] ss:$9 sm:$0xff] %v2781_v5  ;;  %v2802_v5 = vperm.slane %v2697_v15, 3 }
 0x45b   : > { %2924 = vst [vmem:[#allocation1 + $0x7] ss:$9 sm:$0xff] %v2782_v39  ;;  %v2805_v39 = vperm.slane %v2697_v15, 6 }
 0x462   : > { %v2925_v1 = vld [vmem:[#allocation1] sm:$0xff] }
 0x463   : > { %3020 = vperm.xlu1 %3386, %v2925_v1   ;;  %2926 = vst [vmem:[#allocation1] ss:$9 sm:$0xff] %v2783_v6  ;;  %v2816_v6 = vperm.slane %v2699_v7, 1  ;;  %v2817_v1 = vperm.slane %v2699_v7, 2 }
 0x464   : > { %2927 = vst [vmem:[#allocation1 + $0x1] ss:$9 sm:$0xff] %v2784_v22 }
 0x465   : > { %2928 = vst [vmem:[#allocation1 + $0x2] ss:$9 sm:$0xff] %v2785_v41  ;;  %v2818_v41 = vperm.slane %v2699_v7, 3 }
 0x466   : > { %2929 = vst [vmem:[#allocation1 + $0x3] ss:$9 sm:$0xff] %v2786_v62  ;;  %v2819_v62 = vperm.slane %v2699_v7, 4 }
 0x467   : > { %2930 = vst [vmem:[#allocation1 + $0x4] ss:$9 sm:$0xff] %v2787_v48  ;;  %v2820_v48 = vperm.slane %v2699_v7, 5 }
 0x468   : > { %2931 = vst [vmem:[#allocation1 + $0x5] ss:$9 sm:$0xff] %v2788_v45  ;;  %v2821_v45 = vperm.slane %v2699_v7, 6 }
 0x469   : > { %2932 = vst [vmem:[#allocation1 + $0x6] ss:$9 sm:$0xff] %v2789_v8  ;;  %v2822_v8 = vperm.slane %v2699_v7, 7 }
 0x46a   : > { %2933 = vst [vmem:[#allocation1 + $0x7] ss:$9 sm:$0xff] %v2790_v18  ;;  %v2823_v18 = vperm.slane %v2700_v43, 0 }
 0x471   : > { %v2934_v26 = vld [vmem:[#allocation1] sm:$0xff] }
 0x472   : > { %3023 = vperm.xlu2 %3387, %v2934_v26   ;;  %2935 = vst [vmem:[#allocation1] ss:$9 sm:$0xff] %v2791_v10  ;;  %v2826_v26 = vperm.slane %v2700_v43, 3 }
 0x473   : > { %2936 = vst [vmem:[#allocation1 + $0x1] ss:$9 sm:$0xff] %v2792_v63  ;;  %v2825_v63 = vperm.slane %v2700_v43, 2 }
 0x474   : > { %2937 = vst [vmem:[#allocation1 + $0x2] ss:$9 sm:$0xff] %v2793_v56  ;;  %v2827_v56 = vperm.slane %v2700_v43, 4 }
 0x475   : > { %2938 = vst [vmem:[#allocation1 + $0x3] ss:$9 sm:$0xff] %v2794_v59  ;;  %v2828_v59 = vperm.slane %v2700_v43, 5 }
 0x476   : > { %2939 = vst [vmem:[#allocation1 + $0x4] ss:$9 sm:$0xff] %v2795_v53  ;;  %v2829_v53 = vperm.slane %v2700_v43, 6 }
 0x477   : > { %2940 = vst [vmem:[#allocation1 + $0x5] ss:$9 sm:$0xff] %v2796_v58  ;;  %v2830_v58 = vperm.slane %v2700_v43, 7 }
 0x478   : > { %2941 = vst [vmem:[#allocation1 + $0x6] ss:$9 sm:$0xff] %v2797_v28  ;;  %v2831_v28 = vperm.slane %v2701_v13, 0 }
 0x479   : > { %2942 = vst [vmem:[#allocation1 + $0x7] ss:$9 sm:$0xff] %v2798_v30  ;;  %v2832_v30 = vperm.slane %v2701_v13, 1 }
 0x480   : > { %v2943_v35 = vld [vmem:[#allocation1] sm:$0xff] }
 0x481   : > { %3026 = vperm.xlu0 %3385, %v2943_v35   ;;  %2944 = vst [vmem:[#allocation1] ss:$9 sm:$0xff] %v2799_v31  ;;  %v2833_v31 = vperm.slane %v2701_v13, 2  ;;  %v2835_v35 = vperm.slane %v2701_v13, 4 }
 0x482   : > { %2945 = vst [vmem:[#allocation1 + $0x1] ss:$9 sm:$0xff] %v2800_v20  ;;  %v2834_v20 = vperm.slane %v2701_v13, 3 }
 0x483   : > { %2946 = vst [vmem:[#allocation1 + $0x2] ss:$9 sm:$0xff] %v2801_v11  ;;  %v2836_v11 = vperm.slane %v2701_v13, 5 }
 0x484   : > { %2947 = vst [vmem:[#allocation1 + $0x3] ss:$9 sm:$0xff] %v2802_v5  ;;  %v2837_v5 = vperm.slane %v2701_v13, 6 }
 0x485   : > { %2948 = vst [vmem:[#allocation1 + $0x4] ss:$9 sm:$0xff] %v2803_v57  ;;  %v2838_v57 = vperm.slane %v2701_v13, 7 }
 0x486   : > { %2949 = vst [vmem:[#allocation1 + $0x5] ss:$9 sm:$0xff] %v2804_v60  ;;  %v2839_v60 = vperm.slane %v2702_v50, 0 }
 0x487   : > { %2950 = vst [vmem:[#allocation1 + $0x6] ss:$9 sm:$0xff] %v2805_v39  ;;  %v2840_v39 = vperm.slane %v2702_v50, 1 }
 0x488   : > { %2951 = vst [vmem:[#allocation1 + $0x7] ss:$9 sm:$0xff] %v2806_v21  ;;  %v2841_v21 = vperm.slane %v2702_v50, 2 }
 0x48f   : > { %v2952_v17 = vld [vmem:[#allocation1] sm:$0xff] }
 0x490   : > { %3029 = vperm.xlu1 %3386, %v2952_v17   ;;  %2953 = vst [vmem:[#allocation1] ss:$9 sm:$0xff] %v2807_v12  ;;  %v2844_v17 = vperm.slane %v2702_v50, 5 }
 0x491   : > { %2954 = vst [vmem:[#allocation1 + $0x1] ss:$9 sm:$0xff] %v2808_v3  ;;  %v2843_v3 = vperm.slane %v2702_v50, 4 }
 0x492   : > { %2955 = vst [vmem:[#allocation1 + $0x2] ss:$9 sm:$0xff] %v2809_v27  ;;  %v2845_v27 = vperm.slane %v2702_v50, 6 }
 0x493   : > { %2956 = vst [vmem:[#allocation1 + $0x3] ss:$9 sm:$0xff] %v2810_v2  ;;  %v2846_v2 = vperm.slane %v2702_v50, 7 }
 0x494   : > { %2957 = vst [vmem:[#allocation1 + $0x4] ss:$9 sm:$0xff] %v2811_v37  ;;  %v2303_v37 = vpop.permute.xlu2 %2302 }
 0x495   : > { %2958 = vst [vmem:[#allocation1 + $0x5] ss:$9 sm:$0xff] %v2812_v49  ;;  %v2347_v43 = vperm.slane %v2303_v37, %v4354_v46 }
 0x496   : > { %2959 = vst [vmem:[#allocation1 + $0x6] ss:$9 sm:$0xff] %v2813_v38 }
 0x497   : > { %2960 = vst [vmem:[#allocation1 + $0x7] ss:$9 sm:$0xff] %v2814_v25 }
 0x49c   : > { %v2312_v38 = vpop.permute.xlu2 %2311 }
 0x49e   : > { %v2961_v22 = vld [vmem:[#allocation1] sm:$0xff] }
 0x49f   : > { %3032 = vperm.xlu2 %3387, %v2961_v22   ;;  %2962 = vst [vmem:[#allocation1] ss:$9 sm:$0xff] %v2815_v52  ;;  %v2300_v52 = vpop.permute.xlu0 %2299 }
 0x4a0   : > { %2963 = vst [vmem:[#allocation1 + $0x1] ss:$9 sm:$0xff] %v2816_v6 }
 0x4a1   : > { %2964 = vst [vmem:[#allocation1 + $0x2] ss:$9 sm:$0xff] %v2817_v1 }
 0x4a2   : > { %2965 = vst [vmem:[#allocation1 + $0x3] ss:$9 sm:$0xff] %v2818_v41 }
 0x4a3   : > { %2966 = vst [vmem:[#allocation1 + $0x4] ss:$9 sm:$0xff] %v2819_v62 }
 0x4a4   : > { %2967 = vst [vmem:[#allocation1 + $0x5] ss:$9 sm:$0xff] %v2820_v48  ;;  %v2318_v7 = vpop.permute.xlu2 %2317 }
 0x4a5   : > { %2968 = vst [vmem:[#allocation1 + $0x6] ss:$9 sm:$0xff] %v2821_v45  ;;  %v2346_v45 = vperm.slane %v2300_v52, %v4351_v0 }
 0x4a6   : > { %2969 = vst [vmem:[#allocation1 + $0x7] ss:$9 sm:$0xff] %v2822_v8 }
 0x4a7   : > { %v2309_v1 = vpop.permute.xlu0 %2308 }
 0x4ac   : > { %v2321_v22 = vpop.permute.xlu2 %2320 }
 0x4ad   : > { %v2970_v10 = vld [vmem:[#allocation1] sm:$0xff] }
 0x4ae   : > { %3035 = vperm.xlu0 %3385, %v2970_v10   ;;  %2971 = vst [vmem:[#allocation1] ss:$9 sm:$0xff] %v2823_v18  ;;  %v2351_v10 = vperm.slane %v2309_v1, %v4359_v16 }
 0x4af   : > { %2972 = vst [vmem:[#allocation1 + $0x1] ss:$9 sm:$0xff] %v2824_v36  ;;  %v2324_v8 = vpop.permute.xlu0 %2323  ;;  %v2348_v36 = vsel %vm916_vm1, %v2347_v43, %v2346_v45 }
 0x4b0   : > { %2973 = vst [vmem:[#allocation1 + $0x2] ss:$9 sm:$0xff] %v2825_v63 }
 0x4b1   : > { %2974 = vst [vmem:[#allocation1 + $0x3] ss:$9 sm:$0xff] %v2826_v26 }
 0x4b2   : > { %2975 = vst [vmem:[#allocation1 + $0x4] ss:$9 sm:$0xff] %v2827_v56 }
 0x4b3   : > { %2976 = vst [vmem:[#allocation1 + $0x5] ss:$9 sm:$0xff] %v2828_v59  ;;  %v2353_v59 = vperm.slane %v2312_v38, %v4374_v40 }
 0x4b4   : > { %2977 = vst [vmem:[#allocation1 + $0x6] ss:$9 sm:$0xff] %v2829_v53  ;;  %v2330_v62 = vpop.permute.xlu2 %2329 }
 0x4b5   : > { %2978 = vst [vmem:[#allocation1 + $0x7] ss:$9 sm:$0xff] %v2830_v58 }
 0x4b7   : > { %v2333_v58 = vpop.permute.xlu0 %2332 }
 0x4bc   : > { %v2979_v15 = vld [vmem:[#allocation1] sm:$0xff]  ;;  %v2339_v18 = vpop.permute.xlu2 %2338 }
 0x4bd   : > { %3038 = vperm.xlu1 %3386, %v2979_v15   ;;  %2980 = vst [vmem:[#allocation1] ss:$9 sm:$0xff] %v2831_v28  ;;  %v2371_v52 = vperm.slane %v2339_v18, %v4426_v32 }
 0x4be   : > { %2981 = vst [vmem:[#allocation1 + $0x1] ss:$9 sm:$0xff] %v2832_v30 }
 0x4bf   : > { %2982 = vst [vmem:[#allocation1 + $0x2] ss:$9 sm:$0xff] %v2833_v31  ;;  %v2357_v31 = vperm.slane %v2318_v7, %v4387_v14  ;;  %v2342_v50 = vpop.permute.xlu0 %2341 }
 0x4c0   : > { %2983 = vst [vmem:[#allocation1 + $0x3] ss:$9 sm:$0xff] %v2834_v20  ;;  %v2373_v38 = vperm.slane %v2342_v50, %v4433_v24 }
 0x4c1   : > { %2984 = vst [vmem:[#allocation1 + $0x4] ss:$9 sm:$0xff] %v2835_v35  ;;  %v2361_v35 = vperm.slane %v2324_v8, %v4395_v51 }
 0x4c2   : > { %2985 = vst [vmem:[#allocation1 + $0x5] ss:$9 sm:$0xff] %v2836_v11 }
 0x4c3   : > { %2986 = vst [vmem:[#allocation1 + $0x6] ss:$9 sm:$0xff] %v2837_v5  ;;  %v2359_v5 = vperm.slane %v2321_v22, %v4383_v29 }
 0x4c4   : > { %2987 = vst [vmem:[#allocation1 + $0x7] ss:$9 sm:$0xff] %v2838_v57  ;;  %v3000_v30 = vpop.permute.xlu2 %2999 }
 0x4c5   : > { %2344 = vperm.xlu1 %3386, %v4471_v55   ;;  %v2306_v55 = vpop.permute.xlu1 %2305  ;;  %v3046_v22 = vperm.slane %v3000_v30, %v4351_v0 }
 0x4c6   : > { %v2349_v63 = vperm.slane %v2306_v55, %v4362_v54 }
 0x4c7   : > { %v3006_v55 = vpop.permute.xlu0 %3005 }
 0x4c8   : > { %v2350_v26 = vsel %vm920_vm2, %v2349_v63, %v2348_v36  ;;  %v3049_v7 = vperm.slane %v3006_v55, %v4362_v54 }
 0x4c9   : > { %v2352_v56 = vsel %vm924_vm3, %v2351_v10, %v2350_v26 }
 0x4ca   : > { %v2354_v13 = vsel %vm928_vm4, %v2353_v59, %v2352_v56 }
 0x4cb   : > { %v2988_v12 = vld [vmem:[#allocation1] sm:$0xff] }
 0x4cc   : > { %3041 = vperm.xlu2 %3387, %v2988_v12   ;;  %2989 = vst [vmem:[#allocation1] ss:$9 sm:$0xff] %v2839_v60  ;;  %v3009_v60 = vpop.permute.xlu2 %3008  ;;  %v2367_v12 = vperm.slane %v2333_v58, %v4414_v4 }
 0x4cd   : > { %2990 = vst [vmem:[#allocation1 + $0x1] ss:$9 sm:$0xff] %v2840_v39  ;;  %v2315_v33 = vpop.permute.xlu1 %2314  ;;  %v3051_v43 = vperm.slane %v3009_v60, %v4359_v16 }
 0x4ce   : > { %2991 = vst [vmem:[#allocation1 + $0x2] ss:$9 sm:$0xff] %v2841_v21  ;;  %v2355_v28 = vperm.slane %v2315_v33, %v4369_v34 }
 0x4cf   : > { %2992 = vst [vmem:[#allocation1 + $0x3] ss:$9 sm:$0xff] %v2842_v47 }
 0x4d0   : > { %2993 = vst [vmem:[#allocation1 + $0x4] ss:$9 sm:$0xff] %v2843_v3  ;;  %v2356_v15 = vsel %vm932_vm5, %v2355_v28, %v2354_v13  ;;  %v2365_v3 = vperm.slane %v2330_v62, %v4399_v9 }
 0x4d1   : > { %2994 = vst [vmem:[#allocation1 + $0x5] ss:$9 sm:$0xff] %v2844_v17  ;;  %v2358_v20 = vsel %vm936_vm6, %v2357_v31, %v2356_v15 }
 0x4d2   : > { %2995 = vst [vmem:[#allocation1 + $0x6] ss:$9 sm:$0xff] %v2845_v27  ;;  %v2360_v57 = vsel %vm940_vm7, %v2359_v5, %v2358_v20 }
 0x4d3   : > { %2996 = vst [vmem:[#allocation1 + $0x7] ss:$9 sm:$0xff] %v2846_v2  ;;  %v2362_v39 = vsel %vm944_vm8, %v2361_v35, %v2360_v57 }
 0x4d5   : > { %v2327_v49 = vpop.permute.xlu1 %2326 }
 0x4d6   : > { %v2363_v21 = vperm.slane %v2327_v49, %v4402_v44 }
 0x4d8   : > { %v2364_v47 = vsel %vm948_vm9, %v2363_v21, %v2362_v39 }
 0x4d9   : > { %v2366_v27 = vsel %vm952_vm10, %v2365_v3, %v2364_v47 }
 0x4da   : > { %v2997_v23 = vld [vmem:[#allocation1] sm:$0xff]  ;;  %v2368_v2 = vsel %vm956_vm11, %v2367_v12, %v2366_v27 }
 0x4db   : > { %3044 = vperm.xlu0 %3385, %v2997_v23   ;;  %v3015_v23 = vpop.permute.xlu2 %3014 }
 0x4dc   : > { %v3055_v26 = vperm.slane %v3015_v23, %v4369_v34 }
 0x4dd   : > { %v2336_v25 = vpop.permute.xlu1 %2335 }
 0x4de   : > { %v2369_v33 = vperm.slane %v2336_v25, %v4409_v42 }
 0x4e0   : > { %v2370_v49 = vsel %vm960_vm12, %v2369_v33, %v2368_v2 }
 0x4e1   : > { %v2372_v62 = vsel %vm964_vm13, %v2371_v52, %v2370_v49 }
 0x4e3   : > { %v3024_v54 = vpop.permute.xlu2 %3023 }
 0x4e4   : > { %v3061_v13 = vperm.slane %v3024_v54, %v4395_v51 }
 0x4e5   : > { %v3003_v6 = vpop.permute.xlu1 %3002 }
 0x4e6   : > { %v3047_v37 = vperm.slane %v3003_v6, %v4354_v46  ;;  %v2374_v46 = vsel %vm968_vm14, %v2373_v38, %v2372_v62 }
 0x4e8   : > { %v3048_v45 = vsel %vm916_vm1, %v3047_v37, %v3046_v22 }
 0x4e9   : > { %v3050_v6 = vsel %vm920_vm2, %v3049_v7, %v3048_v45 }
 0x4ea   : > { %v3052_v0 = vsel %vm924_vm3, %v3051_v43, %v3050_v6 }
 0x4ed   : > { %v3012_v41 = vpop.permute.xlu1 %3011 }
 0x4ee   : > { %v3053_v8 = vperm.slane %v3012_v41, %v4374_v40 }
 0x4f0   : > { %v3054_v10 = vsel %vm928_vm4, %v3053_v8, %v3052_v0 }
 0x4f1   : > { %v3056_v16 = vsel %vm932_vm5, %v3055_v26, %v3054_v10 }
 0x4f3   : > { %v3027_v36 = vpop.permute.xlu0 %3026 }
 0x4f4   : > { %v3063_v58 = vperm.slane %v3027_v36, %v4402_v44 }
 0x4f5   : > { %v3018_v48 = vpop.permute.xlu1 %3017 }
 0x4f6   : > { %v3057_v63 = vperm.slane %v3018_v48, %v4387_v14 }
 0x4f8   : > { %v3058_v41 = vsel %vm936_vm6, %v3057_v63, %v3056_v16 }
 0x4f9   : > { %v3033_v59 = vpop.permute.xlu2 %3032 }
 0x4fd   : > { %v3021_v53 = vpop.permute.xlu1 %3020 }
 0x4fe   : > { %v3059_v40 = vperm.slane %v3021_v53, %v4383_v29  ;;  %v3067_v53 = vperm.slane %v3033_v59, %v4414_v4 }
 0x500   : > { %v3060_v56 = vsel %vm940_vm7, %v3059_v40, %v3058_v41 }
 0x501   : > { %v3062_v14 = vsel %vm944_vm8, %v3061_v13, %v3060_v56 }
 0x502   : > { %v3064_v34 = vsel %vm948_vm9, %v3063_v58, %v3062_v14 }
 0x505   : > { %v3030_v11 = vpop.permute.xlu1 %3029 }
 0x506   : > { %v3065_v28 = vperm.slane %v3030_v11, %v4399_v9 }
 0x508   : > { %v3066_v29 = vsel %vm952_vm10, %v3065_v28, %v3064_v34 }
 0x509   : > { %v3068_v9 = vsel %vm956_vm11, %v3067_v53, %v3066_v29 }
 0x520   : > { %v3036_v30 = vpop.permute.xlu0 %3035 }
 0x521   : > { %v3069_v48 = vperm.slane %v3036_v30, %v4409_v42 }
 0x523   : > { %v3070_v15 = vsel %vm960_vm12, %v3069_v48, %v3068_v9 }
 0x526   : > { %v3042_v51 = vpop.permute.xlu2 %3041 }
 0x527   : > { %v3073_v42 = vperm.slane %v3042_v51, %v4433_v24 }
 0x52f   : > { %v3039_v17 = vpop.permute.xlu1 %3038 }
 0x530   : > { %v3071_v44 = vperm.slane %v3039_v17, %v4426_v32 }
 0x532   : > { %v3072_v31 = vsel %vm964_vm13, %v3071_v44, %v3070_v15 }
 0x533   : > { %v3074_v20 = vsel %vm968_vm14, %v3073_v42, %v3072_v31 }
 0x537   : > { %v2345_v1 = vpop.permute.xlu1 %2344 }
 0x538   : > { %v2375_v25 = vperm.slane %v2345_v1, %v4442_v61 }
 0x53a   : > { %v2376_v18 = vsel %vm972_vm15, %v2375_v25, %v2374_v46 }
 0x53b   : > { %3291 = vst.msk [vmem:[%s4455_s9 + $0x2] sm:$0x1] %vm4448_vm0, %v2376_v18 }
 0x54d   : > { %v3045_v4 = vpop.permute.xlu0 %3044 }
 0x54e   : > { %v3075_v32 = vperm.slane %v3045_v4, %v4442_v61 }
 0x550   : > { %v3076_v35 = vsel %vm972_vm15, %v3075_v32, %v3074_v20 }
 0x551   : > { %3340 = vst.msk [vmem:[%s4455_s9 + $0x3] sm:$0x1] %vm4448_vm0, %v3076_v35 }
 0x552   : > { %3415 = shalt.err (!%p3412_p3)
}
 0x553   : > { %3345 = dma.vmem_to_hbm [thread:$0]  (%p3524_p5), %s3094_s4, 64, %s3096_s14, %s3081_s15  }
 0x554 PF: > { %p3351_p4 = scmp.ge.s32.totalorder %s3450_s23, 2  ;;  %s3107_s6 = sand.u32 1, %s3438_s20  }
 0x555   : > { %s3108_s7 = scalar_lea.sflag [#allocation4], %s3107_s6 }
 0x556   : > { %p3348_p7 = pnand %p3351_p4, %p3528_p6 }
 0x558   : > { %p3349_p8 = pneg %p3348_p7 }
 0x55a   : > { %3433 = dma.done.wait (%p3349_p8), %s3108_s7, 64  }
 0x55b   : > { %3435 = vsyncadd (%p3349_p8), %s3108_s7, 4294967232  ;;  %p16_p9 = scmp.ge.s32.totalorder %s3511_s25, 4   ;;  %s4657_s20 = smov %s3442_s21 }
 0x55c   : > { %s4658_s21 = smov %s3446_s22  ;;  %s4659_s22 = smov %s3522_s28 }
 0x55d   : > { %s4660_s23 = smov %s3511_s25  ;;  %18 = sbr.rel (!%p16_p9) target bundleno = 5 (0x5), region = 109 }
 0x562   :  { %3114 = vsyncpa [#allocation4], 1 }
 0x563   :  { %3116 = vsyncpa [#allocation4 + $0x1], 1 }

</bundles_post_ra>
